<compile_context>
chip_gen: v7x
topology: tpu7x:2x2x1
jax: 0.10.0
libtpu: 0.0.40
codegen_flags: <defaults>
</compile_context>

<pallas_src>
from functools import partial

import jax
import jax.numpy as jnp
from jax.experimental import pallas as pl
from jax.experimental.pallas import tpu as pltpu


def _round_up(x, m):
    return ((x + m - 1) // m) * m


def _sigmoid(x):
    # Single EUP tanh per gate (mathematically identical to logistic sigmoid).
    return 0.5 * jnp.tanh(0.5 * x) + 0.5


# ---------------------------------------------------------------------------
# Weight packing: PyTorch (4H, Din) gate-stacked weights -> (Din_p, 4*Hp)
# transposed, gate g occupying lane-aligned columns [g*Hp, g*Hp + H), zeros
# in all padded rows / columns (keeps padded h/c lanes exactly 0).
# ---------------------------------------------------------------------------
def _pack_gate_weight(w, H, Hp, din_p, dtype):
    Din = w.shape[1]
    w4 = w.astype(jnp.float32).reshape(4, H, Din)            # (gate, out, in)
    buf = jnp.zeros((4, Hp, din_p), jnp.float32).at[:, :H, :Din].set(w4)
    return jnp.transpose(buf, (2, 0, 1)).reshape(din_p, 4 * Hp).astype(dtype)


def _pack_gate_bias(b, H, Hp):
    b4 = b.astype(jnp.float32).reshape(4, H)
    return jnp.zeros((4, Hp), jnp.float32).at[:, :H].set(b4).reshape(1, 4 * Hp)


# ---------------------------------------------------------------------------
# Fused model kernel (built per static config).
#   refs = (x, [wih, whh, b] * L, fc_w, fc_b, out, xp_scr, seq_scr, h_scr, c_scr)
# All activations / weights resident in VMEM; layer loop and time loop run
# inside the kernel (no per-timestep grid overhead, no HBM round trips).
# ---------------------------------------------------------------------------
_STATIC_UNROLL_MAX_T = 32


def make_model_kernel(num_layers, T, B, Hp):
    def kernel(*refs):
        x_ref = refs[0]
        w_refs = refs[1:1 + 3 * num_layers]
        fc_w_ref = refs[1 + 3 * num_layers]
        fc_b_ref = refs[2 + 3 * num_layers]
        out_ref = refs[3 + 3 * num_layers]
        xp_scr, seq_scr, h_scr, c_scr = refs[4 + 3 * num_layers:]

        for layer in range(num_layers):
            wih_ref = w_refs[3 * layer + 0]
            whh_ref = w_refs[3 * layer + 1]
            b_ref = w_refs[3 * layer + 2]

            # ---- Hoisted input projection (+ fused bias): one dense MXU
            #      matmul over all T*B rows, off the serial time loop.
            #      Inputs are already flat 2-D -> no in-kernel reshape.
            xin_ref = x_ref if layer == 0 else seq_scr
            xp_scr[...] = (
                jnp.dot(xin_ref[...].astype(wih_ref.dtype), wih_ref[...],
                        preferred_element_type=jnp.float32)
                + b_ref[...])                                  # (T*B, 4Hp)

            # ---- Recurrence: only h @ W_hh + elementwise gate math per step.
            h_scr[...] = jnp.zeros_like(h_scr)
            c_scr[...] = jnp.zeros_like(c_scr)
            write_seq = layer < num_layers - 1   # last layer: only h[T-1] used

            def step(row):
                # W_hh read from its ref every step (not hoisted into a value:
                # keeps the unrolled loop's vreg live ranges tiny).
                # TODO(synk): MXU-stationary RHS via pltpu.matmul_push_rhs.
                gates = (xp_scr[pl.ds(row, B), :]
                         + jnp.dot(h_scr[...].astype(whh_ref.dtype),
                                   whh_ref[...],
                                   preferred_element_type=jnp.float32))
                # 128-lane-aligned gate slices (Hp is a multiple of 128).
                i = _sigmoid(gates[:, 0 * Hp:1 * Hp])
                f = _sigmoid(gates[:, 1 * Hp:2 * Hp])
                g = jnp.tanh(gates[:, 2 * Hp:3 * Hp])
                o = _sigmoid(gates[:, 3 * Hp:4 * Hp])
                c_new = f * c_scr[...] + i * g
                h_new = o * jnp.tanh(c_new)
                c_scr[...] = c_new
                h_scr[...] = h_new
                if write_seq:
                    seq_scr[pl.ds(row, B), :] = h_new.astype(seq_scr.dtype)

            if T <= _STATIC_UNROLL_MAX_T:
                # Static unroll with constant row offsets (B divides 8, so a
                # step's rows never cross an (8,128) tile).  Safe now that the
                # only cross-step state lives in VMEM scratch.
                for t in range(T):
                    step(t * B)
            else:
                # Large-T path: bounded live ranges, partial unroll for LLO
                # scheduling visibility, dynamic (B-aligned) row offsets.
                def body(t, carry):
                    step(pl.multiple_of(t * B, B))
                    return carry

                jax.lax.fori_loop(0, T, body, 0, unroll=8)

        # ---- Fused final Linear on the last hidden state only (lane-dense,
        #      output dim padded to 128 in the wrapper).
        out_ref[...] = (jnp.dot(h_scr[...].astype(fc_w_ref.dtype),
                                fc_w_ref[...],
                                preferred_element_type=jnp.float32)
                        + fc_b_ref[...])

    return kernel


# ---------------------------------------------------------------------------
# Full model: nn.LSTM(input_dim, hidden_dim, num_layers, batch_first=True)
# followed by nn.Linear(hidden_dim, output_dim) applied to out[:, -1].
# weight_dtype=jnp.bfloat16 enables MXU-native weights (v6e/v7x) with f32
# accumulation; default f32 matches PyTorch forward numerics.
# NOTE: throughput of the serial recurrence scales ~linearly with batch up to
# the MXU row count; batch >= 8 (sublane-full) is recommended when possible.
# ---------------------------------------------------------------------------
@partial(jax.jit, static_argnames=("weight_dtype",))
def lstm_model_forward(x_btd, layer_params, fc_w, fc_b, *,
                       weight_dtype=jnp.float32):
    x_btd = x_btd.astype(jnp.float32)
    B, T, Din = x_btd.shape
    num_layers = len(layer_params)
    H = layer_params[0][1].shape[1]                           # w_hh: (4H, H)
    O = fc_w.shape[0]
    Hp = _round_up(H, 128)                                    # lane-dense hidden
    Din_p = _round_up(Din, 128)                               # lane-dense layer-0 in
    Op = _round_up(O, 128)                                    # lane-dense output

    # Time-major, flat (T*B, Din_p), zero lane-padding -- done in the wrapper
    # so the kernel never reshapes.
    x_flat = jnp.swapaxes(x_btd, 0, 1).reshape(T * B, Din)
    x_p = jnp.zeros((T * B, Din_p), jnp.float32).at[:, :Din].set(x_flat)

    packed = []
    for li, (w_ih, w_hh, b_ih, b_hh) in enumerate(layer_params):
        din_p = Din_p if li == 0 else Hp
        packed.append(_pack_gate_weight(w_ih, H, Hp, din_p, weight_dtype))
        packed.append(_pack_gate_weight(w_hh, H, Hp, Hp, weight_dtype))
        packed.append(_pack_gate_bias(b_ih + b_hh, H, Hp))    # bias stays f32

    fc_w_p = (jnp.zeros((Hp, Op), jnp.float32)
              .at[:H, :O].set(jnp.transpose(fc_w).astype(jnp.float32))
              .astype(weight_dtype))
    fc_b_p = jnp.zeros((1, Op), jnp.float32).at[0, :O].set(
        fc_b.astype(jnp.float32))

    kernel = make_model_kernel(num_layers, T, B, Hp)

    n_in = 1 + 3 * num_layers + 2
    vmem = pltpu.MemorySpace.VMEM
    in_specs = [pl.BlockSpec(memory_space=vmem) for _ in range(n_in)]

    wbytes = jnp.dtype(weight_dtype).itemsize
    in_bytes = (x_p.size * 4
                + sum(int(p.size) * p.dtype.itemsize for p in packed)
                + fc_w_p.size * wbytes + fc_b_p.size * 4)
    scratch_bytes = (T * B * 4 * Hp * 4          # xp_scr (f32)
                     + T * B * Hp * wbytes       # seq_scr
                     + 2 * B * Hp * 4)           # h/c carries
    out_bytes = B * Op * 4
    needed = in_bytes + scratch_bytes + out_bytes
    vmem_limit = int(min(max(2 * needed + (4 << 20), 32 << 20), 64 << 20))

    flops = 2 * B * Hp * Op
    for li in range(num_layers):
        din_p = Din_p if li == 0 else Hp
        flops += 2 * T * B * din_p * 4 * Hp      # hoisted input projection
        flops += 2 * T * B * Hp * 4 * Hp         # recurrent h @ W_hh
    transcendentals = num_layers * T * B * 5 * Hp
    bytes_accessed = in_bytes + out_bytes

    out_p = pl.pallas_call(
        kernel,
        out_shape=jax.ShapeDtypeStruct((B, Op), jnp.float32),
        in_specs=in_specs,
        out_specs=pl.BlockSpec(memory_space=vmem),
        scratch_shapes=[
            pltpu.VMEM((T * B, 4 * Hp), jnp.float32),   # hoisted projection
            pltpu.VMEM((T * B, Hp), weight_dtype),      # inter-layer hidden seq
            pltpu.VMEM((B, Hp), jnp.float32),           # h carry
            pltpu.VMEM((B, Hp), jnp.float32),           # c carry
        ],
        compiler_params=pltpu.CompilerParams(vmem_limit_bytes=vmem_limit),
        cost_estimate=pl.CostEstimate(flops=int(flops),
                                      transcendentals=int(transcendentals),
                                      bytes_accessed=int(bytes_accessed)),
    )(x_p, *packed, fc_w_p, fc_b_p)

    return out_p[:, :O]


# ---------------------------------------------------------------------------
# Pure-JAX reference (lax.scan) for correctness check (unpadded params).
# ---------------------------------------------------------------------------
def lstm_model_ref(x_btd, layer_params, fc_w, fc_b):
    h_seq = x_btd.astype(jnp.float32)                         # (B, T, D)
    for (w_ih, w_hh, b_ih, b_hh) in layer_params:
        B, T, _ = h_seq.shape
        H = w_hh.shape[1]

        def step(carry, x_t):
            h, c = carry
            gates = x_t @ w_ih.T + b_ih + h @ w_hh.T + b_hh
            i, f, g, o = jnp.split(gates, 4, axis=-1)
            i = jax.nn.sigmoid(i); f = jax.nn.sigmoid(f)
            g = jnp.tanh(g); o = jax.nn.sigmoid(o)
            c = f * c + i * g
            h = o * jnp.tanh(c)
            return (h, c), h

        h0 = jnp.zeros((B, H), jnp.float32)
        c0 = jnp.zeros((B, H), jnp.float32)
        (_, _), hs = jax.lax.scan(step, (h0, c0), jnp.swapaxes(h_seq, 0, 1))
        h_seq = jnp.swapaxes(hs, 0, 1)
    return h_seq[:, -1] @ fc_w.T + fc_b


# ---------------------------------------------------------------------------
# Deterministic parameter init (PyTorch-style uniform(-1/sqrt(H), 1/sqrt(H))).
# ---------------------------------------------------------------------------
def init_params(key, input_dim, hidden_dim, num_layers, output_dim):
    k = 1.0 / jnp.sqrt(hidden_dim)
    layer_params = []
    for layer in range(num_layers):
        d_in = input_dim if layer == 0 else hidden_dim
        key, k1, k2, k3, k4 = jax.random.split(key, 5)
        w_ih = jax.random.uniform(k1, (4 * hidden_dim, d_in), jnp.float32, -k, k)
        w_hh = jax.random.uniform(k2, (4 * hidden_dim, hidden_dim), jnp.float32, -k, k)
        b_ih = jax.random.uniform(k3, (4 * hidden_dim,), jnp.float32, -k, k)
        b_hh = jax.random.uniform(k4, (4 * hidden_dim,), jnp.float32, -k, k)
        layer_params.append((w_ih, w_hh, b_ih, b_hh))
    key, k5, k6 = jax.random.split(key, 3)
    fc_w = jax.random.uniform(k5, (output_dim, hidden_dim), jnp.float32, -k, k)
    fc_b = jax.random.uniform(k6, (output_dim,), jnp.float32, -k, k)
    return layer_params, fc_w, fc_b


if __name__ == "__main__":
    # Small shapes consistent with the module: x is (batch, seq, input_dim).
    B, T, INPUT_DIM, HIDDEN_DIM, NUM_LAYERS, OUTPUT_DIM = 2, 8, 16, 32, 2, 4

    key = jax.random.PRNGKey(0)
    key, kx = jax.random.split(key)
    x = jax.random.normal(kx, (B, T, INPUT_DIM), jnp.float32)

    layer_params, fc_w, fc_b = init_params(
        key, INPUT_DIM, HIDDEN_DIM, NUM_LAYERS, OUTPUT_DIM)

    ref = lstm_model_ref(x, layer_params, fc_w, fc_b)

    # f32 weights (PyTorch-parity numerics).
    out = lstm_model_forward(x, layer_params, fc_w, fc_b)
    out = jax.block_until_ready(out)
    assert out.shape == (B, OUTPUT_DIM)
    assert jnp.allclose(out, ref, atol=1e-4, rtol=1e-4), (out, ref)

    # bf16 weights / f32 accumulate (v6e/v7x MXU-native mode); looser tolerance
    # by design of the precision trade.
    out_bf16 = jax.block_until_ready(
        lstm_model_forward(x, layer_params, fc_w, fc_b,
                           weight_dtype=jnp.bfloat16))
    assert out_bf16.shape == (B, OUTPUT_DIM)
    assert jnp.allclose(out_bf16, ref, atol=5e-2, rtol=5e-2), (out_bf16, ref)

    print("KERNEL_OK")
</pallas_src>

<mosaic_0001>
module attributes {stable_mosaic.version = 11 : i64} {
  func.func @kernel(%arg0: memref<16x128xf32, #tpu.memory_space<vmem>>, %arg1: memref<128x512xf32, #tpu.memory_space<vmem>>, %arg2: memref<128x512xf32, #tpu.memory_space<vmem>>, %arg3: memref<1x512xf32, #tpu.memory_space<vmem>>, %arg4: memref<128x512xf32, #tpu.memory_space<vmem>>, %arg5: memref<128x512xf32, #tpu.memory_space<vmem>>, %arg6: memref<1x512xf32, #tpu.memory_space<vmem>>, %arg7: memref<128x128xf32, #tpu.memory_space<vmem>>, %arg8: memref<1x128xf32, #tpu.memory_space<vmem>>, %arg9: memref<2x128xf32, #tpu.memory_space<vmem>>, %arg10: memref<16x512xf32, #tpu.memory_space<vmem>>, %arg11: memref<16x128xf32, #tpu.memory_space<vmem>>, %arg12: memref<2x128xf32, #tpu.memory_space<vmem>>, %arg13: memref<2x128xf32, #tpu.memory_space<vmem>>) attributes {dimension_semantics = [], scalar_prefetch = 0 : i64, scratch_operands = 4 : i64, tpu.core_type = #tpu.core_type<tc>} {
    %c0 = arith.constant 0 : index
    %c0_0 = arith.constant 0 : index
    %0 = vector.load %arg0[%c0, %c0_0] : memref<16x128xf32, #tpu.memory_space<vmem>>, vector<16x128xf32>
    %c0_1 = arith.constant 0 : index
    %c0_2 = arith.constant 0 : index
    %1 = vector.load %arg1[%c0_1, %c0_2] : memref<128x512xf32, #tpu.memory_space<vmem>>, vector<128x512xf32>
    %cst = arith.constant dense<0.000000e+00> : vector<16x512xf32>
    %2 = tpu.matmul %0, %1, %cst {dimension_numbers = #tpu.dot_dimension_numbers<[1], [0], [0], [1], [0, 0, 1, 1], [], []>} : vector<16x128xf32>, vector<128x512xf32>, vector<16x512xf32> -> vector<16x512xf32>
    %c0_3 = arith.constant 0 : index
    %c0_4 = arith.constant 0 : index
    %3 = vector.load %arg3[%c0_3, %c0_4] : memref<1x512xf32, #tpu.memory_space<vmem>>, vector<1x512xf32>
    %4 = vector.broadcast %3 : vector<1x512xf32> to vector<16x512xf32>
    %5 = arith.addf %2, %4 : vector<16x512xf32>
    %c0_5 = arith.constant 0 : index
    %c0_6 = arith.constant 0 : index
    %6 = vector.load %arg10[%c0_5, %c0_6] : memref<16x512xf32, #tpu.memory_space<vmem>>, vector<16x512xf32>
    tpu.vector_store %arg10[%c0_5, %c0_6], %5 {strides = array<i32>} : memref<16x512xf32, #tpu.memory_space<vmem>>, vector<16x512xf32>,
    %cst_7 = arith.constant 0.000000e+00 : f32
    %7 = vector.broadcast %cst_7 : f32 to vector<2x128xf32>
    %c0_8 = arith.constant 0 : index
    %c0_9 = arith.constant 0 : index
    %8 = vector.load %arg12[%c0_8, %c0_9] : memref<2x128xf32, #tpu.memory_space<vmem>>, vector<2x128xf32>
    tpu.vector_store %arg12[%c0_8, %c0_9], %7 {strides = array<i32>} : memref<2x128xf32, #tpu.memory_space<vmem>>, vector<2x128xf32>,
    %cst_10 = arith.constant 0.000000e+00 : f32
    %9 = vector.broadcast %cst_10 : f32 to vector<2x128xf32>
    %c0_11 = arith.constant 0 : index
    %c0_12 = arith.constant 0 : index
    %10 = vector.load %arg13[%c0_11, %c0_12] : memref<2x128xf32, #tpu.memory_space<vmem>>, vector<2x128xf32>
    tpu.vector_store %arg13[%c0_11, %c0_12], %9 {strides = array<i32>} : memref<2x128xf32, #tpu.memory_space<vmem>>, vector<2x128xf32>,
    %c0_13 = arith.constant 0 : index
    %c0_14 = arith.constant 0 : index
    %11 = vector.load %arg10[%c0_13, %c0_14] : memref<16x512xf32, #tpu.memory_space<vmem>>, vector<2x512xf32>
    %c0_15 = arith.constant 0 : index
    %c0_16 = arith.constant 0 : index
    %12 = vector.load %arg12[%c0_15, %c0_16] : memref<2x128xf32, #tpu.memory_space<vmem>>, vector<2x128xf32>
    %c0_17 = arith.constant 0 : index
    %c0_18 = arith.constant 0 : index
    %13 = vector.load %arg2[%c0_17, %c0_18] : memref<128x512xf32, #tpu.memory_space<vmem>>, vector<128x512xf32>
    %cst_19 = arith.constant dense<0.000000e+00> : vector<2x512xf32>
    %14 = tpu.matmul %12, %13, %cst_19 {dimension_numbers = #tpu.dot_dimension_numbers<[1], [0], [0], [1], [0, 0, 1, 1], [], []>} : vector<2x128xf32>, vector<128x512xf32>, vector<2x512xf32> -> vector<2x512xf32>
    %15 = arith.addf %11, %14 : vector<2x512xf32>
    %16 = vector.extract_strided_slice %15 {offsets = [0, 0], sizes = [2, 128], strides = [1, 1]} : vector<2x512xf32> to vector<2x128xf32>
    %cst_20 = arith.constant 5.000000e-01 : f32
    %17 = vector.broadcast %cst_20 : f32 to vector<2x128xf32>
    %18 = arith.mulf %17, %16 : vector<2x128xf32>
    %19 = math.tanh %18 : vector<2x128xf32>
    %cst_21 = arith.constant 5.000000e-01 : f32
    %20 = vector.broadcast %cst_21 : f32 to vector<2x128xf32>
    %21 = arith.mulf %20, %19 : vector<2x128xf32>
    %cst_22 = arith.constant 5.000000e-01 : f32
    %22 = vector.broadcast %cst_22 : f32 to vector<2x128xf32>
    %23 = arith.addf %21, %22 : vector<2x128xf32>
    %24 = vector.extract_strided_slice %15 {offsets = [0, 128], sizes = [2, 128], strides = [1, 1]} : vector<2x512xf32> to vector<2x128xf32>
    %cst_23 = arith.constant 5.000000e-01 : f32
    %25 = vector.broadcast %cst_23 : f32 to vector<2x128xf32>
    %26 = arith.mulf %25, %24 : vector<2x128xf32>
    %27 = math.tanh %26 : vector<2x128xf32>
    %cst_24 = arith.constant 5.000000e-01 : f32
    %28 = vector.broadcast %cst_24 : f32 to vector<2x128xf32>
    %29 = arith.mulf %28, %27 : vector<2x128xf32>
    %cst_25 = arith.constant 5.000000e-01 : f32
    %30 = vector.broadcast %cst_25 : f32 to vector<2x128xf32>
    %31 = arith.addf %29, %30 : vector<2x128xf32>
    %32 = vector.extract_strided_slice %15 {offsets = [0, 256], sizes = [2, 128], strides = [1, 1]} : vector<2x512xf32> to vector<2x128xf32>
    %33 = math.tanh %32 : vector<2x128xf32>
    %34 = vector.extract_strided_slice %15 {offsets = [0, 384], sizes = [2, 128], strides = [1, 1]} : vector<2x512xf32> to vector<2x128xf32>
    %cst_26 = arith.constant 5.000000e-01 : f32
    %35 = vector.broadcast %cst_26 : f32 to vector<2x128xf32>
    %36 = arith.mulf %35, %34 : vector<2x128xf32>
    %37 = math.tanh %36 : vector<2x128xf32>
    %cst_27 = arith.constant 5.000000e-01 : f32
    %38 = vector.broadcast %cst_27 : f32 to vector<2x128xf32>
    %39 = arith.mulf %38, %37 : vector<2x128xf32>
    %cst_28 = arith.constant 5.000000e-01 : f32
    %40 = vector.broadcast %cst_28 : f32 to vector<2x128xf32>
    %41 = arith.addf %39, %40 : vector<2x128xf32>
    %c0_29 = arith.constant 0 : index
    %c0_30 = arith.constant 0 : index
    %42 = vector.load %arg13[%c0_29, %c0_30] : memref<2x128xf32, #tpu.memory_space<vmem>>, vector<2x128xf32>
    %43 = arith.mulf %31, %42 : vector<2x128xf32>
    %44 = arith.mulf %23, %33 : vector<2x128xf32>
    %45 = arith.addf %43, %44 : vector<2x128xf32>
    %46 = math.tanh %45 : vector<2x128xf32>
    %47 = arith.mulf %41, %46 : vector<2x128xf32>
    %c0_31 = arith.constant 0 : index
    %c0_32 = arith.constant 0 : index
    %48 = vector.load %arg13[%c0_31, %c0_32] : memref<2x128xf32, #tpu.memory_space<vmem>>, vector<2x128xf32>
    tpu.vector_store %arg13[%c0_31, %c0_32], %45 {strides = array<i32>} : memref<2x128xf32, #tpu.memory_space<vmem>>, vector<2x128xf32>,
    %c0_33 = arith.constant 0 : index
    %c0_34 = arith.constant 0 : index
    %49 = vector.load %arg12[%c0_33, %c0_34] : memref<2x128xf32, #tpu.memory_space<vmem>>, vector<2x128xf32>
    tpu.vector_store %arg12[%c0_33, %c0_34], %47 {strides = array<i32>} : memref<2x128xf32, #tpu.memory_space<vmem>>, vector<2x128xf32>,
    %c0_35 = arith.constant 0 : index
    %c0_36 = arith.constant 0 : index
    %50 = vector.load %arg11[%c0_35, %c0_36] : memref<16x128xf32, #tpu.memory_space<vmem>>, vector<2x128xf32>
    tpu.vector_store %arg11[%c0_35, %c0_36], %47 {strides = array<i32>} : memref<16x128xf32, #tpu.memory_space<vmem>>, vector<2x128xf32>,
    %c2 = arith.constant 2 : index
    %c0_37 = arith.constant 0 : index
    %51 = vector.load %arg10[%c2, %c0_37] : memref<16x512xf32, #tpu.memory_space<vmem>>, vector<2x512xf32>
    %c0_38 = arith.constant 0 : index
    %c0_39 = arith.constant 0 : index
    %52 = vector.load %arg12[%c0_38, %c0_39] : memref<2x128xf32, #tpu.memory_space<vmem>>, vector<2x128xf32>
    %c0_40 = arith.constant 0 : index
    %c0_41 = arith.constant 0 : index
    %53 = vector.load %arg2[%c0_40, %c0_41] : memref<128x512xf32, #tpu.memory_space<vmem>>, vector<128x512xf32>
    %cst_42 = arith.constant dense<0.000000e+00> : vector<2x512xf32>
    %54 = tpu.matmul %52, %53, %cst_42 {dimension_numbers = #tpu.dot_dimension_numbers<[1], [0], [0], [1], [0, 0, 1, 1], [], []>} : vector<2x128xf32>, vector<128x512xf32>, vector<2x512xf32> -> vector<2x512xf32>
    %55 = arith.addf %51, %54 : vector<2x512xf32>
    %56 = vector.extract_strided_slice %55 {offsets = [0, 0], sizes = [2, 128], strides = [1, 1]} : vector<2x512xf32> to vector<2x128xf32>
    %cst_43 = arith.constant 5.000000e-01 : f32
    %57 = vector.broadcast %cst_43 : f32 to vector<2x128xf32>
    %58 = arith.mulf %57, %56 : vector<2x128xf32>
    %59 = math.tanh %58 : vector<2x128xf32>
    %cst_44 = arith.constant 5.000000e-01 : f32
    %60 = vector.broadcast %cst_44 : f32 to vector<2x128xf32>
    %61 = arith.mulf %60, %59 : vector<2x128xf32>
    %cst_45 = arith.constant 5.000000e-01 : f32
    %62 = vector.broadcast %cst_45 : f32 to vector<2x128xf32>
    %63 = arith.addf %61, %62 : vector<2x128xf32>
    %64 = vector.extract_strided_slice %55 {offsets = [0, 128], sizes = [2, 128], strides = [1, 1]} : vector<2x512xf32> to vector<2x128xf32>
    %cst_46 = arith.constant 5.000000e-01 : f32
    %65 = vector.broadcast %cst_46 : f32 to vector<2x128xf32>
    %66 = arith.mulf %65, %64 : vector<2x128xf32>
    %67 = math.tanh %66 : vector<2x128xf32>
    %cst_47 = arith.constant 5.000000e-01 : f32
    %68 = vector.broadcast %cst_47 : f32 to vector<2x128xf32>
    %69 = arith.mulf %68, %67 : vector<2x128xf32>
    %cst_48 = arith.constant 5.000000e-01 : f32
    %70 = vector.broadcast %cst_48 : f32 to vector<2x128xf32>
    %71 = arith.addf %69, %70 : vector<2x128xf32>
    %72 = vector.extract_strided_slice %55 {offsets = [0, 256], sizes = [2, 128], strides = [1, 1]} : vector<2x512xf32> to vector<2x128xf32>
    %73 = math.tanh %72 : vector<2x128xf32>
    %74 = vector.extract_strided_slice %55 {offsets = [0, 384], sizes = [2, 128], strides = [1, 1]} : vector<2x512xf32> to vector<2x128xf32>
    %cst_49 = arith.constant 5.000000e-01 : f32
    %75 = vector.broadcast %cst_49 : f32 to vector<2x128xf32>
    %76 = arith.mulf %75, %74 : vector<2x128xf32>
    %77 = math.tanh %76 : vector<2x128xf32>
    %cst_50 = arith.constant 5.000000e-01 : f32
    %78 = vector.broadcast %cst_50 : f32 to vector<2x128xf32>
    %79 = arith.mulf %78, %77 : vector<2x128xf32>
    %cst_51 = arith.constant 5.000000e-01 : f32
    %80 = vector.broadcast %cst_51 : f32 to vector<2x128xf32>
    %81 = arith.addf %79, %80 : vector<2x128xf32>
    %c0_52 = arith.constant 0 : index
    %c0_53 = arith.constant 0 : index
    %82 = vector.load %arg13[%c0_52, %c0_53] : memref<2x128xf32, #tpu.memory_space<vmem>>, vector<2x128xf32>
    %83 = arith.mulf %71, %82 : vector<2x128xf32>
    %84 = arith.mulf %63, %73 : vector<2x128xf32>
    %85 = arith.addf %83, %84 : vector<2x128xf32>
    %86 = math.tanh %85 : vector<2x128xf32>
    %87 = arith.mulf %81, %86 : vector<2x128xf32>
    %c0_54 = arith.constant 0 : index
    %c0_55 = arith.constant 0 : index
    %88 = vector.load %arg13[%c0_54, %c0_55] : memref<2x128xf32, #tpu.memory_space<vmem>>, vector<2x128xf32>
    tpu.vector_store %arg13[%c0_54, %c0_55], %85 {strides = array<i32>} : memref<2x128xf32, #tpu.memory_space<vmem>>, vector<2x128xf32>,
    %c0_56 = arith.constant 0 : index
    %c0_57 = arith.constant 0 : index
    %89 = vector.load %arg12[%c0_56, %c0_57] : memref<2x128xf32, #tpu.memory_space<vmem>>, vector<2x128xf32>
    tpu.vector_store %arg12[%c0_56, %c0_57], %87 {strides = array<i32>} : memref<2x128xf32, #tpu.memory_space<vmem>>, vector<2x128xf32>,
    %c2_58 = arith.constant 2 : index
    %c0_59 = arith.constant 0 : index
    %90 = vector.load %arg11[%c2_58, %c0_59] : memref<16x128xf32, #tpu.memory_space<vmem>>, vector<2x128xf32>
    tpu.vector_store %arg11[%c2_58, %c0_59], %87 {strides = array<i32>} : memref<16x128xf32, #tpu.memory_space<vmem>>, vector<2x128xf32>,
    %c4 = arith.constant 4 : index
    %c0_60 = arith.constant 0 : index
    %91 = vector.load %arg10[%c4, %c0_60] : memref<16x512xf32, #tpu.memory_space<vmem>>, vector<2x512xf32>
    %c0_61 = arith.constant 0 : index
    %c0_62 = arith.constant 0 : index
    %92 = vector.load %arg12[%c0_61, %c0_62] : memref<2x128xf32, #tpu.memory_space<vmem>>, vector<2x128xf32>
    %c0_63 = arith.constant 0 : index
    %c0_64 = arith.constant 0 : index
    %93 = vector.load %arg2[%c0_63, %c0_64] : memref<128x512xf32, #tpu.memory_space<vmem>>, vector<128x512xf32>
    %cst_65 = arith.constant dense<0.000000e+00> : vector<2x512xf32>
    %94 = tpu.matmul %92, %93, %cst_65 {dimension_numbers = #tpu.dot_dimension_numbers<[1], [0], [0], [1], [0, 0, 1, 1], [], []>} : vector<2x128xf32>, vector<128x512xf32>, vector<2x512xf32> -> vector<2x512xf32>
    %95 = arith.addf %91, %94 : vector<2x512xf32>
    %96 = vector.extract_strided_slice %95 {offsets = [0, 0], sizes = [2, 128], strides = [1, 1]} : vector<2x512xf32> to vector<2x128xf32>
    %cst_66 = arith.constant 5.000000e-01 : f32
    %97 = vector.broadcast %cst_66 : f32 to vector<2x128xf32>
    %98 = arith.mulf %97, %96 : vector<2x128xf32>
    %99 = math.tanh %98 : vector<2x128xf32>
    %cst_67 = arith.constant 5.000000e-01 : f32
    %100 = vector.broadcast %cst_67 : f32 to vector<2x128xf32>
    %101 = arith.mulf %100, %99 : vector<2x128xf32>
    %cst_68 = arith.constant 5.000000e-01 : f32
    %102 = vector.broadcast %cst_68 : f32 to vector<2x128xf32>
    %103 = arith.addf %101, %102 : vector<2x128xf32>
    %104 = vector.extract_strided_slice %95 {offsets = [0, 128], sizes = [2, 128], strides = [1, 1]} : vector<2x512xf32> to vector<2x128xf32>
    %cst_69 = arith.constant 5.000000e-01 : f32
    %105 = vector.broadcast %cst_69 : f32 to vector<2x128xf32>
    %106 = arith.mulf %105, %104 : vector<2x128xf32>
    %107 = math.tanh %106 : vector<2x128xf32>
    %cst_70 = arith.constant 5.000000e-01 : f32
    %108 = vector.broadcast %cst_70 : f32 to vector<2x128xf32>
    %109 = arith.mulf %108, %107 : vector<2x128xf32>
    %cst_71 = arith.constant 5.000000e-01 : f32
    %110 = vector.broadcast %cst_71 : f32 to vector<2x128xf32>
    %111 = arith.addf %109, %110 : vector<2x128xf32>
    %112 = vector.extract_strided_slice %95 {offsets = [0, 256], sizes = [2, 128], strides = [1, 1]} : vector<2x512xf32> to vector<2x128xf32>
    %113 = math.tanh %112 : vector<2x128xf32>
    %114 = vector.extract_strided_slice %95 {offsets = [0, 384], sizes = [2, 128], strides = [1, 1]} : vector<2x512xf32> to vector<2x128xf32>
    %cst_72 = arith.constant 5.000000e-01 : f32
    %115 = vector.broadcast %cst_72 : f32 to vector<2x128xf32>
    %116 = arith.mulf %115, %114 : vector<2x128xf32>
    %117 = math.tanh %116 : vector<2x128xf32>
    %cst_73 = arith.constant 5.000000e-01 : f32
    %118 = vector.broadcast %cst_73 : f32 to vector<2x128xf32>
    %119 = arith.mulf %118, %117 : vector<2x128xf32>
    %cst_74 = arith.constant 5.000000e-01 : f32
    %120 = vector.broadcast %cst_74 : f32 to vector<2x128xf32>
    %121 = arith.addf %119, %120 : vector<2x128xf32>
    %c0_75 = arith.constant 0 : index
    %c0_76 = arith.constant 0 : index
    %122 = vector.load %arg13[%c0_75, %c0_76] : memref<2x128xf32, #tpu.memory_space<vmem>>, vector<2x128xf32>
    %123 = arith.mulf %111, %122 : vector<2x128xf32>
    %124 = arith.mulf %103, %113 : vector<2x128xf32>
    %125 = arith.addf %123, %124 : vector<2x128xf32>
    %126 = math.tanh %125 : vector<2x128xf32>
    %127 = arith.mulf %121, %126 : vector<2x128xf32>
    %c0_77 = arith.constant 0 : index
    %c0_78 = arith.constant 0 : index
    %128 = vector.load %arg13[%c0_77, %c0_78] : memref<2x128xf32, #tpu.memory_space<vmem>>, vector<2x128xf32>
    tpu.vector_store %arg13[%c0_77, %c0_78], %125 {strides = array<i32>} : memref<2x128xf32, #tpu.memory_space<vmem>>, vector<2x128xf32>,
    %c0_79 = arith.constant 0 : index
    %c0_80 = arith.constant 0 : index
    %129 = vector.load %arg12[%c0_79, %c0_80] : memref<2x128xf32, #tpu.memory_space<vmem>>, vector<2x128xf32>
    tpu.vector_store %arg12[%c0_79, %c0_80], %127 {strides = array<i32>} : memref<2x128xf32, #tpu.memory_space<vmem>>, vector<2x128xf32>,
    %c4_81 = arith.constant 4 : index
    %c0_82 = arith.constant 0 : index
    %130 = vector.load %arg11[%c4_81, %c0_82] : memref<16x128xf32, #tpu.memory_space<vmem>>, vector<2x128xf32>
    tpu.vector_store %arg11[%c4_81, %c0_82], %127 {strides = array<i32>} : memref<16x128xf32, #tpu.memory_space<vmem>>, vector<2x128xf32>,
    %c6 = arith.constant 6 : index
    %c0_83 = arith.constant 0 : index
    %131 = vector.load %arg10[%c6, %c0_83] : memref<16x512xf32, #tpu.memory_space<vmem>>, vector<2x512xf32>
    %c0_84 = arith.constant 0 : index
    %c0_85 = arith.constant 0 : index
    %132 = vector.load %arg12[%c0_84, %c0_85] : memref<2x128xf32, #tpu.memory_space<vmem>>, vector<2x128xf32>
    %c0_86 = arith.constant 0 : index
    %c0_87 = arith.constant 0 : index
    %133 = vector.load %arg2[%c0_86, %c0_87] : memref<128x512xf32, #tpu.memory_space<vmem>>, vector<128x512xf32>
    %cst_88 = arith.constant dense<0.000000e+00> : vector<2x512xf32>
    %134 = tpu.matmul %132, %133, %cst_88 {dimension_numbers = #tpu.dot_dimension_numbers<[1], [0], [0], [1], [0, 0, 1, 1], [], []>} : vector<2x128xf32>, vector<128x512xf32>, vector<2x512xf32> -> vector<2x512xf32>
    %135 = arith.addf %131, %134 : vector<2x512xf32>
    %136 = vector.extract_strided_slice %135 {offsets = [0, 0], sizes = [2, 128], strides = [1, 1]} : vector<2x512xf32> to vector<2x128xf32>
    %cst_89 = arith.constant 5.000000e-01 : f32
    %137 = vector.broadcast %cst_89 : f32 to vector<2x128xf32>
    %138 = arith.mulf %137, %136 : vector<2x128xf32>
    %139 = math.tanh %138 : vector<2x128xf32>
    %cst_90 = arith.constant 5.000000e-01 : f32
    %140 = vector.broadcast %cst_90 : f32 to vector<2x128xf32>
    %141 = arith.mulf %140, %139 : vector<2x128xf32>
    %cst_91 = arith.constant 5.000000e-01 : f32
    %142 = vector.broadcast %cst_91 : f32 to vector<2x128xf32>
    %143 = arith.addf %141, %142 : vector<2x128xf32>
    %144 = vector.extract_strided_slice %135 {offsets = [0, 128], sizes = [2, 128], strides = [1, 1]} : vector<2x512xf32> to vector<2x128xf32>
    %cst_92 = arith.constant 5.000000e-01 : f32
    %145 = vector.broadcast %cst_92 : f32 to vector<2x128xf32>
    %146 = arith.mulf %145, %144 : vector<2x128xf32>
    %147 = math.tanh %146 : vector<2x128xf32>
    %cst_93 = arith.constant 5.000000e-01 : f32
    %148 = vector.broadcast %cst_93 : f32 to vector<2x128xf32>
    %149 = arith.mulf %148, %147 : vector<2x128xf32>
    %cst_94 = arith.constant 5.000000e-01 : f32
    %150 = vector.broadcast %cst_94 : f32 to vector<2x128xf32>
    %151 = arith.addf %149, %150 : vector<2x128xf32>
    %152 = vector.extract_strided_slice %135 {offsets = [0, 256], sizes = [2, 128], strides = [1, 1]} : vector<2x512xf32> to vector<2x128xf32>
    %153 = math.tanh %152 : vector<2x128xf32>
    %154 = vector.extract_strided_slice %135 {offsets = [0, 384], sizes = [2, 128], strides = [1, 1]} : vector<2x512xf32> to vector<2x128xf32>
    %cst_95 = arith.constant 5.000000e-01 : f32
    %155 = vector.broadcast %cst_95 : f32 to vector<2x128xf32>
    %156 = arith.mulf %155, %154 : vector<2x128xf32>
    %157 = math.tanh %156 : vector<2x128xf32>
    %cst_96 = arith.constant 5.000000e-01 : f32
    %158 = vector.broadcast %cst_96 : f32 to vector<2x128xf32>
    %159 = arith.mulf %158, %157 : vector<2x128xf32>
    %cst_97 = arith.constant 5.000000e-01 : f32
    %160 = vector.broadcast %cst_97 : f32 to vector<2x128xf32>
    %161 = arith.addf %159, %160 : vector<2x128xf32>
    %c0_98 = arith.constant 0 : index
    %c0_99 = arith.constant 0 : index
    %162 = vector.load %arg13[%c0_98, %c0_99] : memref<2x128xf32, #tpu.memory_space<vmem>>, vector<2x128xf32>
    %163 = arith.mulf %151, %162 : vector<2x128xf32>
    %164 = arith.mulf %143, %153 : vector<2x128xf32>
    %165 = arith.addf %163, %164 : vector<2x128xf32>
    %166 = math.tanh %165 : vector<2x128xf32>
    %167 = arith.mulf %161, %166 : vector<2x128xf32>
    %c0_100 = arith.constant 0 : index
    %c0_101 = arith.constant 0 : index
    %168 = vector.load %arg13[%c0_100, %c0_101] : memref<2x128xf32, #tpu.memory_space<vmem>>, vector<2x128xf32>
    tpu.vector_store %arg13[%c0_100, %c0_101], %165 {strides = array<i32>} : memref<2x128xf32, #tpu.memory_space<vmem>>, vector<2x128xf32>,
    %c0_102 = arith.constant 0 : index
    %c0_103 = arith.constant 0 : index
    %169 = vector.load %arg12[%c0_102, %c0_103] : memref<2x128xf32, #tpu.memory_space<vmem>>, vector<2x128xf32>
    tpu.vector_store %arg12[%c0_102, %c0_103], %167 {strides = array<i32>} : memref<2x128xf32, #tpu.memory_space<vmem>>, vector<2x128xf32>,
    %c6_104 = arith.constant 6 : index
    %c0_105 = arith.constant 0 : index
    %170 = vector.load %arg11[%c6_104, %c0_105] : memref<16x128xf32, #tpu.memory_space<vmem>>, vector<2x128xf32>
    tpu.vector_store %arg11[%c6_104, %c0_105], %167 {strides = array<i32>} : memref<16x128xf32, #tpu.memory_space<vmem>>, vector<2x128xf32>,
    %c8 = arith.constant 8 : index
    %c0_106 = arith.constant 0 : index
    %171 = vector.load %arg10[%c8, %c0_106] : memref<16x512xf32, #tpu.memory_space<vmem>>, vector<2x512xf32>
    %c0_107 = arith.constant 0 : index
    %c0_108 = arith.constant 0 : index
    %172 = vector.load %arg12[%c0_107, %c0_108] : memref<2x128xf32, #tpu.memory_space<vmem>>, vector<2x128xf32>
    %c0_109 = arith.constant 0 : index
    %c0_110 = arith.constant 0 : index
    %173 = vector.load %arg2[%c0_109, %c0_110] : memref<128x512xf32, #tpu.memory_space<vmem>>, vector<128x512xf32>
    %cst_111 = arith.constant dense<0.000000e+00> : vector<2x512xf32>
    %174 = tpu.matmul %172, %173, %cst_111 {dimension_numbers = #tpu.dot_dimension_numbers<[1], [0], [0], [1], [0, 0, 1, 1], [], []>} : vector<2x128xf32>, vector<128x512xf32>, vector<2x512xf32> -> vector<2x512xf32>
    %175 = arith.addf %171, %174 : vector<2x512xf32>
    %176 = vector.extract_strided_slice %175 {offsets = [0, 0], sizes = [2, 128], strides = [1, 1]} : vector<2x512xf32> to vector<2x128xf32>
    %cst_112 = arith.constant 5.000000e-01 : f32
    %177 = vector.broadcast %cst_112 : f32 to vector<2x128xf32>
    %178 = arith.mulf %177, %176 : vector<2x128xf32>
    %179 = math.tanh %178 : vector<2x128xf32>
    %cst_113 = arith.constant 5.000000e-01 : f32
    %180 = vector.broadcast %cst_113 : f32 to vector<2x128xf32>
    %181 = arith.mulf %180, %179 : vector<2x128xf32>
    %cst_114 = arith.constant 5.000000e-01 : f32
    %182 = vector.broadcast %cst_114 : f32 to vector<2x128xf32>
    %183 = arith.addf %181, %182 : vector<2x128xf32>
    %184 = vector.extract_strided_slice %175 {offsets = [0, 128], sizes = [2, 128], strides = [1, 1]} : vector<2x512xf32> to vector<2x128xf32>
    %cst_115 = arith.constant 5.000000e-01 : f32
    %185 = vector.broadcast %cst_115 : f32 to vector<2x128xf32>
    %186 = arith.mulf %185, %184 : vector<2x128xf32>
    %187 = math.tanh %186 : vector<2x128xf32>
    %cst_116 = arith.constant 5.000000e-01 : f32
    %188 = vector.broadcast %cst_116 : f32 to vector<2x128xf32>
    %189 = arith.mulf %188, %187 : vector<2x128xf32>
    %cst_117 = arith.constant 5.000000e-01 : f32
    %190 = vector.broadcast %cst_117 : f32 to vector<2x128xf32>
    %191 = arith.addf %189, %190 : vector<2x128xf32>
    %192 = vector.extract_strided_slice %175 {offsets = [0, 256], sizes = [2, 128], strides = [1, 1]} : vector<2x512xf32> to vector<2x128xf32>
    %193 = math.tanh %192 : vector<2x128xf32>
    %194 = vector.extract_strided_slice %175 {offsets = [0, 384], sizes = [2, 128], strides = [1, 1]} : vector<2x512xf32> to vector<2x128xf32>
    %cst_118 = arith.constant 5.000000e-01 : f32
    %195 = vector.broadcast %cst_118 : f32 to vector<2x128xf32>
    %196 = arith.mulf %195, %194 : vector<2x128xf32>
    %197 = math.tanh %196 : vector<2x128xf32>
    %cst_119 = arith.constant 5.000000e-01 : f32
    %198 = vector.broadcast %cst_119 : f32 to vector<2x128xf32>
    %199 = arith.mulf %198, %197 : vector<2x128xf32>
    %cst_120 = arith.constant 5.000000e-01 : f32
    %200 = vector.broadcast %cst_120 : f32 to vector<2x128xf32>
    %201 = arith.addf %199, %200 : vector<2x128xf32>
    %c0_121 = arith.constant 0 : index
    %c0_122 = arith.constant 0 : index
    %202 = vector.load %arg13[%c0_121, %c0_122] : memref<2x128xf32, #tpu.memory_space<vmem>>, vector<2x128xf32>
    %203 = arith.mulf %191, %202 : vector<2x128xf32>
    %204 = arith.mulf %183, %193 : vector<2x128xf32>
    %205 = arith.addf %203, %204 : vector<2x128xf32>
    %206 = math.tanh %205 : vector<2x128xf32>
    %207 = arith.mulf %201, %206 : vector<2x128xf32>
    %c0_123 = arith.constant 0 : index
    %c0_124 = arith.constant 0 : index
    %208 = vector.load %arg13[%c0_123, %c0_124] : memref<2x128xf32, #tpu.memory_space<vmem>>, vector<2x128xf32>
    tpu.vector_store %arg13[%c0_123, %c0_124], %205 {strides = array<i32>} : memref<2x128xf32, #tpu.memory_space<vmem>>, vector<2x128xf32>,
    %c0_125 = arith.constant 0 : index
    %c0_126 = arith.constant 0 : index
    %209 = vector.load %arg12[%c0_125, %c0_126] : memref<2x128xf32, #tpu.memory_space<vmem>>, vector<2x128xf32>
    tpu.vector_store %arg12[%c0_125, %c0_126], %207 {strides = array<i32>} : memref<2x128xf32, #tpu.memory_space<vmem>>, vector<2x128xf32>,
    %c8_127 = arith.constant 8 : index
    %c0_128 = arith.constant 0 : index
    %210 = vector.load %arg11[%c8_127, %c0_128] : memref<16x128xf32, #tpu.memory_space<vmem>>, vector<2x128xf32>
    tpu.vector_store %arg11[%c8_127, %c0_128], %207 {strides = array<i32>} : memref<16x128xf32, #tpu.memory_space<vmem>>, vector<2x128xf32>,
    %c10 = arith.constant 10 : index
    %c0_129 = arith.constant 0 : index
    %211 = vector.load %arg10[%c10, %c0_129] : memref<16x512xf32, #tpu.memory_space<vmem>>, vector<2x512xf32>
    %c0_130 = arith.constant 0 : index
    %c0_131 = arith.constant 0 : index
    %212 = vector.load %arg12[%c0_130, %c0_131] : memref<2x128xf32, #tpu.memory_space<vmem>>, vector<2x128xf32>
    %c0_132 = arith.constant 0 : index
    %c0_133 = arith.constant 0 : index
    %213 = vector.load %arg2[%c0_132, %c0_133] : memref<128x512xf32, #tpu.memory_space<vmem>>, vector<128x512xf32>
    %cst_134 = arith.constant dense<0.000000e+00> : vector<2x512xf32>
    %214 = tpu.matmul %212, %213, %cst_134 {dimension_numbers = #tpu.dot_dimension_numbers<[1], [0], [0], [1], [0, 0, 1, 1], [], []>} : vector<2x128xf32>, vector<128x512xf32>, vector<2x512xf32> -> vector<2x512xf32>
    %215 = arith.addf %211, %214 : vector<2x512xf32>
    %216 = vector.extract_strided_slice %215 {offsets = [0, 0], sizes = [2, 128], strides = [1, 1]} : vector<2x512xf32> to vector<2x128xf32>
    %cst_135 = arith.constant 5.000000e-01 : f32
    %217 = vector.broadcast %cst_135 : f32 to vector<2x128xf32>
    %218 = arith.mulf %217, %216 : vector<2x128xf32>
    %219 = math.tanh %218 : vector<2x128xf32>
    %cst_136 = arith.constant 5.000000e-01 : f32
    %220 = vector.broadcast %cst_136 : f32 to vector<2x128xf32>
    %221 = arith.mulf %220, %219 : vector<2x128xf32>
    %cst_137 = arith.constant 5.000000e-01 : f32
    %222 = vector.broadcast %cst_137 : f32 to vector<2x128xf32>
    %223 = arith.addf %221, %222 : vector<2x128xf32>
    %224 = vector.extract_strided_slice %215 {offsets = [0, 128], sizes = [2, 128], strides = [1, 1]} : vector<2x512xf32> to vector<2x128xf32>
    %cst_138 = arith.constant 5.000000e-01 : f32
    %225 = vector.broadcast %cst_138 : f32 to vector<2x128xf32>
    %226 = arith.mulf %225, %224 : vector<2x128xf32>
    %227 = math.tanh %226 : vector<2x128xf32>
    %cst_139 = arith.constant 5.000000e-01 : f32
    %228 = vector.broadcast %cst_139 : f32 to vector<2x128xf32>
    %229 = arith.mulf %228, %227 : vector<2x128xf32>
    %cst_140 = arith.constant 5.000000e-01 : f32
    %230 = vector.broadcast %cst_140 : f32 to vector<2x128xf32>
    %231 = arith.addf %229, %230 : vector<2x128xf32>
    %232 = vector.extract_strided_slice %215 {offsets = [0, 256], sizes = [2, 128], strides = [1, 1]} : vector<2x512xf32> to vector<2x128xf32>
    %233 = math.tanh %232 : vector<2x128xf32>
    %234 = vector.extract_strided_slice %215 {offsets = [0, 384], sizes = [2, 128], strides = [1, 1]} : vector<2x512xf32> to vector<2x128xf32>
    %cst_141 = arith.constant 5.000000e-01 : f32
    %235 = vector.broadcast %cst_141 : f32 to vector<2x128xf32>
    %236 = arith.mulf %235, %234 : vector<2x128xf32>
    %237 = math.tanh %236 : vector<2x128xf32>
    %cst_142 = arith.constant 5.000000e-01 : f32
    %238 = vector.broadcast %cst_142 : f32 to vector<2x128xf32>
    %239 = arith.mulf %238, %237 : vector<2x128xf32>
    %cst_143 = arith.constant 5.000000e-01 : f32
    %240 = vector.broadcast %cst_143 : f32 to vector<2x128xf32>
    %241 = arith.addf %239, %240 : vector<2x128xf32>
    %c0_144 = arith.constant 0 : index
    %c0_145 = arith.constant 0 : index
    %242 = vector.load %arg13[%c0_144, %c0_145] : memref<2x128xf32, #tpu.memory_space<vmem>>, vector<2x128xf32>
    %243 = arith.mulf %231, %242 : vector<2x128xf32>
    %244 = arith.mulf %223, %233 : vector<2x128xf32>
    %245 = arith.addf %243, %244 : vector<2x128xf32>
    %246 = math.tanh %245 : vector<2x128xf32>
    %247 = arith.mulf %241, %246 : vector<2x128xf32>
    %c0_146 = arith.constant 0 : index
    %c0_147 = arith.constant 0 : index
    %248 = vector.load %arg13[%c0_146, %c0_147] : memref<2x128xf32, #tpu.memory_space<vmem>>, vector<2x128xf32>
    tpu.vector_store %arg13[%c0_146, %c0_147], %245 {strides = array<i32>} : memref<2x128xf32, #tpu.memory_space<vmem>>, vector<2x128xf32>,
    %c0_148 = arith.constant 0 : index
    %c0_149 = arith.constant 0 : index
    %249 = vector.load %arg12[%c0_148, %c0_149] : memref<2x128xf32, #tpu.memory_space<vmem>>, vector<2x128xf32>
    tpu.vector_store %arg12[%c0_148, %c0_149], %247 {strides = array<i32>} : memref<2x128xf32, #tpu.memory_space<vmem>>, vector<2x128xf32>,
    %c10_150 = arith.constant 10 : index
    %c0_151 = arith.constant 0 : index
    %250 = vector.load %arg11[%c10_150, %c0_151] : memref<16x128xf32, #tpu.memory_space<vmem>>, vector<2x128xf32>
    tpu.vector_store %arg11[%c10_150, %c0_151], %247 {strides = array<i32>} : memref<16x128xf32, #tpu.memory_space<vmem>>, vector<2x128xf32>,
    %c12 = arith.constant 12 : index
    %c0_152 = arith.constant 0 : index
    %251 = vector.load %arg10[%c12, %c0_152] : memref<16x512xf32, #tpu.memory_space<vmem>>, vector<2x512xf32>
    %c0_153 = arith.constant 0 : index
    %c0_154 = arith.constant 0 : index
    %252 = vector.load %arg12[%c0_153, %c0_154] : memref<2x128xf32, #tpu.memory_space<vmem>>, vector<2x128xf32>
    %c0_155 = arith.constant 0 : index
    %c0_156 = arith.constant 0 : index
    %253 = vector.load %arg2[%c0_155, %c0_156] : memref<128x512xf32, #tpu.memory_space<vmem>>, vector<128x512xf32>
    %cst_157 = arith.constant dense<0.000000e+00> : vector<2x512xf32>
    %254 = tpu.matmul %252, %253, %cst_157 {dimension_numbers = #tpu.dot_dimension_numbers<[1], [0], [0], [1], [0, 0, 1, 1], [], []>} : vector<2x128xf32>, vector<128x512xf32>, vector<2x512xf32> -> vector<2x512xf32>
    %255 = arith.addf %251, %254 : vector<2x512xf32>
    %256 = vector.extract_strided_slice %255 {offsets = [0, 0], sizes = [2, 128], strides = [1, 1]} : vector<2x512xf32> to vector<2x128xf32>
    %cst_158 = arith.constant 5.000000e-01 : f32
    %257 = vector.broadcast %cst_158 : f32 to vector<2x128xf32>
    %258 = arith.mulf %257, %256 : vector<2x128xf32>
    %259 = math.tanh %258 : vector<2x128xf32>
    %cst_159 = arith.constant 5.000000e-01 : f32
    %260 = vector.broadcast %cst_159 : f32 to vector<2x128xf32>
    %261 = arith.mulf %260, %259 : vector<2x128xf32>
    %cst_160 = arith.constant 5.000000e-01 : f32
    %262 = vector.broadcast %cst_160 : f32 to vector<2x128xf32>
    %263 = arith.addf %261, %262 : vector<2x128xf32>
    %264 = vector.extract_strided_slice %255 {offsets = [0, 128], sizes = [2, 128], strides = [1, 1]} : vector<2x512xf32> to vector<2x128xf32>
    %cst_161 = arith.constant 5.000000e-01 : f32
    %265 = vector.broadcast %cst_161 : f32 to vector<2x128xf32>
    %266 = arith.mulf %265, %264 : vector<2x128xf32>
    %267 = math.tanh %266 : vector<2x128xf32>
    %cst_162 = arith.constant 5.000000e-01 : f32
    %268 = vector.broadcast %cst_162 : f32 to vector<2x128xf32>
    %269 = arith.mulf %268, %267 : vector<2x128xf32>
    %cst_163 = arith.constant 5.000000e-01 : f32
    %270 = vector.broadcast %cst_163 : f32 to vector<2x128xf32>
    %271 = arith.addf %269, %270 : vector<2x128xf32>
    %272 = vector.extract_strided_slice %255 {offsets = [0, 256], sizes = [2, 128], strides = [1, 1]} : vector<2x512xf32> to vector<2x128xf32>
    %273 = math.tanh %272 : vector<2x128xf32>
    %274 = vector.extract_strided_slice %255 {offsets = [0, 384], sizes = [2, 128], strides = [1, 1]} : vector<2x512xf32> to vector<2x128xf32>
    %cst_164 = arith.constant 5.000000e-01 : f32
    %275 = vector.broadcast %cst_164 : f32 to vector<2x128xf32>
    %276 = arith.mulf %275, %274 : vector<2x128xf32>
    %277 = math.tanh %276 : vector<2x128xf32>
    %cst_165 = arith.constant 5.000000e-01 : f32
    %278 = vector.broadcast %cst_165 : f32 to vector<2x128xf32>
    %279 = arith.mulf %278, %277 : vector<2x128xf32>
    %cst_166 = arith.constant 5.000000e-01 : f32
    %280 = vector.broadcast %cst_166 : f32 to vector<2x128xf32>
    %281 = arith.addf %279, %280 : vector<2x128xf32>
    %c0_167 = arith.constant 0 : index
    %c0_168 = arith.constant 0 : index
    %282 = vector.load %arg13[%c0_167, %c0_168] : memref<2x128xf32, #tpu.memory_space<vmem>>, vector<2x128xf32>
    %283 = arith.mulf %271, %282 : vector<2x128xf32>
    %284 = arith.mulf %263, %273 : vector<2x128xf32>
    %285 = arith.addf %283, %284 : vector<2x128xf32>
    %286 = math.tanh %285 : vector<2x128xf32>
    %287 = arith.mulf %281, %286 : vector<2x128xf32>
    %c0_169 = arith.constant 0 : index
    %c0_170 = arith.constant 0 : index
    %288 = vector.load %arg13[%c0_169, %c0_170] : memref<2x128xf32, #tpu.memory_space<vmem>>, vector<2x128xf32>
    tpu.vector_store %arg13[%c0_169, %c0_170], %285 {strides = array<i32>} : memref<2x128xf32, #tpu.memory_space<vmem>>, vector<2x128xf32>,
    %c0_171 = arith.constant 0 : index
    %c0_172 = arith.constant 0 : index
    %289 = vector.load %arg12[%c0_171, %c0_172] : memref<2x128xf32, #tpu.memory_space<vmem>>, vector<2x128xf32>
    tpu.vector_store %arg12[%c0_171, %c0_172], %287 {strides = array<i32>} : memref<2x128xf32, #tpu.memory_space<vmem>>, vector<2x128xf32>,
    %c12_173 = arith.constant 12 : index
    %c0_174 = arith.constant 0 : index
    %290 = vector.load %arg11[%c12_173, %c0_174] : memref<16x128xf32, #tpu.memory_space<vmem>>, vector<2x128xf32>
    tpu.vector_store %arg11[%c12_173, %c0_174], %287 {strides = array<i32>} : memref<16x128xf32, #tpu.memory_space<vmem>>, vector<2x128xf32>,
    %c14 = arith.constant 14 : index
    %c0_175 = arith.constant 0 : index
    %291 = vector.load %arg10[%c14, %c0_175] : memref<16x512xf32, #tpu.memory_space<vmem>>, vector<2x512xf32>
    %c0_176 = arith.constant 0 : index
    %c0_177 = arith.constant 0 : index
    %292 = vector.load %arg12[%c0_176, %c0_177] : memref<2x128xf32, #tpu.memory_space<vmem>>, vector<2x128xf32>
    %c0_178 = arith.constant 0 : index
    %c0_179 = arith.constant 0 : index
    %293 = vector.load %arg2[%c0_178, %c0_179] : memref<128x512xf32, #tpu.memory_space<vmem>>, vector<128x512xf32>
    %cst_180 = arith.constant dense<0.000000e+00> : vector<2x512xf32>
    %294 = tpu.matmul %292, %293, %cst_180 {dimension_numbers = #tpu.dot_dimension_numbers<[1], [0], [0], [1], [0, 0, 1, 1], [], []>} : vector<2x128xf32>, vector<128x512xf32>, vector<2x512xf32> -> vector<2x512xf32>
    %295 = arith.addf %291, %294 : vector<2x512xf32>
    %296 = vector.extract_strided_slice %295 {offsets = [0, 0], sizes = [2, 128], strides = [1, 1]} : vector<2x512xf32> to vector<2x128xf32>
    %cst_181 = arith.constant 5.000000e-01 : f32
    %297 = vector.broadcast %cst_181 : f32 to vector<2x128xf32>
    %298 = arith.mulf %297, %296 : vector<2x128xf32>
    %299 = math.tanh %298 : vector<2x128xf32>
    %cst_182 = arith.constant 5.000000e-01 : f32
    %300 = vector.broadcast %cst_182 : f32 to vector<2x128xf32>
    %301 = arith.mulf %300, %299 : vector<2x128xf32>
    %cst_183 = arith.constant 5.000000e-01 : f32
    %302 = vector.broadcast %cst_183 : f32 to vector<2x128xf32>
    %303 = arith.addf %301, %302 : vector<2x128xf32>
    %304 = vector.extract_strided_slice %295 {offsets = [0, 128], sizes = [2, 128], strides = [1, 1]} : vector<2x512xf32> to vector<2x128xf32>
    %cst_184 = arith.constant 5.000000e-01 : f32
    %305 = vector.broadcast %cst_184 : f32 to vector<2x128xf32>
    %306 = arith.mulf %305, %304 : vector<2x128xf32>
    %307 = math.tanh %306 : vector<2x128xf32>
    %cst_185 = arith.constant 5.000000e-01 : f32
    %308 = vector.broadcast %cst_185 : f32 to vector<2x128xf32>
    %309 = arith.mulf %308, %307 : vector<2x128xf32>
    %cst_186 = arith.constant 5.000000e-01 : f32
    %310 = vector.broadcast %cst_186 : f32 to vector<2x128xf32>
    %311 = arith.addf %309, %310 : vector<2x128xf32>
    %312 = vector.extract_strided_slice %295 {offsets = [0, 256], sizes = [2, 128], strides = [1, 1]} : vector<2x512xf32> to vector<2x128xf32>
    %313 = math.tanh %312 : vector<2x128xf32>
    %314 = vector.extract_strided_slice %295 {offsets = [0, 384], sizes = [2, 128], strides = [1, 1]} : vector<2x512xf32> to vector<2x128xf32>
    %cst_187 = arith.constant 5.000000e-01 : f32
    %315 = vector.broadcast %cst_187 : f32 to vector<2x128xf32>
    %316 = arith.mulf %315, %314 : vector<2x128xf32>
    %317 = math.tanh %316 : vector<2x128xf32>
    %cst_188 = arith.constant 5.000000e-01 : f32
    %318 = vector.broadcast %cst_188 : f32 to vector<2x128xf32>
    %319 = arith.mulf %318, %317 : vector<2x128xf32>
    %cst_189 = arith.constant 5.000000e-01 : f32
    %320 = vector.broadcast %cst_189 : f32 to vector<2x128xf32>
    %321 = arith.addf %319, %320 : vector<2x128xf32>
    %c0_190 = arith.constant 0 : index
    %c0_191 = arith.constant 0 : index
    %322 = vector.load %arg13[%c0_190, %c0_191] : memref<2x128xf32, #tpu.memory_space<vmem>>, vector<2x128xf32>
    %323 = arith.mulf %311, %322 : vector<2x128xf32>
    %324 = arith.mulf %303, %313 : vector<2x128xf32>
    %325 = arith.addf %323, %324 : vector<2x128xf32>
    %326 = math.tanh %325 : vector<2x128xf32>
    %327 = arith.mulf %321, %326 : vector<2x128xf32>
    %c0_192 = arith.constant 0 : index
    %c0_193 = arith.constant 0 : index
    %328 = vector.load %arg13[%c0_192, %c0_193] : memref<2x128xf32, #tpu.memory_space<vmem>>, vector<2x128xf32>
    tpu.vector_store %arg13[%c0_192, %c0_193], %325 {strides = array<i32>} : memref<2x128xf32, #tpu.memory_space<vmem>>, vector<2x128xf32>,
    %c0_194 = arith.constant 0 : index
    %c0_195 = arith.constant 0 : index
    %329 = vector.load %arg12[%c0_194, %c0_195] : memref<2x128xf32, #tpu.memory_space<vmem>>, vector<2x128xf32>
    tpu.vector_store %arg12[%c0_194, %c0_195], %327 {strides = array<i32>} : memref<2x128xf32, #tpu.memory_space<vmem>>, vector<2x128xf32>,
    %c14_196 = arith.constant 14 : index
    %c0_197 = arith.constant 0 : index
    %330 = vector.load %arg11[%c14_196, %c0_197] : memref<16x128xf32, #tpu.memory_space<vmem>>, vector<2x128xf32>
    tpu.vector_store %arg11[%c14_196, %c0_197], %327 {strides = array<i32>} : memref<16x128xf32, #tpu.memory_space<vmem>>, vector<2x128xf32>,
    %c0_198 = arith.constant 0 : index
    %c0_199 = arith.constant 0 : index
    %331 = vector.load %arg11[%c0_198, %c0_199] : memref<16x128xf32, #tpu.memory_space<vmem>>, vector<16x128xf32>
    %c0_200 = arith.constant 0 : index
    %c0_201 = arith.constant 0 : index
    %332 = vector.load %arg4[%c0_200, %c0_201] : memref<128x512xf32, #tpu.memory_space<vmem>>, vector<128x512xf32>
    %cst_202 = arith.constant dense<0.000000e+00> : vector<16x512xf32>
    %333 = tpu.matmul %331, %332, %cst_202 {dimension_numbers = #tpu.dot_dimension_numbers<[1], [0], [0], [1], [0, 0, 1, 1], [], []>} : vector<16x128xf32>, vector<128x512xf32>, vector<16x512xf32> -> vector<16x512xf32>
    %c0_203 = arith.constant 0 : index
    %c0_204 = arith.constant 0 : index
    %334 = vector.load %arg6[%c0_203, %c0_204] : memref<1x512xf32, #tpu.memory_space<vmem>>, vector<1x512xf32>
    %335 = vector.broadcast %334 : vector<1x512xf32> to vector<16x512xf32>
    %336 = arith.addf %333, %335 : vector<16x512xf32>
    %c0_205 = arith.constant 0 : index
    %c0_206 = arith.constant 0 : index
    %337 = vector.load %arg10[%c0_205, %c0_206] : memref<16x512xf32, #tpu.memory_space<vmem>>, vector<16x512xf32>
    tpu.vector_store %arg10[%c0_205, %c0_206], %336 {strides = array<i32>} : memref<16x512xf32, #tpu.memory_space<vmem>>, vector<16x512xf32>,
    %cst_207 = arith.constant 0.000000e+00 : f32
    %338 = vector.broadcast %cst_207 : f32 to vector<2x128xf32>
    %c0_208 = arith.constant 0 : index
    %c0_209 = arith.constant 0 : index
    %339 = vector.load %arg12[%c0_208, %c0_209] : memref<2x128xf32, #tpu.memory_space<vmem>>, vector<2x128xf32>
    tpu.vector_store %arg12[%c0_208, %c0_209], %338 {strides = array<i32>} : memref<2x128xf32, #tpu.memory_space<vmem>>, vector<2x128xf32>,
    %cst_210 = arith.constant 0.000000e+00 : f32
    %340 = vector.broadcast %cst_210 : f32 to vector<2x128xf32>
    %c0_211 = arith.constant 0 : index
    %c0_212 = arith.constant 0 : index
    %341 = vector.load %arg13[%c0_211, %c0_212] : memref<2x128xf32, #tpu.memory_space<vmem>>, vector<2x128xf32>
    tpu.vector_store %arg13[%c0_211, %c0_212], %340 {strides = array<i32>} : memref<2x128xf32, #tpu.memory_space<vmem>>, vector<2x128xf32>,
    %c0_213 = arith.constant 0 : index
    %c0_214 = arith.constant 0 : index
    %342 = vector.load %arg10[%c0_213, %c0_214] : memref<16x512xf32, #tpu.memory_space<vmem>>, vector<2x512xf32>
    %c0_215 = arith.constant 0 : index
    %c0_216 = arith.constant 0 : index
    %343 = vector.load %arg12[%c0_215, %c0_216] : memref<2x128xf32, #tpu.memory_space<vmem>>, vector<2x128xf32>
    %c0_217 = arith.constant 0 : index
    %c0_218 = arith.constant 0 : index
    %344 = vector.load %arg5[%c0_217, %c0_218] : memref<128x512xf32, #tpu.memory_space<vmem>>, vector<128x512xf32>
    %cst_219 = arith.constant dense<0.000000e+00> : vector<2x512xf32>
    %345 = tpu.matmul %343, %344, %cst_219 {dimension_numbers = #tpu.dot_dimension_numbers<[1], [0], [0], [1], [0, 0, 1, 1], [], []>} : vector<2x128xf32>, vector<128x512xf32>, vector<2x512xf32> -> vector<2x512xf32>
    %346 = arith.addf %342, %345 : vector<2x512xf32>
    %347 = vector.extract_strided_slice %346 {offsets = [0, 0], sizes = [2, 128], strides = [1, 1]} : vector<2x512xf32> to vector<2x128xf32>
    %cst_220 = arith.constant 5.000000e-01 : f32
    %348 = vector.broadcast %cst_220 : f32 to vector<2x128xf32>
    %349 = arith.mulf %348, %347 : vector<2x128xf32>
    %350 = math.tanh %349 : vector<2x128xf32>
    %cst_221 = arith.constant 5.000000e-01 : f32
    %351 = vector.broadcast %cst_221 : f32 to vector<2x128xf32>
    %352 = arith.mulf %351, %350 : vector<2x128xf32>
    %cst_222 = arith.constant 5.000000e-01 : f32
    %353 = vector.broadcast %cst_222 : f32 to vector<2x128xf32>
    %354 = arith.addf %352, %353 : vector<2x128xf32>
    %355 = vector.extract_strided_slice %346 {offsets = [0, 128], sizes = [2, 128], strides = [1, 1]} : vector<2x512xf32> to vector<2x128xf32>
    %cst_223 = arith.constant 5.000000e-01 : f32
    %356 = vector.broadcast %cst_223 : f32 to vector<2x128xf32>
    %357 = arith.mulf %356, %355 : vector<2x128xf32>
    %358 = math.tanh %357 : vector<2x128xf32>
    %cst_224 = arith.constant 5.000000e-01 : f32
    %359 = vector.broadcast %cst_224 : f32 to vector<2x128xf32>
    %360 = arith.mulf %359, %358 : vector<2x128xf32>
    %cst_225 = arith.constant 5.000000e-01 : f32
    %361 = vector.broadcast %cst_225 : f32 to vector<2x128xf32>
    %362 = arith.addf %360, %361 : vector<2x128xf32>
    %363 = vector.extract_strided_slice %346 {offsets = [0, 256], sizes = [2, 128], strides = [1, 1]} : vector<2x512xf32> to vector<2x128xf32>
    %364 = math.tanh %363 : vector<2x128xf32>
    %365 = vector.extract_strided_slice %346 {offsets = [0, 384], sizes = [2, 128], strides = [1, 1]} : vector<2x512xf32> to vector<2x128xf32>
    %cst_226 = arith.constant 5.000000e-01 : f32
    %366 = vector.broadcast %cst_226 : f32 to vector<2x128xf32>
    %367 = arith.mulf %366, %365 : vector<2x128xf32>
    %368 = math.tanh %367 : vector<2x128xf32>
    %cst_227 = arith.constant 5.000000e-01 : f32
    %369 = vector.broadcast %cst_227 : f32 to vector<2x128xf32>
    %370 = arith.mulf %369, %368 : vector<2x128xf32>
    %cst_228 = arith.constant 5.000000e-01 : f32
    %371 = vector.broadcast %cst_228 : f32 to vector<2x128xf32>
    %372 = arith.addf %370, %371 : vector<2x128xf32>
    %c0_229 = arith.constant 0 : index
    %c0_230 = arith.constant 0 : index
    %373 = vector.load %arg13[%c0_229, %c0_230] : memref<2x128xf32, #tpu.memory_space<vmem>>, vector<2x128xf32>
    %374 = arith.mulf %362, %373 : vector<2x128xf32>
    %375 = arith.mulf %354, %364 : vector<2x128xf32>
    %376 = arith.addf %374, %375 : vector<2x128xf32>
    %377 = math.tanh %376 : vector<2x128xf32>
    %378 = arith.mulf %372, %377 : vector<2x128xf32>
    %c0_231 = arith.constant 0 : index
    %c0_232 = arith.constant 0 : index
    %379 = vector.load %arg13[%c0_231, %c0_232] : memref<2x128xf32, #tpu.memory_space<vmem>>, vector<2x128xf32>
    tpu.vector_store %arg13[%c0_231, %c0_232], %376 {strides = array<i32>} : memref<2x128xf32, #tpu.memory_space<vmem>>, vector<2x128xf32>,
    %c0_233 = arith.constant 0 : index
    %c0_234 = arith.constant 0 : index
    %380 = vector.load %arg12[%c0_233, %c0_234] : memref<2x128xf32, #tpu.memory_space<vmem>>, vector<2x128xf32>
    tpu.vector_store %arg12[%c0_233, %c0_234], %378 {strides = array<i32>} : memref<2x128xf32, #tpu.memory_space<vmem>>, vector<2x128xf32>,
    %c2_235 = arith.constant 2 : index
    %c0_236 = arith.constant 0 : index
    %381 = vector.load %arg10[%c2_235, %c0_236] : memref<16x512xf32, #tpu.memory_space<vmem>>, vector<2x512xf32>
    %c0_237 = arith.constant 0 : index
    %c0_238 = arith.constant 0 : index
    %382 = vector.load %arg12[%c0_237, %c0_238] : memref<2x128xf32, #tpu.memory_space<vmem>>, vector<2x128xf32>
    %c0_239 = arith.constant 0 : index
    %c0_240 = arith.constant 0 : index
    %383 = vector.load %arg5[%c0_239, %c0_240] : memref<128x512xf32, #tpu.memory_space<vmem>>, vector<128x512xf32>
    %cst_241 = arith.constant dense<0.000000e+00> : vector<2x512xf32>
    %384 = tpu.matmul %382, %383, %cst_241 {dimension_numbers = #tpu.dot_dimension_numbers<[1], [0], [0], [1], [0, 0, 1, 1], [], []>} : vector<2x128xf32>, vector<128x512xf32>, vector<2x512xf32> -> vector<2x512xf32>
    %385 = arith.addf %381, %384 : vector<2x512xf32>
    %386 = vector.extract_strided_slice %385 {offsets = [0, 0], sizes = [2, 128], strides = [1, 1]} : vector<2x512xf32> to vector<2x128xf32>
    %cst_242 = arith.constant 5.000000e-01 : f32
    %387 = vector.broadcast %cst_242 : f32 to vector<2x128xf32>
    %388 = arith.mulf %387, %386 : vector<2x128xf32>
    %389 = math.tanh %388 : vector<2x128xf32>
    %cst_243 = arith.constant 5.000000e-01 : f32
    %390 = vector.broadcast %cst_243 : f32 to vector<2x128xf32>
    %391 = arith.mulf %390, %389 : vector<2x128xf32>
    %cst_244 = arith.constant 5.000000e-01 : f32
    %392 = vector.broadcast %cst_244 : f32 to vector<2x128xf32>
    %393 = arith.addf %391, %392 : vector<2x128xf32>
    %394 = vector.extract_strided_slice %385 {offsets = [0, 128], sizes = [2, 128], strides = [1, 1]} : vector<2x512xf32> to vector<2x128xf32>
    %cst_245 = arith.constant 5.000000e-01 : f32
    %395 = vector.broadcast %cst_245 : f32 to vector<2x128xf32>
    %396 = arith.mulf %395, %394 : vector<2x128xf32>
    %397 = math.tanh %396 : vector<2x128xf32>
    %cst_246 = arith.constant 5.000000e-01 : f32
    %398 = vector.broadcast %cst_246 : f32 to vector<2x128xf32>
    %399 = arith.mulf %398, %397 : vector<2x128xf32>
    %cst_247 = arith.constant 5.000000e-01 : f32
    %400 = vector.broadcast %cst_247 : f32 to vector<2x128xf32>
    %401 = arith.addf %399, %400 : vector<2x128xf32>
    %402 = vector.extract_strided_slice %385 {offsets = [0, 256], sizes = [2, 128], strides = [1, 1]} : vector<2x512xf32> to vector<2x128xf32>
    %403 = math.tanh %402 : vector<2x128xf32>
    %404 = vector.extract_strided_slice %385 {offsets = [0, 384], sizes = [2, 128], strides = [1, 1]} : vector<2x512xf32> to vector<2x128xf32>
    %cst_248 = arith.constant 5.000000e-01 : f32
    %405 = vector.broadcast %cst_248 : f32 to vector<2x128xf32>
    %406 = arith.mulf %405, %404 : vector<2x128xf32>
    %407 = math.tanh %406 : vector<2x128xf32>
    %cst_249 = arith.constant 5.000000e-01 : f32
    %408 = vector.broadcast %cst_249 : f32 to vector<2x128xf32>
    %409 = arith.mulf %408, %407 : vector<2x128xf32>
    %cst_250 = arith.constant 5.000000e-01 : f32
    %410 = vector.broadcast %cst_250 : f32 to vector<2x128xf32>
    %411 = arith.addf %409, %410 : vector<2x128xf32>
    %c0_251 = arith.constant 0 : index
    %c0_252 = arith.constant 0 : index
    %412 = vector.load %arg13[%c0_251, %c0_252] : memref<2x128xf32, #tpu.memory_space<vmem>>, vector<2x128xf32>
    %413 = arith.mulf %401, %412 : vector<2x128xf32>
    %414 = arith.mulf %393, %403 : vector<2x128xf32>
    %415 = arith.addf %413, %414 : vector<2x128xf32>
    %416 = math.tanh %415 : vector<2x128xf32>
    %417 = arith.mulf %411, %416 : vector<2x128xf32>
    %c0_253 = arith.constant 0 : index
    %c0_254 = arith.constant 0 : index
    %418 = vector.load %arg13[%c0_253, %c0_254] : memref<2x128xf32, #tpu.memory_space<vmem>>, vector<2x128xf32>
    tpu.vector_store %arg13[%c0_253, %c0_254], %415 {strides = array<i32>} : memref<2x128xf32, #tpu.memory_space<vmem>>, vector<2x128xf32>,
    %c0_255 = arith.constant 0 : index
    %c0_256 = arith.constant 0 : index
    %419 = vector.load %arg12[%c0_255, %c0_256] : memref<2x128xf32, #tpu.memory_space<vmem>>, vector<2x128xf32>
    tpu.vector_store %arg12[%c0_255, %c0_256], %417 {strides = array<i32>} : memref<2x128xf32, #tpu.memory_space<vmem>>, vector<2x128xf32>,
    %c4_257 = arith.constant 4 : index
    %c0_258 = arith.constant 0 : index
    %420 = vector.load %arg10[%c4_257, %c0_258] : memref<16x512xf32, #tpu.memory_space<vmem>>, vector<2x512xf32>
    %c0_259 = arith.constant 0 : index
    %c0_260 = arith.constant 0 : index
    %421 = vector.load %arg12[%c0_259, %c0_260] : memref<2x128xf32, #tpu.memory_space<vmem>>, vector<2x128xf32>
    %c0_261 = arith.constant 0 : index
    %c0_262 = arith.constant 0 : index
    %422 = vector.load %arg5[%c0_261, %c0_262] : memref<128x512xf32, #tpu.memory_space<vmem>>, vector<128x512xf32>
    %cst_263 = arith.constant dense<0.000000e+00> : vector<2x512xf32>
    %423 = tpu.matmul %421, %422, %cst_263 {dimension_numbers = #tpu.dot_dimension_numbers<[1], [0], [0], [1], [0, 0, 1, 1], [], []>} : vector<2x128xf32>, vector<128x512xf32>, vector<2x512xf32> -> vector<2x512xf32>
    %424 = arith.addf %420, %423 : vector<2x512xf32>
    %425 = vector.extract_strided_slice %424 {offsets = [0, 0], sizes = [2, 128], strides = [1, 1]} : vector<2x512xf32> to vector<2x128xf32>
    %cst_264 = arith.constant 5.000000e-01 : f32
    %426 = vector.broadcast %cst_264 : f32 to vector<2x128xf32>
    %427 = arith.mulf %426, %425 : vector<2x128xf32>
    %428 = math.tanh %427 : vector<2x128xf32>
    %cst_265 = arith.constant 5.000000e-01 : f32
    %429 = vector.broadcast %cst_265 : f32 to vector<2x128xf32>
    %430 = arith.mulf %429, %428 : vector<2x128xf32>
    %cst_266 = arith.constant 5.000000e-01 : f32
    %431 = vector.broadcast %cst_266 : f32 to vector<2x128xf32>
    %432 = arith.addf %430, %431 : vector<2x128xf32>
    %433 = vector.extract_strided_slice %424 {offsets = [0, 128], sizes = [2, 128], strides = [1, 1]} : vector<2x512xf32> to vector<2x128xf32>
    %cst_267 = arith.constant 5.000000e-01 : f32
    %434 = vector.broadcast %cst_267 : f32 to vector<2x128xf32>
    %435 = arith.mulf %434, %433 : vector<2x128xf32>
    %436 = math.tanh %435 : vector<2x128xf32>
    %cst_268 = arith.constant 5.000000e-01 : f32
    %437 = vector.broadcast %cst_268 : f32 to vector<2x128xf32>
    %438 = arith.mulf %437, %436 : vector<2x128xf32>
    %cst_269 = arith.constant 5.000000e-01 : f32
    %439 = vector.broadcast %cst_269 : f32 to vector<2x128xf32>
    %440 = arith.addf %438, %439 : vector<2x128xf32>
    %441 = vector.extract_strided_slice %424 {offsets = [0, 256], sizes = [2, 128], strides = [1, 1]} : vector<2x512xf32> to vector<2x128xf32>
    %442 = math.tanh %441 : vector<2x128xf32>
    %443 = vector.extract_strided_slice %424 {offsets = [0, 384], sizes = [2, 128], strides = [1, 1]} : vector<2x512xf32> to vector<2x128xf32>
    %cst_270 = arith.constant 5.000000e-01 : f32
    %444 = vector.broadcast %cst_270 : f32 to vector<2x128xf32>
    %445 = arith.mulf %444, %443 : vector<2x128xf32>
    %446 = math.tanh %445 : vector<2x128xf32>
    %cst_271 = arith.constant 5.000000e-01 : f32
    %447 = vector.broadcast %cst_271 : f32 to vector<2x128xf32>
    %448 = arith.mulf %447, %446 : vector<2x128xf32>
    %cst_272 = arith.constant 5.000000e-01 : f32
    %449 = vector.broadcast %cst_272 : f32 to vector<2x128xf32>
    %450 = arith.addf %448, %449 : vector<2x128xf32>
    %c0_273 = arith.constant 0 : index
    %c0_274 = arith.constant 0 : index
    %451 = vector.load %arg13[%c0_273, %c0_274] : memref<2x128xf32, #tpu.memory_space<vmem>>, vector<2x128xf32>
    %452 = arith.mulf %440, %451 : vector<2x128xf32>
    %453 = arith.mulf %432, %442 : vector<2x128xf32>
    %454 = arith.addf %452, %453 : vector<2x128xf32>
    %455 = math.tanh %454 : vector<2x128xf32>
    %456 = arith.mulf %450, %455 : vector<2x128xf32>
    %c0_275 = arith.constant 0 : index
    %c0_276 = arith.constant 0 : index
    %457 = vector.load %arg13[%c0_275, %c0_276] : memref<2x128xf32, #tpu.memory_space<vmem>>, vector<2x128xf32>
    tpu.vector_store %arg13[%c0_275, %c0_276], %454 {strides = array<i32>} : memref<2x128xf32, #tpu.memory_space<vmem>>, vector<2x128xf32>,
    %c0_277 = arith.constant 0 : index
    %c0_278 = arith.constant 0 : index
    %458 = vector.load %arg12[%c0_277, %c0_278] : memref<2x128xf32, #tpu.memory_space<vmem>>, vector<2x128xf32>
    tpu.vector_store %arg12[%c0_277, %c0_278], %456 {strides = array<i32>} : memref<2x128xf32, #tpu.memory_space<vmem>>, vector<2x128xf32>,
    %c6_279 = arith.constant 6 : index
    %c0_280 = arith.constant 0 : index
    %459 = vector.load %arg10[%c6_279, %c0_280] : memref<16x512xf32, #tpu.memory_space<vmem>>, vector<2x512xf32>
    %c0_281 = arith.constant 0 : index
    %c0_282 = arith.constant 0 : index
    %460 = vector.load %arg12[%c0_281, %c0_282] : memref<2x128xf32, #tpu.memory_space<vmem>>, vector<2x128xf32>
    %c0_283 = arith.constant 0 : index
    %c0_284 = arith.constant 0 : index
    %461 = vector.load %arg5[%c0_283, %c0_284] : memref<128x512xf32, #tpu.memory_space<vmem>>, vector<128x512xf32>
    %cst_285 = arith.constant dense<0.000000e+00> : vector<2x512xf32>
    %462 = tpu.matmul %460, %461, %cst_285 {dimension_numbers = #tpu.dot_dimension_numbers<[1], [0], [0], [1], [0, 0, 1, 1], [], []>} : vector<2x128xf32>, vector<128x512xf32>, vector<2x512xf32> -> vector<2x512xf32>
    %463 = arith.addf %459, %462 : vector<2x512xf32>
    %464 = vector.extract_strided_slice %463 {offsets = [0, 0], sizes = [2, 128], strides = [1, 1]} : vector<2x512xf32> to vector<2x128xf32>
    %cst_286 = arith.constant 5.000000e-01 : f32
    %465 = vector.broadcast %cst_286 : f32 to vector<2x128xf32>
    %466 = arith.mulf %465, %464 : vector<2x128xf32>
    %467 = math.tanh %466 : vector<2x128xf32>
    %cst_287 = arith.constant 5.000000e-01 : f32
    %468 = vector.broadcast %cst_287 : f32 to vector<2x128xf32>
    %469 = arith.mulf %468, %467 : vector<2x128xf32>
    %cst_288 = arith.constant 5.000000e-01 : f32
    %470 = vector.broadcast %cst_288 : f32 to vector<2x128xf32>
    %471 = arith.addf %469, %470 : vector<2x128xf32>
    %472 = vector.extract_strided_slice %463 {offsets = [0, 128], sizes = [2, 128], strides = [1, 1]} : vector<2x512xf32> to vector<2x128xf32>
    %cst_289 = arith.constant 5.000000e-01 : f32
    %473 = vector.broadcast %cst_289 : f32 to vector<2x128xf32>
    %474 = arith.mulf %473, %472 : vector<2x128xf32>
    %475 = math.tanh %474 : vector<2x128xf32>
    %cst_290 = arith.constant 5.000000e-01 : f32
    %476 = vector.broadcast %cst_290 : f32 to vector<2x128xf32>
    %477 = arith.mulf %476, %475 : vector<2x128xf32>
    %cst_291 = arith.constant 5.000000e-01 : f32
    %478 = vector.broadcast %cst_291 : f32 to vector<2x128xf32>
    %479 = arith.addf %477, %478 : vector<2x128xf32>
    %480 = vector.extract_strided_slice %463 {offsets = [0, 256], sizes = [2, 128], strides = [1, 1]} : vector<2x512xf32> to vector<2x128xf32>
    %481 = math.tanh %480 : vector<2x128xf32>
    %482 = vector.extract_strided_slice %463 {offsets = [0, 384], sizes = [2, 128], strides = [1, 1]} : vector<2x512xf32> to vector<2x128xf32>
    %cst_292 = arith.constant 5.000000e-01 : f32
    %483 = vector.broadcast %cst_292 : f32 to vector<2x128xf32>
    %484 = arith.mulf %483, %482 : vector<2x128xf32>
    %485 = math.tanh %484 : vector<2x128xf32>
    %cst_293 = arith.constant 5.000000e-01 : f32
    %486 = vector.broadcast %cst_293 : f32 to vector<2x128xf32>
    %487 = arith.mulf %486, %485 : vector<2x128xf32>
    %cst_294 = arith.constant 5.000000e-01 : f32
    %488 = vector.broadcast %cst_294 : f32 to vector<2x128xf32>
    %489 = arith.addf %487, %488 : vector<2x128xf32>
    %c0_295 = arith.constant 0 : index
    %c0_296 = arith.constant 0 : index
    %490 = vector.load %arg13[%c0_295, %c0_296] : memref<2x128xf32, #tpu.memory_space<vmem>>, vector<2x128xf32>
    %491 = arith.mulf %479, %490 : vector<2x128xf32>
    %492 = arith.mulf %471, %481 : vector<2x128xf32>
    %493 = arith.addf %491, %492 : vector<2x128xf32>
    %494 = math.tanh %493 : vector<2x128xf32>
    %495 = arith.mulf %489, %494 : vector<2x128xf32>
    %c0_297 = arith.constant 0 : index
    %c0_298 = arith.constant 0 : index
    %496 = vector.load %arg13[%c0_297, %c0_298] : memref<2x128xf32, #tpu.memory_space<vmem>>, vector<2x128xf32>
    tpu.vector_store %arg13[%c0_297, %c0_298], %493 {strides = array<i32>} : memref<2x128xf32, #tpu.memory_space<vmem>>, vector<2x128xf32>,
    %c0_299 = arith.constant 0 : index
    %c0_300 = arith.constant 0 : index
    %497 = vector.load %arg12[%c0_299, %c0_300] : memref<2x128xf32, #tpu.memory_space<vmem>>, vector<2x128xf32>
    tpu.vector_store %arg12[%c0_299, %c0_300], %495 {strides = array<i32>} : memref<2x128xf32, #tpu.memory_space<vmem>>, vector<2x128xf32>,
    %c8_301 = arith.constant 8 : index
    %c0_302 = arith.constant 0 : index
    %498 = vector.load %arg10[%c8_301, %c0_302] : memref<16x512xf32, #tpu.memory_space<vmem>>, vector<2x512xf32>
    %c0_303 = arith.constant 0 : index
    %c0_304 = arith.constant 0 : index
    %499 = vector.load %arg12[%c0_303, %c0_304] : memref<2x128xf32, #tpu.memory_space<vmem>>, vector<2x128xf32>
    %c0_305 = arith.constant 0 : index
    %c0_306 = arith.constant 0 : index
    %500 = vector.load %arg5[%c0_305, %c0_306] : memref<128x512xf32, #tpu.memory_space<vmem>>, vector<128x512xf32>
    %cst_307 = arith.constant dense<0.000000e+00> : vector<2x512xf32>
    %501 = tpu.matmul %499, %500, %cst_307 {dimension_numbers = #tpu.dot_dimension_numbers<[1], [0], [0], [1], [0, 0, 1, 1], [], []>} : vector<2x128xf32>, vector<128x512xf32>, vector<2x512xf32> -> vector<2x512xf32>
    %502 = arith.addf %498, %501 : vector<2x512xf32>
    %503 = vector.extract_strided_slice %502 {offsets = [0, 0], sizes = [2, 128], strides = [1, 1]} : vector<2x512xf32> to vector<2x128xf32>
    %cst_308 = arith.constant 5.000000e-01 : f32
    %504 = vector.broadcast %cst_308 : f32 to vector<2x128xf32>
    %505 = arith.mulf %504, %503 : vector<2x128xf32>
    %506 = math.tanh %505 : vector<2x128xf32>
    %cst_309 = arith.constant 5.000000e-01 : f32
    %507 = vector.broadcast %cst_309 : f32 to vector<2x128xf32>
    %508 = arith.mulf %507, %506 : vector<2x128xf32>
    %cst_310 = arith.constant 5.000000e-01 : f32
    %509 = vector.broadcast %cst_310 : f32 to vector<2x128xf32>
    %510 = arith.addf %508, %509 : vector<2x128xf32>
    %511 = vector.extract_strided_slice %502 {offsets = [0, 128], sizes = [2, 128], strides = [1, 1]} : vector<2x512xf32> to vector<2x128xf32>
    %cst_311 = arith.constant 5.000000e-01 : f32
    %512 = vector.broadcast %cst_311 : f32 to vector<2x128xf32>
    %513 = arith.mulf %512, %511 : vector<2x128xf32>
    %514 = math.tanh %513 : vector<2x128xf32>
    %cst_312 = arith.constant 5.000000e-01 : f32
    %515 = vector.broadcast %cst_312 : f32 to vector<2x128xf32>
    %516 = arith.mulf %515, %514 : vector<2x128xf32>
    %cst_313 = arith.constant 5.000000e-01 : f32
    %517 = vector.broadcast %cst_313 : f32 to vector<2x128xf32>
    %518 = arith.addf %516, %517 : vector<2x128xf32>
    %519 = vector.extract_strided_slice %502 {offsets = [0, 256], sizes = [2, 128], strides = [1, 1]} : vector<2x512xf32> to vector<2x128xf32>
    %520 = math.tanh %519 : vector<2x128xf32>
    %521 = vector.extract_strided_slice %502 {offsets = [0, 384], sizes = [2, 128], strides = [1, 1]} : vector<2x512xf32> to vector<2x128xf32>
    %cst_314 = arith.constant 5.000000e-01 : f32
    %522 = vector.broadcast %cst_314 : f32 to vector<2x128xf32>
    %523 = arith.mulf %522, %521 : vector<2x128xf32>
    %524 = math.tanh %523 : vector<2x128xf32>
    %cst_315 = arith.constant 5.000000e-01 : f32
    %525 = vector.broadcast %cst_315 : f32 to vector<2x128xf32>
    %526 = arith.mulf %525, %524 : vector<2x128xf32>
    %cst_316 = arith.constant 5.000000e-01 : f32
    %527 = vector.broadcast %cst_316 : f32 to vector<2x128xf32>
    %528 = arith.addf %526, %527 : vector<2x128xf32>
    %c0_317 = arith.constant 0 : index
    %c0_318 = arith.constant 0 : index
    %529 = vector.load %arg13[%c0_317, %c0_318] : memref<2x128xf32, #tpu.memory_space<vmem>>, vector<2x128xf32>
    %530 = arith.mulf %518, %529 : vector<2x128xf32>
    %531 = arith.mulf %510, %520 : vector<2x128xf32>
    %532 = arith.addf %530, %531 : vector<2x128xf32>
    %533 = math.tanh %532 : vector<2x128xf32>
    %534 = arith.mulf %528, %533 : vector<2x128xf32>
    %c0_319 = arith.constant 0 : index
    %c0_320 = arith.constant 0 : index
    %535 = vector.load %arg13[%c0_319, %c0_320] : memref<2x128xf32, #tpu.memory_space<vmem>>, vector<2x128xf32>
    tpu.vector_store %arg13[%c0_319, %c0_320], %532 {strides = array<i32>} : memref<2x128xf32, #tpu.memory_space<vmem>>, vector<2x128xf32>,
    %c0_321 = arith.constant 0 : index
    %c0_322 = arith.constant 0 : index
    %536 = vector.load %arg12[%c0_321, %c0_322] : memref<2x128xf32, #tpu.memory_space<vmem>>, vector<2x128xf32>
    tpu.vector_store %arg12[%c0_321, %c0_322], %534 {strides = array<i32>} : memref<2x128xf32, #tpu.memory_space<vmem>>, vector<2x128xf32>,
    %c10_323 = arith.constant 10 : index
    %c0_324 = arith.constant 0 : index
    %537 = vector.load %arg10[%c10_323, %c0_324] : memref<16x512xf32, #tpu.memory_space<vmem>>, vector<2x512xf32>
    %c0_325 = arith.constant 0 : index
    %c0_326 = arith.constant 0 : index
    %538 = vector.load %arg12[%c0_325, %c0_326] : memref<2x128xf32, #tpu.memory_space<vmem>>, vector<2x128xf32>
    %c0_327 = arith.constant 0 : index
    %c0_328 = arith.constant 0 : index
    %539 = vector.load %arg5[%c0_327, %c0_328] : memref<128x512xf32, #tpu.memory_space<vmem>>, vector<128x512xf32>
    %cst_329 = arith.constant dense<0.000000e+00> : vector<2x512xf32>
    %540 = tpu.matmul %538, %539, %cst_329 {dimension_numbers = #tpu.dot_dimension_numbers<[1], [0], [0], [1], [0, 0, 1, 1], [], []>} : vector<2x128xf32>, vector<128x512xf32>, vector<2x512xf32> -> vector<2x512xf32>
    %541 = arith.addf %537, %540 : vector<2x512xf32>
    %542 = vector.extract_strided_slice %541 {offsets = [0, 0], sizes = [2, 128], strides = [1, 1]} : vector<2x512xf32> to vector<2x128xf32>
    %cst_330 = arith.constant 5.000000e-01 : f32
    %543 = vector.broadcast %cst_330 : f32 to vector<2x128xf32>
    %544 = arith.mulf %543, %542 : vector<2x128xf32>
    %545 = math.tanh %544 : vector<2x128xf32>
    %cst_331 = arith.constant 5.000000e-01 : f32
    %546 = vector.broadcast %cst_331 : f32 to vector<2x128xf32>
    %547 = arith.mulf %546, %545 : vector<2x128xf32>
    %cst_332 = arith.constant 5.000000e-01 : f32
    %548 = vector.broadcast %cst_332 : f32 to vector<2x128xf32>
    %549 = arith.addf %547, %548 : vector<2x128xf32>
    %550 = vector.extract_strided_slice %541 {offsets = [0, 128], sizes = [2, 128], strides = [1, 1]} : vector<2x512xf32> to vector<2x128xf32>
    %cst_333 = arith.constant 5.000000e-01 : f32
    %551 = vector.broadcast %cst_333 : f32 to vector<2x128xf32>
    %552 = arith.mulf %551, %550 : vector<2x128xf32>
    %553 = math.tanh %552 : vector<2x128xf32>
    %cst_334 = arith.constant 5.000000e-01 : f32
    %554 = vector.broadcast %cst_334 : f32 to vector<2x128xf32>
    %555 = arith.mulf %554, %553 : vector<2x128xf32>
    %cst_335 = arith.constant 5.000000e-01 : f32
    %556 = vector.broadcast %cst_335 : f32 to vector<2x128xf32>
    %557 = arith.addf %555, %556 : vector<2x128xf32>
    %558 = vector.extract_strided_slice %541 {offsets = [0, 256], sizes = [2, 128], strides = [1, 1]} : vector<2x512xf32> to vector<2x128xf32>
    %559 = math.tanh %558 : vector<2x128xf32>
    %560 = vector.extract_strided_slice %541 {offsets = [0, 384], sizes = [2, 128], strides = [1, 1]} : vector<2x512xf32> to vector<2x128xf32>
    %cst_336 = arith.constant 5.000000e-01 : f32
    %561 = vector.broadcast %cst_336 : f32 to vector<2x128xf32>
    %562 = arith.mulf %561, %560 : vector<2x128xf32>
    %563 = math.tanh %562 : vector<2x128xf32>
    %cst_337 = arith.constant 5.000000e-01 : f32
    %564 = vector.broadcast %cst_337 : f32 to vector<2x128xf32>
    %565 = arith.mulf %564, %563 : vector<2x128xf32>
    %cst_338 = arith.constant 5.000000e-01 : f32
    %566 = vector.broadcast %cst_338 : f32 to vector<2x128xf32>
    %567 = arith.addf %565, %566 : vector<2x128xf32>
    %c0_339 = arith.constant 0 : index
    %c0_340 = arith.constant 0 : index
    %568 = vector.load %arg13[%c0_339, %c0_340] : memref<2x128xf32, #tpu.memory_space<vmem>>, vector<2x128xf32>
    %569 = arith.mulf %557, %568 : vector<2x128xf32>
    %570 = arith.mulf %549, %559 : vector<2x128xf32>
    %571 = arith.addf %569, %570 : vector<2x128xf32>
    %572 = math.tanh %571 : vector<2x128xf32>
    %573 = arith.mulf %567, %572 : vector<2x128xf32>
    %c0_341 = arith.constant 0 : index
    %c0_342 = arith.constant 0 : index
    %574 = vector.load %arg13[%c0_341, %c0_342] : memref<2x128xf32, #tpu.memory_space<vmem>>, vector<2x128xf32>
    tpu.vector_store %arg13[%c0_341, %c0_342], %571 {strides = array<i32>} : memref<2x128xf32, #tpu.memory_space<vmem>>, vector<2x128xf32>,
    %c0_343 = arith.constant 0 : index
    %c0_344 = arith.constant 0 : index
    %575 = vector.load %arg12[%c0_343, %c0_344] : memref<2x128xf32, #tpu.memory_space<vmem>>, vector<2x128xf32>
    tpu.vector_store %arg12[%c0_343, %c0_344], %573 {strides = array<i32>} : memref<2x128xf32, #tpu.memory_space<vmem>>, vector<2x128xf32>,
    %c12_345 = arith.constant 12 : index
    %c0_346 = arith.constant 0 : index
    %576 = vector.load %arg10[%c12_345, %c0_346] : memref<16x512xf32, #tpu.memory_space<vmem>>, vector<2x512xf32>
    %c0_347 = arith.constant 0 : index
    %c0_348 = arith.constant 0 : index
    %577 = vector.load %arg12[%c0_347, %c0_348] : memref<2x128xf32, #tpu.memory_space<vmem>>, vector<2x128xf32>
    %c0_349 = arith.constant 0 : index
    %c0_350 = arith.constant 0 : index
    %578 = vector.load %arg5[%c0_349, %c0_350] : memref<128x512xf32, #tpu.memory_space<vmem>>, vector<128x512xf32>
    %cst_351 = arith.constant dense<0.000000e+00> : vector<2x512xf32>
    %579 = tpu.matmul %577, %578, %cst_351 {dimension_numbers = #tpu.dot_dimension_numbers<[1], [0], [0], [1], [0, 0, 1, 1], [], []>} : vector<2x128xf32>, vector<128x512xf32>, vector<2x512xf32> -> vector<2x512xf32>
    %580 = arith.addf %576, %579 : vector<2x512xf32>
    %581 = vector.extract_strided_slice %580 {offsets = [0, 0], sizes = [2, 128], strides = [1, 1]} : vector<2x512xf32> to vector<2x128xf32>
    %cst_352 = arith.constant 5.000000e-01 : f32
    %582 = vector.broadcast %cst_352 : f32 to vector<2x128xf32>
    %583 = arith.mulf %582, %581 : vector<2x128xf32>
    %584 = math.tanh %583 : vector<2x128xf32>
    %cst_353 = arith.constant 5.000000e-01 : f32
    %585 = vector.broadcast %cst_353 : f32 to vector<2x128xf32>
    %586 = arith.mulf %585, %584 : vector<2x128xf32>
    %cst_354 = arith.constant 5.000000e-01 : f32
    %587 = vector.broadcast %cst_354 : f32 to vector<2x128xf32>
    %588 = arith.addf %586, %587 : vector<2x128xf32>
    %589 = vector.extract_strided_slice %580 {offsets = [0, 128], sizes = [2, 128], strides = [1, 1]} : vector<2x512xf32> to vector<2x128xf32>
    %cst_355 = arith.constant 5.000000e-01 : f32
    %590 = vector.broadcast %cst_355 : f32 to vector<2x128xf32>
    %591 = arith.mulf %590, %589 : vector<2x128xf32>
    %592 = math.tanh %591 : vector<2x128xf32>
    %cst_356 = arith.constant 5.000000e-01 : f32
    %593 = vector.broadcast %cst_356 : f32 to vector<2x128xf32>
    %594 = arith.mulf %593, %592 : vector<2x128xf32>
    %cst_357 = arith.constant 5.000000e-01 : f32
    %595 = vector.broadcast %cst_357 : f32 to vector<2x128xf32>
    %596 = arith.addf %594, %595 : vector<2x128xf32>
    %597 = vector.extract_strided_slice %580 {offsets = [0, 256], sizes = [2, 128], strides = [1, 1]} : vector<2x512xf32> to vector<2x128xf32>
    %598 = math.tanh %597 : vector<2x128xf32>
    %599 = vector.extract_strided_slice %580 {offsets = [0, 384], sizes = [2, 128], strides = [1, 1]} : vector<2x512xf32> to vector<2x128xf32>
    %cst_358 = arith.constant 5.000000e-01 : f32
    %600 = vector.broadcast %cst_358 : f32 to vector<2x128xf32>
    %601 = arith.mulf %600, %599 : vector<2x128xf32>
    %602 = math.tanh %601 : vector<2x128xf32>
    %cst_359 = arith.constant 5.000000e-01 : f32
    %603 = vector.broadcast %cst_359 : f32 to vector<2x128xf32>
    %604 = arith.mulf %603, %602 : vector<2x128xf32>
    %cst_360 = arith.constant 5.000000e-01 : f32
    %605 = vector.broadcast %cst_360 : f32 to vector<2x128xf32>
    %606 = arith.addf %604, %605 : vector<2x128xf32>
    %c0_361 = arith.constant 0 : index
    %c0_362 = arith.constant 0 : index
    %607 = vector.load %arg13[%c0_361, %c0_362] : memref<2x128xf32, #tpu.memory_space<vmem>>, vector<2x128xf32>
    %608 = arith.mulf %596, %607 : vector<2x128xf32>
    %609 = arith.mulf %588, %598 : vector<2x128xf32>
    %610 = arith.addf %608, %609 : vector<2x128xf32>
    %611 = math.tanh %610 : vector<2x128xf32>
    %612 = arith.mulf %606, %611 : vector<2x128xf32>
    %c0_363 = arith.constant 0 : index
    %c0_364 = arith.constant 0 : index
    %613 = vector.load %arg13[%c0_363, %c0_364] : memref<2x128xf32, #tpu.memory_space<vmem>>, vector<2x128xf32>
    tpu.vector_store %arg13[%c0_363, %c0_364], %610 {strides = array<i32>} : memref<2x128xf32, #tpu.memory_space<vmem>>, vector<2x128xf32>,
    %c0_365 = arith.constant 0 : index
    %c0_366 = arith.constant 0 : index
    %614 = vector.load %arg12[%c0_365, %c0_366] : memref<2x128xf32, #tpu.memory_space<vmem>>, vector<2x128xf32>
    tpu.vector_store %arg12[%c0_365, %c0_366], %612 {strides = array<i32>} : memref<2x128xf32, #tpu.memory_space<vmem>>, vector<2x128xf32>,
    %c14_367 = arith.constant 14 : index
    %c0_368 = arith.constant 0 : index
    %615 = vector.load %arg10[%c14_367, %c0_368] : memref<16x512xf32, #tpu.memory_space<vmem>>, vector<2x512xf32>
    %c0_369 = arith.constant 0 : index
    %c0_370 = arith.constant 0 : index
    %616 = vector.load %arg12[%c0_369, %c0_370] : memref<2x128xf32, #tpu.memory_space<vmem>>, vector<2x128xf32>
    %c0_371 = arith.constant 0 : index
    %c0_372 = arith.constant 0 : index
    %617 = vector.load %arg5[%c0_371, %c0_372] : memref<128x512xf32, #tpu.memory_space<vmem>>, vector<128x512xf32>
    %cst_373 = arith.constant dense<0.000000e+00> : vector<2x512xf32>
    %618 = tpu.matmul %616, %617, %cst_373 {dimension_numbers = #tpu.dot_dimension_numbers<[1], [0], [0], [1], [0, 0, 1, 1], [], []>} : vector<2x128xf32>, vector<128x512xf32>, vector<2x512xf32> -> vector<2x512xf32>
    %619 = arith.addf %615, %618 : vector<2x512xf32>
    %620 = vector.extract_strided_slice %619 {offsets = [0, 0], sizes = [2, 128], strides = [1, 1]} : vector<2x512xf32> to vector<2x128xf32>
    %cst_374 = arith.constant 5.000000e-01 : f32
    %621 = vector.broadcast %cst_374 : f32 to vector<2x128xf32>
    %622 = arith.mulf %621, %620 : vector<2x128xf32>
    %623 = math.tanh %622 : vector<2x128xf32>
    %cst_375 = arith.constant 5.000000e-01 : f32
    %624 = vector.broadcast %cst_375 : f32 to vector<2x128xf32>
    %625 = arith.mulf %624, %623 : vector<2x128xf32>
    %cst_376 = arith.constant 5.000000e-01 : f32
    %626 = vector.broadcast %cst_376 : f32 to vector<2x128xf32>
    %627 = arith.addf %625, %626 : vector<2x128xf32>
    %628 = vector.extract_strided_slice %619 {offsets = [0, 128], sizes = [2, 128], strides = [1, 1]} : vector<2x512xf32> to vector<2x128xf32>
    %cst_377 = arith.constant 5.000000e-01 : f32
    %629 = vector.broadcast %cst_377 : f32 to vector<2x128xf32>
    %630 = arith.mulf %629, %628 : vector<2x128xf32>
    %631 = math.tanh %630 : vector<2x128xf32>
    %cst_378 = arith.constant 5.000000e-01 : f32
    %632 = vector.broadcast %cst_378 : f32 to vector<2x128xf32>
    %633 = arith.mulf %632, %631 : vector<2x128xf32>
    %cst_379 = arith.constant 5.000000e-01 : f32
    %634 = vector.broadcast %cst_379 : f32 to vector<2x128xf32>
    %635 = arith.addf %633, %634 : vector<2x128xf32>
    %636 = vector.extract_strided_slice %619 {offsets = [0, 256], sizes = [2, 128], strides = [1, 1]} : vector<2x512xf32> to vector<2x128xf32>
    %637 = math.tanh %636 : vector<2x128xf32>
    %638 = vector.extract_strided_slice %619 {offsets = [0, 384], sizes = [2, 128], strides = [1, 1]} : vector<2x512xf32> to vector<2x128xf32>
    %cst_380 = arith.constant 5.000000e-01 : f32
    %639 = vector.broadcast %cst_380 : f32 to vector<2x128xf32>
    %640 = arith.mulf %639, %638 : vector<2x128xf32>
    %641 = math.tanh %640 : vector<2x128xf32>
    %cst_381 = arith.constant 5.000000e-01 : f32
    %642 = vector.broadcast %cst_381 : f32 to vector<2x128xf32>
    %643 = arith.mulf %642, %641 : vector<2x128xf32>
    %cst_382 = arith.constant 5.000000e-01 : f32
    %644 = vector.broadcast %cst_382 : f32 to vector<2x128xf32>
    %645 = arith.addf %643, %644 : vector<2x128xf32>
    %c0_383 = arith.constant 0 : index
    %c0_384 = arith.constant 0 : index
    %646 = vector.load %arg13[%c0_383, %c0_384] : memref<2x128xf32, #tpu.memory_space<vmem>>, vector<2x128xf32>
    %647 = arith.mulf %635, %646 : vector<2x128xf32>
    %648 = arith.mulf %627, %637 : vector<2x128xf32>
    %649 = arith.addf %647, %648 : vector<2x128xf32>
    %650 = math.tanh %649 : vector<2x128xf32>
    %651 = arith.mulf %645, %650 : vector<2x128xf32>
    %c0_385 = arith.constant 0 : index
    %c0_386 = arith.constant 0 : index
    %652 = vector.load %arg13[%c0_385, %c0_386] : memref<2x128xf32, #tpu.memory_space<vmem>>, vector<2x128xf32>
    tpu.vector_store %arg13[%c0_385, %c0_386], %649 {strides = array<i32>} : memref<2x128xf32, #tpu.memory_space<vmem>>, vector<2x128xf32>,
    %c0_387 = arith.constant 0 : index
    %c0_388 = arith.constant 0 : index
    %653 = vector.load %arg12[%c0_387, %c0_388] : memref<2x128xf32, #tpu.memory_space<vmem>>, vector<2x128xf32>
    tpu.vector_store %arg12[%c0_387, %c0_388], %651 {strides = array<i32>} : memref<2x128xf32, #tpu.memory_space<vmem>>, vector<2x128xf32>,
    %c0_389 = arith.constant 0 : index
    %c0_390 = arith.constant 0 : index
    %654 = vector.load %arg12[%c0_389, %c0_390] : memref<2x128xf32, #tpu.memory_space<vmem>>, vector<2x128xf32>
    %c0_391 = arith.constant 0 : index
    %c0_392 = arith.constant 0 : index
    %655 = vector.load %arg7[%c0_391, %c0_392] : memref<128x128xf32, #tpu.memory_space<vmem>>, vector<128x128xf32>
    %cst_393 = arith.constant dense<0.000000e+00> : vector<2x128xf32>
    %656 = tpu.matmul %654, %655, %cst_393 {dimension_numbers = #tpu.dot_dimension_numbers<[1], [0], [0], [1], [0, 0, 1, 1], [], []>} : vector<2x128xf32>, vector<128x128xf32>, vector<2x128xf32> -> vector<2x128xf32>
    %c0_394 = arith.constant 0 : index
    %c0_395 = arith.constant 0 : index
    %657 = vector.load %arg8[%c0_394, %c0_395] : memref<1x128xf32, #tpu.memory_space<vmem>>, vector<1x128xf32>
    %658 = vector.broadcast %657 : vector<1x128xf32> to vector<2x128xf32>
    %659 = arith.addf %656, %658 : vector<2x128xf32>
    %c0_396 = arith.constant 0 : index
    %c0_397 = arith.constant 0 : index
    %660 = vector.load %arg9[%c0_396, %c0_397] : memref<2x128xf32, #tpu.memory_space<vmem>>, vector<2x128xf32>
    tpu.vector_store %arg9[%c0_396, %c0_397], %659 {strides = array<i32>} : memref<2x128xf32, #tpu.memory_space<vmem>>, vector<2x128xf32>,
    return
  }
}

</mosaic_0001>

<bundles_post_ra>
// kernel: lstm_model_forward.1
= control target key start
LH: loop header
LB: loop body
LE: loop exit
PB: predicated region body
PF: predicated region fallthrough
CT: control target
= control target key end

     0   :  { %v6027_v7 = vmov 0.0   ;;  %s8479_s0 = inlined_call_operand.vmem [shape: f32[16,128], index: 0, kind: input, shape index: {}]   ;;  %s8480_s1 = inlined_call_operand.vmem [shape: f32[128,512], index: 1, kind: input, shape index: {}]   ;;  %s8481_s2 = inlined_call_operand.vmem [shape: f32[128,512], index: 2, kind: input, shape index: {}]   ;;  %s8482_s3 = inlined_call_operand.vmem [shape: f32[1,512], index: 3, kind: input, shape index: {}]   ;;  %s8483_s4 = inlined_call_operand.vmem [shape: f32[128,512], index: 4, kind: input, shape index: {}]   ;;  %s8484_s5 = inlined_call_operand.vmem [shape: f32[128,512], index: 5, kind: input, shape index: {}]   ;;  %s8485_s6 = inlined_call_operand.vmem [shape: f32[1,512], index: 6, kind: input, shape index: {}]   ;;  %s8486_s7 = inlined_call_operand.vmem [shape: f32[128,128], index: 7, kind: input, shape index: {}]   ;;  %s8487_s8 = inlined_call_operand.vmem [shape: f32[1,128], index: 8, kind: input, shape index: {}]   ;;  %s8488_s9 = inlined_call_operand.hbm [shape: f32[2,128], index: 9, kind: output, shape index: {}]  }
   0x1   :  { %v36_v0 = vld [vmem:[%s8480_s1 + $0x8] sm:$0xff]  ;;  %v38_v2 = vld [vmem:[%s8480_s1 + $0x18] sm:$0xff]  ;;  %v35_v5 = vld [vmem:[%s8480_s1] sm:$0xff]  ;;  %185 = vmatprep.mubr.f32.mxu0 %v6027_v7  ;;  %283 = vst [vmem:[#allocation4] sm:$0x3] %v6027_v7  ;;  %262 = vmatprep.mubr.f32.mxu1 %v6027_v7 }
   0x2   :  { %v40_v1 = vld [vmem:[%s8480_s1 + $0x28] sm:$0xff]  ;;  %v42_v4 = vld [vmem:[%s8480_s1 + $0x38] sm:$0xff]  ;;  %v39_v6 = vld [vmem:[%s8480_s1 + $0x20] sm:$0xff]  ;;  %284 = vst [vmem:[#allocation5] sm:$0x3] %v6027_v7 }
   0x3   :  { %v4663_v3 = vpack.c.bf16 %v40_v1, %v36_v0  ;;  %v4695_v8 = vpack.c.bf16 %v42_v4, %v38_v2  ;;  %v4665_v9 = vpack.c.bf16 %v39_v6, %v35_v5  ;;  %v37_v10 = vld [vmem:[%s8480_s1 + $0x10] sm:$0xff]  ;;  %v44_v12 = vld [vmem:[%s8480_s1 + $0x48] sm:$0xff]  ;;  %v46_v15 = vld [vmem:[%s8480_s1 + $0x58] sm:$0xff] }
   0x4   :  { %v41_v11 = vld [vmem:[%s8480_s1 + $0x30] sm:$0xff]  ;;  %v48_v14 = vld [vmem:[%s8480_s1 + $0x68] sm:$0xff]  ;;  %v50_v16 = vld [vmem:[%s8480_s1 + $0x78] sm:$0xff] }
   0x5   :  { %4664 = vmatprep.subr.bf16.mxu0 %v4663_v3  ;;  %v4697_v13 = vpack.c.bf16 %v41_v11, %v37_v10  ;;  %4696 = vmatprep.subr.bf16.mxu1 %v4695_v8  ;;  %v4667_v17 = vpack.c.bf16 %v48_v14, %v44_v12  ;;  %v4699_v18 = vpack.c.bf16 %v50_v16, %v46_v15  ;;  %v43_v19 = vld [vmem:[%s8480_s1 + $0x40] sm:$0xff]  ;;  %v45_v21 = vld [vmem:[%s8480_s1 + $0x50] sm:$0xff]  ;;  %v52_v24 = vld [vmem:[%s8480_s1 + $0x88] sm:$0xff] }
   0x6   :  { %4666 = vmatpush1.bf16.msra.mxu0 %v4665_v9  ;;  %v47_v20 = vld [vmem:[%s8480_s1 + $0x60] sm:$0xff]  ;;  %v49_v23 = vld [vmem:[%s8480_s1 + $0x70] sm:$0xff]  ;;  %v56_v25 = vld [vmem:[%s8480_s1 + $0xa8] sm:$0xff] }
   0x7   :  { %4698 = vmatpush1.bf16.msra.mxu1 %v4697_v13  ;;  %v4669_v22 = vpack.c.bf16 %v47_v20, %v43_v19  ;;  %4668 = vmatprep.subr.bf16.mxu0 %v4667_v17  ;;  %v4701_v26 = vpack.c.bf16 %v49_v23, %v45_v21  ;;  %v4671_v27 = vpack.c.bf16 %v56_v25, %v52_v24  ;;  %v54_v28 = vld [vmem:[%s8480_s1 + $0x98] sm:$0xff]  ;;  %v51_v30 = vld [vmem:[%s8480_s1 + $0x80] sm:$0xff]  ;;  %v53_v33 = vld [vmem:[%s8480_s1 + $0x90] sm:$0xff] }
   0x8   :  { %4700 = vmatprep.subr.bf16.mxu1 %v4699_v18  ;;  %v58_v29 = vld [vmem:[%s8480_s1 + $0xb8] sm:$0xff]  ;;  %v55_v32 = vld [vmem:[%s8480_s1 + $0xa0] sm:$0xff]  ;;  %v57_v34 = vld [vmem:[%s8480_s1 + $0xb0] sm:$0xff] }
   0x9   :  { %v4703_v31 = vpack.c.bf16 %v58_v29, %v54_v28  ;;  %v4673_v35 = vpack.c.bf16 %v55_v32, %v51_v30  ;;  %v60_v36 = vld [vmem:[%s8480_s1 + $0xc8] sm:$0xff]  ;;  %v62_v38 = vld [vmem:[%s8480_s1 + $0xd8] sm:$0xff]  ;;  %v4705_v39 = vpack.c.bf16 %v57_v34, %v53_v33  ;;  %v59_v42 = vld [vmem:[%s8480_s1 + $0xc0] sm:$0xff] }
   0xa   :  { %4670 = vmatpush1.bf16.msra.mxu0 %v4669_v22  ;;  %v64_v37 = vld [vmem:[%s8480_s1 + $0xe8] sm:$0xff]  ;;  %v66_v41 = vld [vmem:[%s8480_s1 + $0xf8] sm:$0xff]  ;;  %v63_v43 = vld [vmem:[%s8480_s1 + $0xe0] sm:$0xff] }
   0xb   :  { %4702 = vmatpush1.bf16.msra.mxu1 %v4701_v26  ;;  %4672 = vmatprep.subr.bf16.mxu0 %v4671_v27  ;;  %v4675_v40 = vpack.c.bf16 %v64_v37, %v60_v36  ;;  %v4707_v44 = vpack.c.bf16 %v66_v41, %v62_v38  ;;  %v61_v45 = vld [vmem:[%s8480_s1 + $0xd0] sm:$0xff]  ;;  %v68_v47 = vld [vmem:[%s8480_s1 + $0x108] sm:$0xff]  ;;  %v70_v49 = vld [vmem:[%s8480_s1 + $0x118] sm:$0xff]  ;;  %v4677_v51 = vpack.c.bf16 %v63_v43, %v59_v42 }
   0xc   :  { %4704 = vmatprep.subr.bf16.mxu1 %v4703_v31  ;;  %v65_v46 = vld [vmem:[%s8480_s1 + $0xf0] sm:$0xff]  ;;  %v72_v48 = vld [vmem:[%s8480_s1 + $0x128] sm:$0xff]  ;;  %v74_v50 = vld [vmem:[%s8480_s1 + $0x138] sm:$0xff] }
   0xd   :  { %v4709_v52 = vpack.c.bf16 %v65_v46, %v61_v45  ;;  %v4679_v53 = vpack.c.bf16 %v72_v48, %v68_v47  ;;  %v67_v54 = vld [vmem:[%s8480_s1 + $0x100] sm:$0xff]  ;;  %v69_v56 = vld [vmem:[%s8480_s1 + $0x110] sm:$0xff]  ;;  %v4711_v57 = vpack.c.bf16 %v74_v50, %v70_v49  ;;  %v76_v59 = vld [vmem:[%s8480_s1 + $0x148] sm:$0xff] }
   0xe   :  { %4674 = vmatpush1.bf16.msra.mxu0 %v4673_v35  ;;  %v71_v55 = vld [vmem:[%s8480_s1 + $0x120] sm:$0xff]  ;;  %v73_v58 = vld [vmem:[%s8480_s1 + $0x130] sm:$0xff]  ;;  %v80_v60 = vld [vmem:[%s8480_s1 + $0x168] sm:$0xff] }
   0xf   :  { %4706 = vmatpush1.bf16.msra.mxu1 %v4705_v39  ;;  %4676 = vmatprep.subr.bf16.mxu0 %v4675_v40  ;;  %v78_v61 = vld [vmem:[%s8480_s1 + $0x158] sm:$0xff]  ;;  %v4681_v63 = vpack.c.bf16 %v71_v55, %v67_v54  ;;  %v4713_v0 = vpack.c.bf16 %v73_v58, %v69_v56  ;;  %v4683_v1 = vpack.c.bf16 %v80_v60, %v76_v59  ;;  %v75_v2 = vld [vmem:[%s8480_s1 + $0x140] sm:$0xff]  ;;  %v77_v4 = vld [vmem:[%s8480_s1 + $0x150] sm:$0xff] }
  0x10   :  { %4708 = vmatprep.subr.bf16.mxu1 %v4707_v44  ;;  %v82_v62 = vld [vmem:[%s8480_s1 + $0x178] sm:$0xff]  ;;  %v79_v3 = vld [vmem:[%s8480_s1 + $0x160] sm:$0xff]  ;;  %v81_v6 = vld [vmem:[%s8480_s1 + $0x170] sm:$0xff] }
  0x11   :  { %v4715_v5 = vpack.c.bf16 %v82_v62, %v78_v61  ;;  %v84_v8 = vld [vmem:[%s8480_s1 + $0x188] sm:$0xff]  ;;  %v86_v10 = vld [vmem:[%s8480_s1 + $0x198] sm:$0xff]  ;;  %v4685_v12 = vpack.c.bf16 %v79_v3, %v75_v2  ;;  %v4717_v13 = vpack.c.bf16 %v81_v6, %v77_v4  ;;  %v83_v15 = vld [vmem:[%s8480_s1 + $0x180] sm:$0xff] }
  0x12   :  { %4678 = vmatpush1.bf16.msra.mxu0 %v4677_v51  ;;  %v88_v9 = vld [vmem:[%s8480_s1 + $0x1a8] sm:$0xff]  ;;  %v90_v11 = vld [vmem:[%s8480_s1 + $0x1b8] sm:$0xff]  ;;  %v87_v16 = vld [vmem:[%s8480_s1 + $0x1a0] sm:$0xff] }
  0x13   :  { %4710 = vmatpush1.bf16.msra.mxu1 %v4709_v52  ;;  %4680 = vmatprep.subr.bf16.mxu0 %v4679_v53  ;;  %v4687_v14 = vpack.c.bf16 %v88_v9, %v84_v8  ;;  %v85_v17 = vld [vmem:[%s8480_s1 + $0x190] sm:$0xff]  ;;  %v4719_v18 = vpack.c.bf16 %v90_v11, %v86_v10  ;;  %v92_v20 = vld [vmem:[%s8480_s1 + $0x1c8] sm:$0xff]  ;;  %v94_v22 = vld [vmem:[%s8480_s1 + $0x1d8] sm:$0xff]  ;;  %v4689_v24 = vpack.c.bf16 %v87_v16, %v83_v15 }
  0x14   :  { %4712 = vmatprep.subr.bf16.mxu1 %v4711_v57  ;;  %v89_v19 = vld [vmem:[%s8480_s1 + $0x1b0] sm:$0xff]  ;;  %v96_v21 = vld [vmem:[%s8480_s1 + $0x1e8] sm:$0xff]  ;;  %v98_v23 = vld [vmem:[%s8480_s1 + $0x1f8] sm:$0xff] }
  0x15   :  { %v4721_v25 = vpack.c.bf16 %v89_v19, %v85_v17  ;;  %v4691_v26 = vpack.c.bf16 %v96_v21, %v92_v20  ;;  %v91_v27 = vld [vmem:[%s8480_s1 + $0x1c0] sm:$0xff]  ;;  %v93_v29 = vld [vmem:[%s8480_s1 + $0x1d0] sm:$0xff]  ;;  %v4723_v30 = vpack.c.bf16 %v98_v23, %v94_v22  ;;  %v291_v32 = vld [vmem:[%s8481_s2 + $0x8] sm:$0xff] }
  0x16   :  { %4682 = vmatpush1.bf16.msra.mxu0 %v4681_v63  ;;  %v95_v28 = vld [vmem:[%s8480_s1 + $0x1e0] sm:$0xff]  ;;  %v97_v31 = vld [vmem:[%s8480_s1 + $0x1f0] sm:$0xff]  ;;  %v295_v33 = vld [vmem:[%s8481_s2 + $0x28] sm:$0xff] }
  0x17   :  { %4714 = vmatpush1.bf16.msra.mxu1 %v4713_v0  ;;  %4684 = vmatprep.subr.bf16.mxu0 %v4683_v1  ;;  %v293_v34 = vld [vmem:[%s8481_s2 + $0x18] sm:$0xff]  ;;  %v4693_v36 = vpack.c.bf16 %v95_v28, %v91_v27  ;;  %v4725_v37 = vpack.c.bf16 %v97_v31, %v93_v29  ;;  %v6289_v38 = vpack.c.bf16 %v295_v33, %v291_v32  ;;  %v290_v39 = vld [vmem:[%s8481_s2] sm:$0xff]  ;;  %v292_v41 = vld [vmem:[%s8481_s2 + $0x10] sm:$0xff] }
  0x18   :  { %4716 = vmatprep.subr.bf16.mxu1 %v4715_v5  ;;  %v297_v35 = vld [vmem:[%s8481_s2 + $0x38] sm:$0xff]  ;;  %v294_v40 = vld [vmem:[%s8481_s2 + $0x20] sm:$0xff]  ;;  %v296_v43 = vld [vmem:[%s8481_s2 + $0x30] sm:$0xff] }
  0x19   :  { %v6300_v42 = vpack.c.bf16 %v297_v35, %v293_v34  ;;  %v299_v44 = vld [vmem:[%s8481_s2 + $0x48] sm:$0xff]  ;;  %v301_v46 = vld [vmem:[%s8481_s2 + $0x58] sm:$0xff]  ;;  %v33_v48 = vld [vmem:[%s8479_s0] sm:$0xff]  ;;  %v6320_v49 = vpack.c.bf16 %v294_v40, %v290_v39  ;;  %v6323_v50 = vpack.c.bf16 %v296_v43, %v292_v41 }
  0x1a   :  { %4686 = vmatpush1.bf16.msra.mxu0 %v4685_v12  ;;  %v303_v45 = vld [vmem:[%s8481_s2 + $0x68] sm:$0xff]  ;;  %v305_v47 = vld [vmem:[%s8481_s2 + $0x78] sm:$0xff]  ;;  %v298_v52 = vld [vmem:[%s8481_s2 + $0x40] sm:$0xff] }
  0x1b   :  { %4718 = vmatpush1.bf16.msra.mxu1 %v4717_v13  ;;  %4688 = vmatprep.subr.bf16.mxu0 %v4687_v14  ;;  %v6325_v51 = vpack.c.bf16 %v303_v45, %v299_v44  ;;  %v302_v53 = vld [vmem:[%s8481_s2 + $0x60] sm:$0xff]  ;;  %v300_v54 = vld [vmem:[%s8481_s2 + $0x50] sm:$0xff]  ;;  %v6337_v55 = vpack.c.bf16 %v305_v47, %v301_v46  ;;  %v307_v57 = vld [vmem:[%s8481_s2 + $0x88] sm:$0xff] }
  0x1c   :  { %4720 = vmatprep.subr.bf16.mxu1 %v4719_v18  ;;  %v304_v56 = vld [vmem:[%s8481_s2 + $0x70] sm:$0xff]  ;;  %v311_v58 = vld [vmem:[%s8481_s2 + $0xa8] sm:$0xff]  ;;  %v309_v59 = vld [vmem:[%s8481_s2 + $0x98] sm:$0xff]  ;;  %v6355_v61 = vpack.c.bf16 %v302_v53, %v298_v52 }
  0x1d   :  { %v313_v60 = vld [vmem:[%s8481_s2 + $0xb8] sm:$0xff]  ;;  %v6359_v62 = vpack.c.bf16 %v304_v56, %v300_v54  ;;  %v6361_v63 = vpack.c.bf16 %v311_v58, %v307_v57  ;;  %v306_v0 = vld [vmem:[%s8481_s2 + $0x80] sm:$0xff]  ;;  %v308_v2 = vld [vmem:[%s8481_s2 + $0x90] sm:$0xff] }
  0x1e   :  { %4690 = vmatpush1.bf16.msra.mxu0 %v4689_v24  ;;  %v310_v1 = vld [vmem:[%s8481_s2 + $0xa0] sm:$0xff]  ;;  %v6373_v3 = vpack.c.bf16 %v313_v60, %v309_v59  ;;  %v312_v4 = vld [vmem:[%s8481_s2 + $0xb0] sm:$0xff]  ;;  %v315_v5 = vld [vmem:[%s8481_s2 + $0xc8] sm:$0xff] }
  0x1f   :  { %4722 = vmatpush1.bf16.msra.mxu1 %v4721_v25  ;;  %4692 = vmatprep.subr.bf16.mxu0 %v4691_v26  ;;  %v319_v6 = vld [vmem:[%s8481_s2 + $0xe8] sm:$0xff]  ;;  %v317_v8 = vld [vmem:[%s8481_s2 + $0xd8] sm:$0xff]  ;;  %v6393_v10 = vpack.c.bf16 %v310_v1, %v306_v0  ;;  %v6400_v12 = vpack.c.bf16 %v312_v4, %v308_v2  ;;  %v314_v14 = vld [vmem:[%s8481_s2 + $0xc0] sm:$0xff] }
  0x20   :  { %4724 = vmatprep.subr.bf16.mxu1 %v4723_v30  ;;  %v321_v9 = vld [vmem:[%s8481_s2 + $0xf8] sm:$0xff]  ;;  %v34_v11 = vld [vmem:[%s8479_s0 + $0x8] sm:$0xff]  ;;  %v6402_v13 = vpack.c.bf16 %v319_v6, %v315_v5  ;;  %v318_v15 = vld [vmem:[%s8481_s2 + $0xe0] sm:$0xff] }
  0x21   :  { %v316_v16 = vld [vmem:[%s8481_s2 + $0xd0] sm:$0xff]  ;;  %v6414_v17 = vpack.c.bf16 %v321_v9, %v317_v8  ;;  %v323_v19 = vld [vmem:[%s8481_s2 + $0x108] sm:$0xff]  ;;  %v325_v21 = vld [vmem:[%s8481_s2 + $0x118] sm:$0xff]  ;;  %v6433_v23 = vpack.c.bf16 %v318_v15, %v314_v14 }
  0x22   :  { %4694 = vmatpush1.bf16.msra.mxu0 %v4693_v36  ;;  %v320_v18 = vld [vmem:[%s8481_s2 + $0xf0] sm:$0xff]  ;;  %v327_v20 = vld [vmem:[%s8481_s2 + $0x128] sm:$0xff]  ;;  %v329_v22 = vld [vmem:[%s8481_s2 + $0x138] sm:$0xff] }
  0x23   :  { %4726 = vmatpush1.bf16.msra.mxu1 %v4725_v37  ;;  %4728 = vmatprep.subr.bf16.mxu0 %v6289_v38 }
  0x24   :  { %4760 = vmatprep.subr.bf16.mxu1 %v6300_v42 }
  0x25   :  { %186 = vmatmul.mubr.f32.vlgmr.msra.gmra.mrb[0].mxu0 %v33_v48 }
  0x26   :  { %263 = vmatmul.mubr.f32.vlgmr.msra.gmra.mrb[0].mxu1 %v33_v48  ;;  %4730 = vmatpush1.bf16.msra.mxu0 %v6320_v49 }
  0x27   :  { %4762 = vmatpush1.bf16.msra.mxu1 %v6323_v50  ;;  %4732 = vmatprep.subr.bf16.mxu0 %v6325_v51 }
  0x28   :  { %4764 = vmatprep.subr.bf16.mxu1 %v6337_v55  ;;  %191 = vmatprep.mubr.f32.mxu0 %v6027_v7 }
  0x29   :  { %268 = vmatprep.mubr.f32.mxu1 %v6027_v7  ;;  %192 = vmatmul.mubr.f32.gmra.mrb[2].mxu0 %v34_v11 }
  0x2a   :  { %4734 = vmatpush1.bf16.msra.mxu0 %v6355_v61  ;;  %269 = vmatmul.mubr.f32.gmra.mrb[2].mxu1 %v34_v11 }
  0x2b   :  { %4766 = vmatpush1.bf16.msra.mxu1 %v6359_v62  ;;  %4736 = vmatprep.subr.bf16.mxu0 %v6361_v63 }
  0x2c   :  { %4768 = vmatprep.subr.bf16.mxu1 %v6373_v3  ;;  %418 = vmatprep.mubr.f32.mxu0 %v6027_v7 }
  0x2d   :  { %489 = vmatprep.mubr.f32.mxu1 %v6027_v7 }
  0x2e   :  { %4738 = vmatpush1.bf16.msra.mxu0 %v6393_v10 }
  0x2f   :  { %14 = vsyncpa [#allocation7], 0  ;;  %4770 = vmatpush1.bf16.msra.mxu1 %v6400_v12  ;;  %4740 = vmatprep.subr.bf16.mxu0 %v6402_v13  ;;  %v6438_v24 = vpack.c.bf16 %v320_v18, %v316_v16  ;;  %v6440_v25 = vpack.c.bf16 %v327_v20, %v323_v19  ;;  %v322_v26 = vld [vmem:[%s8481_s2 + $0x100] sm:$0xff]  ;;  %v324_v28 = vld [vmem:[%s8481_s2 + $0x110] sm:$0xff]  ;;  %v6452_v29 = vpack.c.bf16 %v329_v22, %v325_v21  ;;  %v101_v21 = vlaneseq  ;;  %s6030_s17 = smov [#allocation6]  }
  0x30   :  { %v326_v27 = vld [vmem:[%s8481_s2 + $0x120] sm:$0xff]  ;;  %4772 = vmatprep.subr.bf16.mxu1 %v6414_v17  ;;  %v328_v30 = vld [vmem:[%s8481_s2 + $0x130] sm:$0xff]  ;;  %v331_v31 = vld [vmem:[%s8481_s2 + $0x148] sm:$0xff]  ;;  %vm6029_vm0 = vmmov 0   ;;  %s4602_s18 = sshll.u32 %s6030_s17, 4  ;;  %s4603_s18 = int_to_ptr.vmem [resolvable:$true] %s4602_s18 }
  0x31   :  { %v335_v32 = vld [vmem:[%s8481_s2 + $0x168] sm:$0xff]  ;;  %v333_v33 = vld [vmem:[%s8481_s2 + $0x158] sm:$0xff]  ;;  %v6470_v35 = vpack.c.bf16 %v326_v27, %v322_v26  ;;  %v6474_v36 = vpack.c.bf16 %v328_v30, %v324_v28  ;;  %v330_v39 = vld [vmem:[%s8481_s2 + $0x140] sm:$0xff]  ;;  %v6611_v22 = vshrl.u32 %v101_v21, 7  ;;  %s6003_s1 = scalar_lea.vmem %s4603_s18, 32  ;;  %p6008_p1 = scmp.lt.s32.totalorder %s4603_s18, %s4603_s18 }
  0x32   :  { %v337_v34 = vld [vmem:[%s8481_s2 + $0x178] sm:$0xff]  ;;  %4742 = vmatpush1.bf16.msra.mxu0 %v6433_v23  ;;  %v6476_v37 = vpack.c.bf16 %v335_v32, %v331_v31  ;;  %v334_v40 = vld [vmem:[%s8481_s2 + $0x160] sm:$0xff]  ;;  %v332_v41 = vld [vmem:[%s8481_s2 + $0x150] sm:$0xff]  ;;  %p6004_p0 = scmp.ne.s32.totalorder %s4603_s18, %s6003_s1  ;;  %p6009_p2 = scmp.lt.s32.totalorder %s6003_s1, %s6003_s1 }
  0x33   :  { %4774 = vmatpush1.bf16.msra.mxu1 %v6438_v24  ;;  %4744 = vmatprep.subr.bf16.mxu0 %v6440_v25  ;;  %v6488_v43 = vpack.c.bf16 %v337_v34, %v333_v33  ;;  %v336_v44 = vld [vmem:[%s8481_s2 + $0x170] sm:$0xff]  ;;  %v339_v45 = vld [vmem:[%s8481_s2 + $0x188] sm:$0xff]  ;;  %v341_v47 = vld [vmem:[%s8481_s2 + $0x198] sm:$0xff]  ;;  %v6506_v52 = vpack.c.bf16 %v334_v40, %v330_v39  ;;  %v103_v26 = vsub.s32 0, %v6611_v22  ;;  %v107_v28 = vsub.s32 1, %v6611_v22 }
  0x34   :  { %4776 = vmatprep.subr.bf16.mxu1 %v6452_v29  ;;  %v343_v46 = vld [vmem:[%s8481_s2 + $0x1a8] sm:$0xff]  ;;  %v345_v48 = vld [vmem:[%s8481_s2 + $0x1b8] sm:$0xff]  ;;  %v6510_v53 = vpack.c.bf16 %v336_v44, %v332_v41  ;;  %v338_v56 = vld [vmem:[%s8481_s2 + $0x180] sm:$0xff]  ;;  %v111_v30 = vsub.s32 2, %v6611_v22  ;;  %v115_v31 = vsub.s32 3, %v6611_v22  ;;  %p6010_p3 = por %p6009_p2, %p6008_p1 }
  0x35   :  { %v6512_v54 = vpack.c.bf16 %v343_v46, %v339_v45  ;;  %v342_v57 = vld [vmem:[%s8481_s2 + $0x1a0] sm:$0xff]  ;;  %v340_v58 = vld [vmem:[%s8481_s2 + $0x190] sm:$0xff]  ;;  %v6524_v59 = vpack.c.bf16 %v345_v48, %v341_v47  ;;  %v347_v0 = vld [vmem:[%s8481_s2 + $0x1c8] sm:$0xff] }
  0x36   :  { %4746 = vmatpush1.bf16.msra.mxu0 %v6470_v35  ;;  %v344_v60 = vld [vmem:[%s8481_s2 + $0x1b0] sm:$0xff]  ;;  %v351_v1 = vld [vmem:[%s8481_s2 + $0x1e8] sm:$0xff]  ;;  %v349_v2 = vld [vmem:[%s8481_s2 + $0x1d8] sm:$0xff]  ;;  %v6542_v5 = vpack.c.bf16 %v342_v57, %v338_v56  ;;  %p6011_p4 = pnand %p6010_p3, %p6004_p0 }
  0x37   :  { %4778 = vmatpush1.bf16.msra.mxu1 %v6474_v36  ;;  %4748 = vmatprep.subr.bf16.mxu0 %v6476_v37  ;;  %v353_v4 = vld [vmem:[%s8481_s2 + $0x1f8] sm:$0xff]  ;;  %v6546_v6 = vpack.c.bf16 %v344_v60, %v340_v58  ;;  %v6548_v8 = vpack.c.bf16 %v351_v1, %v347_v0  ;;  %v346_v9 = vld [vmem:[%s8481_s2 + $0x1c0] sm:$0xff]  ;;  %v348_v15 = vld [vmem:[%s8481_s2 + $0x1d0] sm:$0xff] }
  0x38   :  { %4780 = vmatprep.subr.bf16.mxu1 %v6488_v43  ;;  %v350_v11 = vld [vmem:[%s8481_s2 + $0x1e0] sm:$0xff]  ;;  %v6557_v14 = vpack.c.bf16 %v353_v4, %v349_v2  ;;  %v352_v16 = vld [vmem:[%s8481_s2 + $0x1f0] sm:$0xff] }
  0x39   :  { %v6566_v18 = vpack.c.bf16 %v350_v11, %v346_v9  ;;  %v6570_v19 = vpack.c.bf16 %v352_v16, %v348_v15  ;;  %v289_v20 = vld [vmem:[#allocation4] sm:$0x3]  ;;  %v99_v27 = vld [vmem:[%s8482_s3] sm:$0xf] }
  0x3a   :  { %4750 = vmatpush1.bf16.msra.mxu0 %v6506_v52  ;;  %v112_v32 = vrot.slane %v99_v27, %v111_v30  ;;  %v116_v33 = vrot.slane %v99_v27, %v115_v31 }
  0x3b   :  { %4782 = vmatpush1.bf16.msra.mxu1 %v6510_v53  ;;  %4752 = vmatprep.subr.bf16.mxu0 %v6512_v54 }
  0x3c   :  { %4784 = vmatprep.subr.bf16.mxu1 %v6524_v59 }
  0x3e   :  { %4754 = vmatpush1.bf16.msra.mxu0 %v6542_v5 }
  0x3f   :  { %4786 = vmatpush1.bf16.msra.mxu1 %v6546_v6  ;;  %4756 = vmatprep.subr.bf16.mxu0 %v6548_v8 }
  0x40   :  { %4788 = vmatprep.subr.bf16.mxu1 %v6557_v14 }
  0x42   :  { %4758 = vmatpush1.bf16.msra.mxu0 %v6566_v18 }
  0x43   :  { %4790 = vmatpush1.bf16.msra.mxu1 %v6570_v19  ;;  %4792 = vmatprep.subr.bf16.mxu0 %v6289_v38 }
  0x44   :  { %4824 = vmatprep.subr.bf16.mxu1 %v6300_v42 }
  0x45   :  { %419 = vmatmul.mubr.f32.vlgmr.msra.gmra.mrb[4].mxu0 %v289_v20 }
  0x46   :  { %490 = vmatmul.mubr.f32.vlgmr.msra.gmra.mrb[4].mxu1 %v289_v20  ;;  %4794 = vmatpush1.bf16.msra.mxu0 %v6320_v49 }
  0x47   :  { %4826 = vmatpush1.bf16.msra.mxu1 %v6323_v50  ;;  %4796 = vmatprep.subr.bf16.mxu0 %v6325_v51 }
  0x48   :  { %4828 = vmatprep.subr.bf16.mxu1 %v6337_v55  ;;  %655 = vmatprep.mubr.f32.mxu0 %v6027_v7 }
  0x49   :  { %726 = vmatprep.mubr.f32.mxu1 %v6027_v7 }
  0x4a   :  { %4798 = vmatpush1.bf16.msra.mxu0 %v6355_v61 }
  0x4b   :  { %4830 = vmatpush1.bf16.msra.mxu1 %v6359_v62  ;;  %4800 = vmatprep.subr.bf16.mxu0 %v6361_v63 }
  0x4c   :  { %4832 = vmatprep.subr.bf16.mxu1 %v6373_v3 }
  0x4e   :  { %4802 = vmatpush1.bf16.msra.mxu0 %v6393_v10 }
  0x4f   :  { %4834 = vmatpush1.bf16.msra.mxu1 %v6400_v12  ;;  %4804 = vmatprep.subr.bf16.mxu0 %v6402_v13 }
  0x50   :  { %4836 = vmatprep.subr.bf16.mxu1 %v6414_v17 }
  0x52   :  { %4806 = vmatpush1.bf16.msra.mxu0 %v6433_v23 }
  0x53   :  { %4838 = vmatpush1.bf16.msra.mxu1 %v6438_v24  ;;  %4808 = vmatprep.subr.bf16.mxu0 %v6440_v25 }
  0x54   :  { %4840 = vmatprep.subr.bf16.mxu1 %v6452_v29 }
  0x56   :  { %4810 = vmatpush1.bf16.msra.mxu0 %v6470_v35 }
  0x57   :  { %4842 = vmatpush1.bf16.msra.mxu1 %v6474_v36  ;;  %4812 = vmatprep.subr.bf16.mxu0 %v6476_v37 }
  0x58   :  { %4844 = vmatprep.subr.bf16.mxu1 %v6488_v43 }
  0x5a   :  { %4814 = vmatpush1.bf16.msra.mxu0 %v6506_v52 }
  0x5b   :  { %4846 = vmatpush1.bf16.msra.mxu1 %v6510_v53  ;;  %4816 = vmatprep.subr.bf16.mxu0 %v6512_v54 }
  0x5c   :  { %4848 = vmatprep.subr.bf16.mxu1 %v6524_v59 }
  0x5e   :  { %4818 = vmatpush1.bf16.msra.mxu0 %v6542_v5 }
  0x5f   :  { %4850 = vmatpush1.bf16.msra.mxu1 %v6546_v6  ;;  %4820 = vmatprep.subr.bf16.mxu0 %v6548_v8 }
  0x60   :  { %4852 = vmatprep.subr.bf16.mxu1 %v6557_v14 }
  0x62   :  { %4822 = vmatpush1.bf16.msra.mxu0 %v6566_v18 }
  0x63   :  { %4854 = vmatpush1.bf16.msra.mxu1 %v6570_v19  ;;  %4856 = vmatprep.subr.bf16.mxu0 %v6289_v38  ;;  %v104_v38 = vrot.slane %v99_v27, %v103_v26 }
  0x64   :  { %4888 = vmatprep.subr.bf16.mxu1 %v6300_v42  ;;  %v108_v42 = vrot.slane %v99_v27, %v107_v28 }
  0xf8   :  { %v187_v34 = vpop.f32.mrb[0].mxu0 }
  0xf9   :  { %v188_v39 = vadd.f32 %v187_v34, %v104_v38  ;;  %v189_v40 = vpop.f32.mrb[1].mxu0  ;;  %v264_v41 = vpop.f32.mrb[0].mxu1 }
  0xfa   :  { %v190_v44 = vadd.f32 %v189_v40, %v108_v42  ;;  %v265_v45 = vadd.f32 %v264_v41, %v112_v32  ;;  %v266_v46 = vpop.f32.mrb[1].mxu1 }
  0xfb   :  { %275 = vst [vmem:[#allocation2] sm:$0xff] %v188_v39  ;;  %v267_v47 = vadd.f32 %v266_v46, %v116_v33 }
  0xfc   :  { %276 = vst [vmem:[#allocation2 + $0x8] sm:$0xff] %v190_v44  ;;  %277 = vst [vmem:[#allocation2 + $0x10] sm:$0xff] %v265_v45  ;;  %v193_v48 = vpop.f32.mrb[2].mxu0 }
  0xfd   :  { %278 = vst [vmem:[#allocation2 + $0x18] sm:$0xff] %v267_v47  ;;  %v194_v56 = vadd.f32 %v193_v48, %v104_v38  ;;  %v195_v57 = vpop.f32.mrb[3].mxu0  ;;  %v270_v58 = vpop.f32.mrb[2].mxu1  ;;  %v513_v48 = vld [vmem:[#allocation5] sm:$0x3] }
  0xfe   :  { %v196_v60 = vadd.f32 %v195_v57, %v108_v42  ;;  %v271_v0 = vadd.f32 %v270_v58, %v112_v32  ;;  %v272_v1 = vpop.f32.mrb[3].mxu1 }
  0xff   :  { %279 = vst [vmem:[#allocation2 + $0x20] sm:$0xff] %v194_v56  ;;  %v273_v2 = vadd.f32 %v272_v1, %v116_v33 }
 0x100   :  { %280 = vst [vmem:[#allocation2 + $0x28] sm:$0xff] %v196_v60  ;;  %281 = vst [vmem:[#allocation2 + $0x30] sm:$0xff] %v271_v0 }
 0x101   :  { %282 = vst [vmem:[#allocation2 + $0x38] sm:$0xff] %v273_v2 }
 0x102   :  { %v285_v4 = vld [vmem:[#allocation2] sm:$0x3] }
 0x103   :  { %v286_v16 = vld [vmem:[#allocation2 + $0x8] sm:$0x3]  ;;  %v287_v38 = vld [vmem:[#allocation2 + $0x10] sm:$0x3] }
 0x104   :  { %v288_v32 = vld [vmem:[#allocation2 + $0x18] sm:$0x3] }
 0x118   :  { %v420_v9 = vpop.f32.mrb[4].mxu0 }
 0x119   :  { %v496_v11 = vadd.f32 %v420_v9, %v285_v4  ;;  %v491_v15 = vpop.f32.mrb[4].mxu1  ;;  %v422_v20 = vpop.f32.mrb[5].mxu0 }
 0x11a   :  { %v497_v21 = vadd.f32 %v422_v20, %v286_v16  ;;  %v493_v27 = vpop.f32.mrb[5].mxu1  ;;  %v498_v42 = vadd.f32 %v491_v15, %v287_v38 }
 0x11b   :  { %v500_v34 = vmul.f32 0.5, %v496_v11  ;;  %v499_v33 = vadd.f32 %v493_v27, %v288_v32  ;;  %v1036_v32 = vld [vmem:[%s8481_s2 + $0x28] sm:$0xff] }
 0x11c   :  { %v504_v39 = vmul.f32 0.5, %v497_v21 }
 0x11d   :  { %5843 = vtanh.f32 %v500_v34  ;;  %v509_v40 = vmul.f32 0.5, %v499_v33  ;;  %v1034_v33 = vld [vmem:[%s8481_s2 + $0x18] sm:$0xff] }
 0x11e   :  { %5845 = vtanh.f32 %v504_v39 }
 0x11f   :  { %5847 = vtanh.f32 %v498_v42  ;;  %v1032_v42 = vld [vmem:[%s8481_s2 + $0x8] sm:$0xff] }
 0x120   :  { %5849 = vtanh.f32 %v509_v40  ;;  %v6671_v40 = vpack.c.bf16 %v1036_v32, %v1032_v42  ;;  %v1069_v42 = vld [vmem:[%s8481_s2 + $0x130] sm:$0xff] }
 0x127   :  { %v5844_v41 = vpop.eup %5843 }
 0x128   :  { %v5846_v44 = vpop.eup %5845  ;;  %v502_v45 = vmul.f32 0.5, %v5844_v41  ;;  %v1038_v41 = vld [vmem:[%s8481_s2 + $0x38] sm:$0xff] }
 0x129   :  { %v506_v46 = vmul.f32 0.5, %v5846_v44  ;;  %v5848_v56 = vpop.eup %5847  ;;  %v1031_v44 = vld [vmem:[%s8481_s2] sm:$0xff] }
 0x12a   :  { %v503_v47 = vadd.f32 0.5, %v502_v45  ;;  %v5850_v1 = vpop.eup %5849  ;;  %v1035_v45 = vld [vmem:[%s8481_s2 + $0x20] sm:$0xff] }
 0x12b   :  { %v507_v57 = vadd.f32 0.5, %v506_v46  ;;  %v511_v2 = vmul.f32 0.5, %v5850_v1  ;;  %v6682_v46 = vpack.c.bf16 %v1038_v41, %v1034_v33  ;;  %v1072_v33 = vld [vmem:[%s8481_s2 + $0x148] sm:$0xff] }
 0x12c   :  { %v515_v58 = vmul.f32 %v5848_v56, %v503_v47  ;;  %v6684_v47 = vpack.c.bf16 %v1035_v45, %v1031_v44  ;;  %v1037_v56 = vld [vmem:[%s8481_s2 + $0x30] sm:$0xff]  ;;  %v1076_v41 = vld [vmem:[%s8481_s2 + $0x168] sm:$0xff]  ;;  %v1074_v44 = vld [vmem:[%s8481_s2 + $0x158] sm:$0xff] }
 0x12d   :  { %v514_v60 = vmul.f32 %v513_v48, %v507_v57  ;;  %v512_v4 = vadd.f32 0.5, %v511_v2  ;;  %v1033_v48 = vld [vmem:[%s8481_s2 + $0x10] sm:$0xff]  ;;  %v1046_v2 = vld [vmem:[%s8481_s2 + $0x78] sm:$0xff]  ;;  %v6851_v45 = vpack.c.bf16 %v1076_v41, %v1072_v33 }
 0x12e   :  { %v6693_v57 = vpack.c.bf16 %v1037_v56, %v1033_v48  ;;  %v1078_v48 = vld [vmem:[%s8481_s2 + $0x178] sm:$0xff]  ;;  %v1071_v56 = vld [vmem:[%s8481_s2 + $0x140] sm:$0xff] }
 0x12f   :  { %v516_v0 = vadd.f32 %v515_v58, %v514_v60  ;;  %v1040_v58 = vld [vmem:[%s8481_s2 + $0x48] sm:$0xff] }
 0x130   :  { %v1044_v60 = vld [vmem:[%s8481_s2 + $0x68] sm:$0xff] }
 0x131   :  { %5851 = vtanh.f32 %v516_v0  ;;  %519 = vst [vmem:[#allocation5] sm:$0x3] %v516_v0  ;;  %v1042_v0 = vld [vmem:[%s8481_s2 + $0x58] sm:$0xff]  ;;  %v6707_v1 = vpack.c.bf16 %v1044_v60, %v1040_v58  ;;  %v1075_v58 = vld [vmem:[%s8481_s2 + $0x160] sm:$0xff]  ;;  %v6862_v60 = vpack.c.bf16 %v1078_v48, %v1074_v44 }
 0x132   :  { %v774_v48 = vld [vmem:[#allocation2] sm:$0x30] }
 0x13b   :  { %v5852_v9 = vpop.eup %5851 }
 0x13c   :  { %v518_v11 = vmul.f32 %v5852_v9, %v512_v4  ;;  %v1039_v4 = vld [vmem:[%s8481_s2 + $0x40] sm:$0xff] }
 0x13d   :  { %v1043_v9 = vld [vmem:[%s8481_s2 + $0x60] sm:$0xff] }
 0x13e   :  { %520 = vst [vmem:[#allocation4] sm:$0x3] %v518_v11  ;;  %521 = vst [vmem:[#allocation3] sm:$0x3] %v518_v11  ;;  %v6718_v11 = vpack.c.bf16 %v1046_v2, %v1042_v0  ;;  %v6864_v0 = vpack.c.bf16 %v1075_v58, %v1071_v56  ;;  %v1073_v2 = vld [vmem:[%s8481_s2 + $0x150] sm:$0xff] }
 0x145   :  { %v526_v15 = vld [vmem:[#allocation4] sm:$0x3] }
 0x146   :  { %656 = vmatmul.mubr.f32.vlgmr.msra.gmra.mrb[6].mxu0 %v526_v15  ;;  %727 = vmatmul.mubr.f32.vlgmr.msra.gmra.mrb[6].mxu1 %v526_v15  ;;  %v6720_v15 = vpack.c.bf16 %v1043_v9, %v1039_v4  ;;  %v1077_v4 = vld [vmem:[%s8481_s2 + $0x170] sm:$0xff] }
 0x147   :  { %4858 = vmatpush1.bf16.msra.mxu0 %v6320_v49  ;;  %4890 = vmatpush1.bf16.msra.mxu1 %v6323_v50  ;;  %v6873_v9 = vpack.c.bf16 %v1077_v4, %v1073_v2  ;;  %v775_v4 = vld [vmem:[#allocation2 + $0x8] sm:$0x30] }
 0x148   :  { %4860 = vmatprep.subr.bf16.mxu0 %v6325_v51  ;;  %4892 = vmatprep.subr.bf16.mxu1 %v6337_v55 }
 0x149   :  { %907 = vmatprep.mubr.f32.mxu0 %v6027_v7  ;;  %978 = vmatprep.mubr.f32.mxu1 %v6027_v7 }
 0x14b   :  { %4862 = vmatpush1.bf16.msra.mxu0 %v6355_v61  ;;  %4894 = vmatpush1.bf16.msra.mxu1 %v6359_v62  ;;  %v522_v62 = vld [vmem:[#allocation2] sm:$0xc] }
 0x14c   :  { %4864 = vmatprep.subr.bf16.mxu0 %v6361_v63  ;;  %4896 = vmatprep.subr.bf16.mxu1 %v6373_v3 }
 0x14f   :  { %4866 = vmatpush1.bf16.msra.mxu0 %v6393_v10  ;;  %4898 = vmatpush1.bf16.msra.mxu1 %v6400_v12  ;;  %v523_v12 = vld [vmem:[#allocation2 + $0x8] sm:$0xc] }
 0x150   :  { %4868 = vmatprep.subr.bf16.mxu0 %v6402_v13  ;;  %4900 = vmatprep.subr.bf16.mxu1 %v6414_v17 }
 0x153   :  { %4870 = vmatpush1.bf16.msra.mxu0 %v6433_v23  ;;  %4902 = vmatpush1.bf16.msra.mxu1 %v6438_v24  ;;  %v524_v23 = vld [vmem:[#allocation2 + $0x10] sm:$0xc] }
 0x154   :  { %4872 = vmatprep.subr.bf16.mxu0 %v6440_v25  ;;  %4904 = vmatprep.subr.bf16.mxu1 %v6452_v29 }
 0x157   :  { %4874 = vmatpush1.bf16.msra.mxu0 %v6470_v35  ;;  %4906 = vmatpush1.bf16.msra.mxu1 %v6474_v36  ;;  %v525_v35 = vld [vmem:[#allocation2 + $0x18] sm:$0xc] }
 0x158   :  { %4876 = vmatprep.subr.bf16.mxu0 %v6476_v37  ;;  %4908 = vmatprep.subr.bf16.mxu1 %v6488_v43 }
 0x15b   :  { %4878 = vmatpush1.bf16.msra.mxu0 %v6506_v52  ;;  %4910 = vmatpush1.bf16.msra.mxu1 %v6510_v53  ;;  %v762_v53 = vld [vmem:[#allocation5] sm:$0x3] }
 0x15c   :  { %4880 = vmatprep.subr.bf16.mxu0 %v6512_v54  ;;  %4912 = vmatprep.subr.bf16.mxu1 %v6524_v59 }
 0x15f   :  { %4882 = vmatpush1.bf16.msra.mxu0 %v6542_v5  ;;  %4914 = vmatpush1.bf16.msra.mxu1 %v6546_v6 }
 0x160   :  { %4884 = vmatprep.subr.bf16.mxu0 %v6548_v8  ;;  %4916 = vmatprep.subr.bf16.mxu1 %v6557_v14  ;;  %v764_v14 = vrot.slane %v762_v53, 6  ;;  %v1059_v53 = vld [vmem:[%s8481_s2 + $0xe0] sm:$0xff] }
 0x163   :  { %4886 = vmatpush1.bf16.msra.mxu0 %v6566_v18  ;;  %4918 = vmatpush1.bf16.msra.mxu1 %v6570_v19 }
 0x164   :  { %4920 = vmatprep.subr.bf16.mxu0 %v6671_v40  ;;  %4952 = vmatprep.subr.bf16.mxu1 %v6682_v46 }
 0x219   :  { %v657_v49 = vpop.f32.mrb[6].mxu0  ;;  %v728_v50 = vpop.f32.mrb[6].mxu1 }
 0x21a   :  { %v737_v51 = vrot.slane %v657_v49, 6  ;;  %v659_v55 = vpop.f32.mrb[7].mxu0  ;;  %v730_v61 = vpop.f32.mrb[7].mxu1  ;;  %v739_v10 = vrot.slane %v728_v50, 6  ;;  %v1041_v49 = vld [vmem:[%s8481_s2 + $0x50] sm:$0xff] }
 0x21b   :  { %v738_v63 = vrot.slane %v659_v55, 6  ;;  %v740_v29 = vrot.slane %v730_v61, 6  ;;  %v1045_v50 = vld [vmem:[%s8481_s2 + $0x70] sm:$0xff]  ;;  %v1048_v55 = vld [vmem:[%s8481_s2 + $0x88] sm:$0xff] }
 0x21c   :  { %v745_v3 = vadd.f32 %v737_v51, %v522_v62  ;;  %v747_v25 = vadd.f32 %v739_v10, %v524_v23  ;;  %v6729_v51 = vpack.c.bf16 %v1045_v50, %v1041_v49  ;;  %v1052_v61 = vld [vmem:[%s8481_s2 + $0xa8] sm:$0xff]  ;;  %v1050_v62 = vld [vmem:[%s8481_s2 + $0x98] sm:$0xff]  ;;  %v1047_v10 = vld [vmem:[%s8481_s2 + $0x80] sm:$0xff] }
 0x21d   :  { %v746_v13 = vadd.f32 %v738_v63, %v523_v12  ;;  %v748_v36 = vadd.f32 %v740_v29, %v525_v35  ;;  %v6743_v63 = vpack.c.bf16 %v1052_v61, %v1048_v55  ;;  %v1051_v12 = vld [vmem:[%s8481_s2 + $0xa0] sm:$0xff]  ;;  %v1049_v23 = vld [vmem:[%s8481_s2 + $0x90] sm:$0xff]  ;;  %v1056_v29 = vld [vmem:[%s8481_s2 + $0xc8] sm:$0xff] }
 0x21e   :  { %v749_v17 = vmul.f32 0.5, %v745_v3  ;;  %v1054_v3 = vld [vmem:[%s8481_s2 + $0xb8] sm:$0xff]  ;;  %v1060_v35 = vld [vmem:[%s8481_s2 + $0xe8] sm:$0xff] }
 0x21f   :  { %v753_v24 = vmul.f32 0.5, %v746_v13  ;;  %v758_v37 = vmul.f32 0.5, %v748_v36  ;;  %v6754_v13 = vpack.c.bf16 %v1054_v3, %v1050_v62  ;;  %v1058_v36 = vld [vmem:[%s8481_s2 + $0xd8] sm:$0xff]  ;;  %v1080_v49 = vld [vmem:[%s8481_s2 + $0x188] sm:$0xff]  ;;  %v1079_v3 = vld [vmem:[%s8481_s2 + $0x180] sm:$0xff] }
 0x220   :  { %5853 = vtanh.f32 %v749_v17  ;;  %v6756_v17 = vpack.c.bf16 %v1051_v12, %v1047_v10  ;;  %v1084_v50 = vld [vmem:[%s8481_s2 + $0x1a8] sm:$0xff]  ;;  %v1082_v55 = vld [vmem:[%s8481_s2 + $0x198] sm:$0xff]  ;;  %v1083_v10 = vld [vmem:[%s8481_s2 + $0x1a0] sm:$0xff] }
 0x221   :  { %5855 = vtanh.f32 %v753_v24  ;;  %v1053_v24 = vld [vmem:[%s8481_s2 + $0xb0] sm:$0xff]  ;;  %v6887_v61 = vpack.c.bf16 %v1084_v50, %v1080_v49  ;;  %v1086_v62 = vld [vmem:[%s8481_s2 + $0x1b8] sm:$0xff] }
 0x222   :  { %5857 = vtanh.f32 %v747_v25  ;;  %v6765_v25 = vpack.c.bf16 %v1053_v24, %v1049_v23  ;;  %v6898_v12 = vpack.c.bf16 %v1086_v62, %v1082_v55  ;;  %v6900_v23 = vpack.c.bf16 %v1083_v10, %v1079_v3  ;;  %v1081_v24 = vld [vmem:[%s8481_s2 + $0x190] sm:$0xff] }
 0x223   :  { %5859 = vtanh.f32 %v758_v37  ;;  %v6779_v37 = vpack.c.bf16 %v1060_v35, %v1056_v29  ;;  %v1085_v29 = vld [vmem:[%s8481_s2 + $0x1b0] sm:$0xff] }
 0x224   :  { %v6909_v35 = vpack.c.bf16 %v1085_v29, %v1081_v24  ;;  %v776_v55 = vld [vmem:[#allocation2 + $0x10] sm:$0x30]  ;;  %v777_v24 = vld [vmem:[#allocation2 + $0x18] sm:$0x30] }
 0x22a   :  { %v5854_v43 = vpop.eup %5853 }
 0x22b   :  { %v5856_v52 = vpop.eup %5855  ;;  %v751_v54 = vmul.f32 0.5, %v5854_v43  ;;  %v1062_v43 = vld [vmem:[%s8481_s2 + $0xf8] sm:$0xff] }
 0x22c   :  { %v755_v59 = vmul.f32 0.5, %v5856_v52  ;;  %v5858_v6 = vpop.eup %5857  ;;  %v1055_v52 = vld [vmem:[%s8481_s2 + $0xc0] sm:$0xff] }
 0x22d   :  { %v752_v5 = vadd.f32 0.5, %v751_v54  ;;  %v5860_v20 = vpop.eup %5859  ;;  %v6790_v54 = vpack.c.bf16 %v1062_v43, %v1058_v36  ;;  %v1088_v36 = vld [vmem:[%s8481_s2 + $0x1c8] sm:$0xff] }
 0x22e   :  { %v756_v8 = vadd.f32 0.5, %v755_v59  ;;  %v760_v21 = vmul.f32 0.5, %v5860_v20  ;;  %v6792_v59 = vpack.c.bf16 %v1059_v53, %v1055_v52  ;;  %v1070_v20 = vld [vmem:[%s8481_s2 + $0x138] sm:$0xff]  ;;  %v1092_v43 = vld [vmem:[%s8481_s2 + $0x1e8] sm:$0xff] }
 0x22f   :  { %v767_v18 = vmul.f32 %v5858_v6, %v752_v5  ;;  %v1057_v5 = vld [vmem:[%s8481_s2 + $0xd0] sm:$0xff]  ;;  %v1090_v52 = vld [vmem:[%s8481_s2 + $0x1d8] sm:$0xff]  ;;  %v6923_v53 = vpack.c.bf16 %v1092_v43, %v1088_v36 }
 0x230   :  { %v766_v19 = vmul.f32 %v764_v14, %v756_v8  ;;  %v761_v27 = vadd.f32 0.5, %v760_v21  ;;  %v1061_v6 = vld [vmem:[%s8481_s2 + $0xf0] sm:$0xff]  ;;  %v1064_v14 = vld [vmem:[%s8481_s2 + $0x108] sm:$0xff]  ;;  %v1063_v21 = vld [vmem:[%s8481_s2 + $0x100] sm:$0xff] }
 0x231   :  { %v6801_v8 = vpack.c.bf16 %v1061_v6, %v1057_v5  ;;  %v1094_v5 = vld [vmem:[%s8481_s2 + $0x1f8] sm:$0xff]  ;;  %v1087_v6 = vld [vmem:[%s8481_s2 + $0x1c0] sm:$0xff] }
 0x232   :  { %v768_v16 = vadd.f32 %v767_v18, %v766_v19  ;;  %v1068_v18 = vld [vmem:[%s8481_s2 + $0x128] sm:$0xff]  ;;  %v1066_v19 = vld [vmem:[%s8481_s2 + $0x118] sm:$0xff] }
 0x234   :  { %5861 = vtanh.f32 %v768_v16  ;;  %771 = vst [vmem:[#allocation5 - $0x2] sm:$0xc] %v768_v16  ;;  %v6815_v16 = vpack.c.bf16 %v1068_v18, %v1064_v14  ;;  %v1091_v14 = vld [vmem:[%s8481_s2 + $0x1e0] sm:$0xff]  ;;  %v6934_v18 = vpack.c.bf16 %v1094_v5, %v1090_v52 }
 0x23b   :  { %v1014_v5 = vld [vmem:[#allocation5] sm:$0x3] }
 0x23e   :  { %v5862_v34 = vpop.eup %5861 }
 0x23f   :  { %v770_v38 = vmul.f32 %v5862_v34, %v761_v27  ;;  %v1067_v27 = vld [vmem:[%s8481_s2 + $0x120] sm:$0xff]  ;;  %v6826_v34 = vpack.c.bf16 %v1070_v20, %v1066_v19  ;;  %v6936_v19 = vpack.c.bf16 %v1091_v14, %v1087_v6  ;;  %v1089_v20 = vld [vmem:[%s8481_s2 + $0x1d0] sm:$0xff] }
 0x241   :  { %772 = vst [vmem:[#allocation4 - $0x2] sm:$0xc] %v770_v38  ;;  %773 = vst [vmem:[#allocation3] sm:$0xc] %v770_v38  ;;  %v6828_v38 = vpack.c.bf16 %v1067_v27, %v1063_v21  ;;  %v1093_v21 = vld [vmem:[%s8481_s2 + $0x1f0] sm:$0xff] }
 0x242   :  { %v6945_v27 = vpack.c.bf16 %v1093_v21, %v1089_v20 }
 0x248   :  { %v778_v39 = vld [vmem:[#allocation4] sm:$0x3] }
 0x249   :  { %908 = vmatmul.mubr.f32.vlgmr.msra.gmra.mrb[8].mxu0 %v778_v39  ;;  %979 = vmatmul.mubr.f32.vlgmr.msra.gmra.mrb[8].mxu1 %v778_v39  ;;  %v1065_v39 = vld [vmem:[%s8481_s2 + $0x110] sm:$0xff] }
 0x24a   :  { %1159 = vmatprep.mubr.f32.mxu0 %v6027_v7  ;;  %1230 = vmatprep.mubr.f32.mxu1 %v6027_v7  ;;  %v6837_v32 = vpack.c.bf16 %v1069_v42, %v1065_v39 }
 0x24b   :  { %4922 = vmatpush1.bf16.msra.mxu0 %v6684_v47  ;;  %4954 = vmatpush1.bf16.msra.mxu1 %v6693_v57 }
 0x24c   :  { %4924 = vmatprep.subr.bf16.mxu0 %v6707_v1  ;;  %4956 = vmatprep.subr.bf16.mxu1 %v6718_v11 }
 0x24f   :  { %4926 = vmatpush1.bf16.msra.mxu0 %v6720_v15  ;;  %4958 = vmatpush1.bf16.msra.mxu1 %v6729_v51 }
 0x250   :  { %4928 = vmatprep.subr.bf16.mxu0 %v6743_v63  ;;  %4960 = vmatprep.subr.bf16.mxu1 %v6754_v13 }
 0x253   :  { %4930 = vmatpush1.bf16.msra.mxu0 %v6756_v17  ;;  %4962 = vmatpush1.bf16.msra.mxu1 %v6765_v25 }
 0x254   :  { %4932 = vmatprep.subr.bf16.mxu0 %v6779_v37  ;;  %4964 = vmatprep.subr.bf16.mxu1 %v6790_v54 }
 0x257   :  { %4934 = vmatpush1.bf16.msra.mxu0 %v6792_v59  ;;  %4966 = vmatpush1.bf16.msra.mxu1 %v6801_v8 }
 0x258   :  { %4936 = vmatprep.subr.bf16.mxu0 %v6815_v16  ;;  %4968 = vmatprep.subr.bf16.mxu1 %v6826_v34 }
 0x25b   :  { %4938 = vmatpush1.bf16.msra.mxu0 %v6828_v38  ;;  %4970 = vmatpush1.bf16.msra.mxu1 %v6837_v32 }
 0x25c   :  { %4940 = vmatprep.subr.bf16.mxu0 %v6851_v45  ;;  %4972 = vmatprep.subr.bf16.mxu1 %v6862_v60 }
 0x25f   :  { %4942 = vmatpush1.bf16.msra.mxu0 %v6864_v0  ;;  %4974 = vmatpush1.bf16.msra.mxu1 %v6873_v9 }
 0x260   :  { %4944 = vmatprep.subr.bf16.mxu0 %v6887_v61  ;;  %4976 = vmatprep.subr.bf16.mxu1 %v6898_v12 }
 0x263   :  { %4946 = vmatpush1.bf16.msra.mxu0 %v6900_v23  ;;  %4978 = vmatpush1.bf16.msra.mxu1 %v6909_v35 }
 0x264   :  { %4948 = vmatprep.subr.bf16.mxu0 %v6923_v53  ;;  %4980 = vmatprep.subr.bf16.mxu1 %v6934_v18 }
 0x267   :  { %4950 = vmatpush1.bf16.msra.mxu0 %v6936_v19  ;;  %4982 = vmatpush1.bf16.msra.mxu1 %v6945_v27 }
 0x268   :  { %4984 = vmatprep.subr.bf16.mxu0 %v6671_v40  ;;  %5016 = vmatprep.subr.bf16.mxu1 %v6682_v46 }
 0x31c   :  { %v909_v39 = vpop.f32.mrb[8].mxu0  ;;  %v980_v42 = vpop.f32.mrb[8].mxu1 }
 0x31d   :  { %v989_v33 = vrot.slane %v909_v39, 4  ;;  %v911_v41 = vpop.f32.mrb[9].mxu0  ;;  %v982_v44 = vpop.f32.mrb[9].mxu1  ;;  %v991_v2 = vrot.slane %v980_v42, 4  ;;  %v1016_v42 = vrot.slane %v1014_v5, 4 }
 0x31e   :  { %v990_v56 = vrot.slane %v911_v41, 4  ;;  %v992_v10 = vrot.slane %v982_v44, 4 }
 0x31f   :  { %v997_v58 = vadd.f32 %v989_v33, %v774_v48  ;;  %v999_v3 = vadd.f32 %v991_v2, %v776_v55 }
 0x320   :  { %v998_v49 = vadd.f32 %v990_v56, %v775_v4  ;;  %v1000_v29 = vadd.f32 %v992_v10, %v777_v24  ;;  %v1026_v24 = vld [vmem:[#allocation2] sm:$0xc0] }
 0x321   :  { %v1001_v50 = vmul.f32 0.5, %v997_v58 }
 0x322   :  { %v1005_v62 = vmul.f32 0.5, %v998_v49  ;;  %v1010_v36 = vmul.f32 0.5, %v1000_v29 }
 0x323   :  { %5863 = vtanh.f32 %v1001_v50 }
 0x324   :  { %5865 = vtanh.f32 %v1005_v62 }
 0x325   :  { %5867 = vtanh.f32 %v999_v3 }
 0x326   :  { %5869 = vtanh.f32 %v1010_v36 }
 0x32d   :  { %v5864_v43 = vpop.eup %5863 }
 0x32e   :  { %v5866_v52 = vpop.eup %5865  ;;  %v1003_v6 = vmul.f32 0.5, %v5864_v43 }
 0x32f   :  { %v1007_v14 = vmul.f32 0.5, %v5866_v52  ;;  %v5868_v21 = vpop.eup %5867  ;;  %v1027_v52 = vld [vmem:[#allocation2 + $0x8] sm:$0xc0] }
 0x330   :  { %v1004_v20 = vadd.f32 0.5, %v1003_v6  ;;  %v5870_v44 = vpop.eup %5869 }
 0x331   :  { %v1008_v39 = vadd.f32 0.5, %v1007_v14  ;;  %v1012_v56 = vmul.f32 0.5, %v5870_v44  ;;  %v1028_v14 = vld [vmem:[#allocation2 + $0x10] sm:$0xc0] }
 0x332   :  { %v1019_v33 = vmul.f32 %v5868_v21, %v1004_v20 }
 0x333   :  { %v1018_v41 = vmul.f32 %v1016_v42, %v1008_v39  ;;  %v1013_v58 = vadd.f32 0.5, %v1012_v56  ;;  %v1029_v42 = vld [vmem:[#allocation2 + $0x18] sm:$0xc0] }
 0x335   :  { %v1020_v48 = vadd.f32 %v1019_v33, %v1018_v41 }
 0x337   :  { %5871 = vtanh.f32 %v1020_v48  ;;  %1023 = vst [vmem:[#allocation5 - $0x4] sm:$0x30] %v1020_v48 }
 0x33e   :  { %v1266_v56 = vld [vmem:[#allocation5] sm:$0x3] }
 0x341   :  { %v5872_v2 = vpop.eup %5871 }
 0x342   :  { %v1022_v4 = vmul.f32 %v5872_v2, %v1013_v58 }
 0x344   :  { %1024 = vst [vmem:[#allocation4 - $0x4] sm:$0x30] %v1022_v4  ;;  %1025 = vst [vmem:[#allocation3] sm:$0x30] %v1022_v4 }
 0x34b   :  { %v1030_v49 = vld [vmem:[#allocation4] sm:$0x3] }
 0x34c   :  { %1160 = vmatmul.mubr.f32.vlgmr.msra.gmra.mrb[10].mxu0 %v1030_v49  ;;  %1231 = vmatmul.mubr.f32.vlgmr.msra.gmra.mrb[10].mxu1 %v1030_v49 }
 0x34d   :  { %4986 = vmatpush1.bf16.msra.mxu0 %v6684_v47  ;;  %5018 = vmatpush1.bf16.msra.mxu1 %v6693_v57 }
 0x34e   :  { %4988 = vmatprep.subr.bf16.mxu0 %v6707_v1  ;;  %5020 = vmatprep.subr.bf16.mxu1 %v6718_v11 }
 0x34f   :  { %1411 = vmatprep.mubr.f32.mxu0 %v6027_v7  ;;  %1482 = vmatprep.mubr.f32.mxu1 %v6027_v7 }
 0x351   :  { %4990 = vmatpush1.bf16.msra.mxu0 %v6720_v15  ;;  %5022 = vmatpush1.bf16.msra.mxu1 %v6729_v51 }
 0x352   :  { %4992 = vmatprep.subr.bf16.mxu0 %v6743_v63  ;;  %5024 = vmatprep.subr.bf16.mxu1 %v6754_v13 }
 0x355   :  { %4994 = vmatpush1.bf16.msra.mxu0 %v6756_v17  ;;  %5026 = vmatpush1.bf16.msra.mxu1 %v6765_v25 }
 0x356   :  { %4996 = vmatprep.subr.bf16.mxu0 %v6779_v37  ;;  %5028 = vmatprep.subr.bf16.mxu1 %v6790_v54 }
 0x359   :  { %4998 = vmatpush1.bf16.msra.mxu0 %v6792_v59  ;;  %5030 = vmatpush1.bf16.msra.mxu1 %v6801_v8 }
 0x35a   :  { %5000 = vmatprep.subr.bf16.mxu0 %v6815_v16  ;;  %5032 = vmatprep.subr.bf16.mxu1 %v6826_v34 }
 0x35d   :  { %5002 = vmatpush1.bf16.msra.mxu0 %v6828_v38  ;;  %5034 = vmatpush1.bf16.msra.mxu1 %v6837_v32 }
 0x35e   :  { %5004 = vmatprep.subr.bf16.mxu0 %v6851_v45  ;;  %5036 = vmatprep.subr.bf16.mxu1 %v6862_v60 }
 0x361   :  { %5006 = vmatpush1.bf16.msra.mxu0 %v6864_v0  ;;  %5038 = vmatpush1.bf16.msra.mxu1 %v6873_v9 }
 0x362   :  { %5008 = vmatprep.subr.bf16.mxu0 %v6887_v61  ;;  %5040 = vmatprep.subr.bf16.mxu1 %v6898_v12 }
 0x365   :  { %5010 = vmatpush1.bf16.msra.mxu0 %v6900_v23  ;;  %5042 = vmatpush1.bf16.msra.mxu1 %v6909_v35 }
 0x366   :  { %5012 = vmatprep.subr.bf16.mxu0 %v6923_v53  ;;  %5044 = vmatprep.subr.bf16.mxu1 %v6934_v18 }
 0x369   :  { %5014 = vmatpush1.bf16.msra.mxu0 %v6936_v19  ;;  %5046 = vmatpush1.bf16.msra.mxu1 %v6945_v27 }
 0x36a   :  { %5048 = vmatprep.subr.bf16.mxu0 %v6671_v40  ;;  %5080 = vmatprep.subr.bf16.mxu1 %v6682_v46 }
 0x41f   :  { %v1161_v50 = vpop.f32.mrb[10].mxu0  ;;  %v1232_v55 = vpop.f32.mrb[10].mxu1 }
 0x420   :  { %v1241_v62 = vrot.slane %v1161_v50, 2  ;;  %v1163_v3 = vpop.f32.mrb[11].mxu0  ;;  %v1234_v10 = vpop.f32.mrb[11].mxu1  ;;  %v1243_v43 = vrot.slane %v1232_v55, 2  ;;  %v1268_v55 = vrot.slane %v1266_v56, 2 }
 0x421   :  { %v1242_v29 = vrot.slane %v1163_v3, 2  ;;  %v1244_v39 = vrot.slane %v1234_v10, 2 }
 0x422   :  { %v1249_v36 = vadd.f32 %v1241_v62, %v1026_v24  ;;  %v1251_v21 = vadd.f32 %v1243_v43, %v1028_v14 }
 0x423   :  { %v1250_v5 = vadd.f32 %v1242_v29, %v1027_v52  ;;  %v1252_v33 = vadd.f32 %v1244_v39, %v1029_v42  ;;  %v1279_v39 = vld [vmem:[#allocation2 + $0x28] sm:$0x3] }
 0x424   :  { %v1253_v6 = vmul.f32 0.5, %v1249_v36 }
 0x425   :  { %v1257_v20 = vmul.f32 0.5, %v1250_v5  ;;  %v1262_v41 = vmul.f32 0.5, %v1252_v33 }
 0x426   :  { %5873 = vtanh.f32 %v1253_v6  ;;  %v1278_v6 = vld [vmem:[#allocation2 + $0x20] sm:$0x3] }
 0x427   :  { %5875 = vtanh.f32 %v1257_v20 }
 0x428   :  { %5877 = vtanh.f32 %v1251_v21 }
 0x429   :  { %5879 = vtanh.f32 %v1262_v41 }
 0x430   :  { %v5874_v48 = vpop.eup %5873 }
 0x431   :  { %v5876_v44 = vpop.eup %5875  ;;  %v1255_v58 = vmul.f32 0.5, %v5874_v48 }
 0x432   :  { %v1259_v2 = vmul.f32 0.5, %v5876_v44  ;;  %v5878_v49 = vpop.eup %5877  ;;  %v1280_v44 = vld [vmem:[#allocation2 + $0x30] sm:$0x3] }
 0x433   :  { %v1256_v4 = vadd.f32 0.5, %v1255_v58  ;;  %v5880_v10 = vpop.eup %5879 }
 0x434   :  { %v1260_v50 = vadd.f32 0.5, %v1259_v2  ;;  %v1264_v29 = vmul.f32 0.5, %v5880_v10  ;;  %v1281_v2 = vld [vmem:[#allocation2 + $0x38] sm:$0x3] }
 0x435   :  { %v1271_v62 = vmul.f32 %v5878_v49, %v1256_v4 }
 0x436   :  { %v1270_v3 = vmul.f32 %v1268_v55, %v1260_v50  ;;  %v1265_v36 = vadd.f32 0.5, %v1264_v29 }
 0x438   :  { %v1272_v24 = vadd.f32 %v1271_v62, %v1270_v3 }
 0x43a   :  { %5881 = vtanh.f32 %v1272_v24  ;;  %1275 = vst [vmem:[#allocation5 - $0x6] sm:$0xc0] %v1272_v24 }
 0x441   :  { %v1506_v10 = vld [vmem:[#allocation5] sm:$0x3] }
 0x444   :  { %v5882_v43 = vpop.eup %5881 }
 0x445   :  { %v1274_v52 = vmul.f32 %v5882_v43, %v1265_v36 }
 0x447   :  { %1276 = vst [vmem:[#allocation4 - $0x6] sm:$0xc0] %v1274_v52  ;;  %1277 = vst [vmem:[#allocation3] sm:$0xc0] %v1274_v52 }
 0x44e   :  { %v1282_v5 = vld [vmem:[#allocation4] sm:$0x3] }
 0x44f   :  { %1412 = vmatmul.mubr.f32.vlgmr.msra.gmra.mrb[12].mxu0 %v1282_v5  ;;  %1483 = vmatmul.mubr.f32.vlgmr.msra.gmra.mrb[12].mxu1 %v1282_v5 }
 0x450   :  { %5050 = vmatpush1.bf16.msra.mxu0 %v6684_v47  ;;  %5082 = vmatpush1.bf16.msra.mxu1 %v6693_v57 }
 0x451   :  { %5052 = vmatprep.subr.bf16.mxu0 %v6707_v1  ;;  %5084 = vmatprep.subr.bf16.mxu1 %v6718_v11 }
 0x452   :  { %1648 = vmatprep.mubr.f32.mxu0 %v6027_v7  ;;  %1719 = vmatprep.mubr.f32.mxu1 %v6027_v7 }
 0x454   :  { %5054 = vmatpush1.bf16.msra.mxu0 %v6720_v15  ;;  %5086 = vmatpush1.bf16.msra.mxu1 %v6729_v51 }
 0x455   :  { %5056 = vmatprep.subr.bf16.mxu0 %v6743_v63  ;;  %5088 = vmatprep.subr.bf16.mxu1 %v6754_v13 }
 0x458   :  { %5058 = vmatpush1.bf16.msra.mxu0 %v6756_v17  ;;  %5090 = vmatpush1.bf16.msra.mxu1 %v6765_v25 }
 0x459   :  { %5060 = vmatprep.subr.bf16.mxu0 %v6779_v37  ;;  %5092 = vmatprep.subr.bf16.mxu1 %v6790_v54 }
 0x45c   :  { %5062 = vmatpush1.bf16.msra.mxu0 %v6792_v59  ;;  %5094 = vmatpush1.bf16.msra.mxu1 %v6801_v8 }
 0x45d   :  { %5064 = vmatprep.subr.bf16.mxu0 %v6815_v16  ;;  %5096 = vmatprep.subr.bf16.mxu1 %v6826_v34 }
 0x460   :  { %5066 = vmatpush1.bf16.msra.mxu0 %v6828_v38  ;;  %5098 = vmatpush1.bf16.msra.mxu1 %v6837_v32 }
 0x461   :  { %5068 = vmatprep.subr.bf16.mxu0 %v6851_v45  ;;  %5100 = vmatprep.subr.bf16.mxu1 %v6862_v60 }
 0x464   :  { %5070 = vmatpush1.bf16.msra.mxu0 %v6864_v0  ;;  %5102 = vmatpush1.bf16.msra.mxu1 %v6873_v9 }
 0x465   :  { %5072 = vmatprep.subr.bf16.mxu0 %v6887_v61  ;;  %5104 = vmatprep.subr.bf16.mxu1 %v6898_v12 }
 0x468   :  { %5074 = vmatpush1.bf16.msra.mxu0 %v6900_v23  ;;  %5106 = vmatpush1.bf16.msra.mxu1 %v6909_v35 }
 0x469   :  { %5076 = vmatprep.subr.bf16.mxu0 %v6923_v53  ;;  %5108 = vmatprep.subr.bf16.mxu1 %v6934_v18 }
 0x46c   :  { %5078 = vmatpush1.bf16.msra.mxu0 %v6936_v19  ;;  %5110 = vmatpush1.bf16.msra.mxu1 %v6945_v27 }
 0x46d   :  { %5112 = vmatprep.subr.bf16.mxu0 %v6671_v40  ;;  %5144 = vmatprep.subr.bf16.mxu1 %v6682_v46 }
 0x522   :  { %v1413_v14 = vpop.f32.mrb[12].mxu0  ;;  %v1484_v20 = vpop.f32.mrb[12].mxu1 }
 0x523   :  { %v1489_v21 = vadd.f32 %v1413_v14, %v1278_v6  ;;  %v1415_v42 = vpop.f32.mrb[13].mxu0  ;;  %v1486_v33 = vpop.f32.mrb[13].mxu1  ;;  %v1491_v58 = vadd.f32 %v1484_v20, %v1280_v44 }
 0x524   :  { %v1490_v41 = vadd.f32 %v1415_v42, %v1279_v39  ;;  %v1492_v4 = vadd.f32 %v1486_v33, %v1281_v2  ;;  %v2029_v2 = vld [vmem:[%s8481_s2 + $0x28] sm:$0xff] }
 0x525   :  { %v1493_v48 = vmul.f32 0.5, %v1489_v21 }
 0x526   :  { %v1497_v56 = vmul.f32 0.5, %v1490_v41  ;;  %v1502_v40 = vmul.f32 0.5, %v1492_v4  ;;  %v2027_v4 = vld [vmem:[%s8481_s2 + $0x18] sm:$0xff] }
 0x527   :  { %5883 = vtanh.f32 %v1493_v48 }
 0x528   :  { %5885 = vtanh.f32 %v1497_v56 }
 0x529   :  { %5887 = vtanh.f32 %v1491_v58  ;;  %v2025_v58 = vld [vmem:[%s8481_s2 + $0x8] sm:$0xff] }
 0x52a   :  { %5889 = vtanh.f32 %v1502_v40  ;;  %v5175_v40 = vpack.c.bf16 %v2029_v2, %v2025_v58  ;;  %v2062_v58 = vld [vmem:[%s8481_s2 + $0x130] sm:$0xff] }
 0x531   :  { %v5884_v49 = vpop.eup %5883 }
 0x532   :  { %v5886_v46 = vpop.eup %5885  ;;  %v1495_v50 = vmul.f32 0.5, %v5884_v49  ;;  %v2031_v49 = vld [vmem:[%s8481_s2 + $0x38] sm:$0xff] }
 0x533   :  { %v1499_v55 = vmul.f32 0.5, %v5886_v46  ;;  %v5888_v3 = vpop.eup %5887  ;;  %v2024_v46 = vld [vmem:[%s8481_s2] sm:$0xff] }
 0x534   :  { %v1496_v62 = vadd.f32 0.5, %v1495_v50  ;;  %v5890_v52 = vpop.eup %5889  ;;  %v2028_v50 = vld [vmem:[%s8481_s2 + $0x20] sm:$0xff] }
 0x535   :  { %v1500_v24 = vadd.f32 0.5, %v1499_v55  ;;  %v1504_v5 = vmul.f32 0.5, %v5890_v52  ;;  %v5207_v55 = vpack.c.bf16 %v2031_v49, %v2027_v4  ;;  %v2065_v4 = vld [vmem:[%s8481_s2 + $0x148] sm:$0xff]  ;;  %v2067_v49 = vld [vmem:[%s8481_s2 + $0x158] sm:$0xff] }
 0x536   :  { %v1508_v29 = vmul.f32 %v5888_v3, %v1496_v62  ;;  %v5177_v62 = vpack.c.bf16 %v2028_v50, %v2024_v46  ;;  %v2026_v3 = vld [vmem:[%s8481_s2 + $0x10] sm:$0xff]  ;;  %v2071_v50 = vld [vmem:[%s8481_s2 + $0x178] sm:$0xff] }
 0x537   :  { %v1507_v36 = vmul.f32 %v1506_v10, %v1500_v24  ;;  %v1505_v6 = vadd.f32 0.5, %v1504_v5  ;;  %v2030_v24 = vld [vmem:[%s8481_s2 + $0x30] sm:$0xff]  ;;  %v2039_v5 = vld [vmem:[%s8481_s2 + $0x78] sm:$0xff] }
 0x538   :  { %v5209_v10 = vpack.c.bf16 %v2030_v24, %v2026_v3  ;;  %v5227_v3 = vpack.c.bf16 %v2071_v50, %v2067_v49 }
 0x539   :  { %v1509_v43 = vadd.f32 %v1508_v29, %v1507_v36  ;;  %v2033_v29 = vld [vmem:[%s8481_s2 + $0x48] sm:$0xff] }
 0x53a   :  { %v2037_v36 = vld [vmem:[%s8481_s2 + $0x68] sm:$0xff] }
 0x53b   :  { %5891 = vtanh.f32 %v1509_v43  ;;  %1512 = vst [vmem:[#allocation5] sm:$0x3] %v1509_v43  ;;  %v2035_v43 = vld [vmem:[%s8481_s2 + $0x58] sm:$0xff]  ;;  %v5179_v52 = vpack.c.bf16 %v2037_v36, %v2033_v29  ;;  %v2070_v29 = vld [vmem:[%s8481_s2 + $0x170] sm:$0xff] }
 0x545   :  { %v5892_v14 = vpop.eup %5891 }
 0x546   :  { %v1511_v20 = vmul.f32 %v5892_v14, %v1505_v6  ;;  %v2032_v6 = vld [vmem:[%s8481_s2 + $0x40] sm:$0xff] }
 0x547   :  { %v2036_v14 = vld [vmem:[%s8481_s2 + $0x60] sm:$0xff] }
 0x548   :  { %1513 = vst [vmem:[#allocation4] sm:$0x3] %v1511_v20  ;;  %1514 = vst [vmem:[#allocation3 + $0x8] sm:$0x3] %v1511_v20  ;;  %v5211_v20 = vpack.c.bf16 %v2039_v5, %v2035_v43  ;;  %v2073_v43 = vld [vmem:[%s8481_s2 + $0x188] sm:$0xff]  ;;  %v2075_v5 = vld [vmem:[%s8481_s2 + $0x198] sm:$0xff] }
 0x54f   :  { %v1519_v21 = vld [vmem:[#allocation4] sm:$0x3] }
 0x550   :  { %1649 = vmatmul.mubr.f32.vlgmr.msra.gmra.mrb[14].mxu0 %v1519_v21  ;;  %1720 = vmatmul.mubr.f32.vlgmr.msra.gmra.mrb[14].mxu1 %v1519_v21  ;;  %v5181_v21 = vpack.c.bf16 %v2036_v14, %v2032_v6  ;;  %v2079_v14 = vld [vmem:[%s8481_s2 + $0x1b8] sm:$0xff] }
 0x551   :  { %5114 = vmatpush1.bf16.msra.mxu0 %v6684_v47  ;;  %5146 = vmatpush1.bf16.msra.mxu1 %v6693_v57 }
 0x552   :  { %5116 = vmatprep.subr.bf16.mxu0 %v6707_v1  ;;  %5148 = vmatprep.subr.bf16.mxu1 %v6718_v11 }
 0x553   :  { %1900 = vmatprep.mubr.f32.mxu0 %v6027_v7  ;;  %1971 = vmatprep.mubr.f32.mxu1 %v6027_v7 }
 0x555   :  { %5118 = vmatpush1.bf16.msra.mxu0 %v6720_v15  ;;  %5150 = vmatpush1.bf16.msra.mxu1 %v6729_v51  ;;  %v1515_v51 = vld [vmem:[#allocation2 + $0x20] sm:$0xc] }
 0x556   :  { %5120 = vmatprep.subr.bf16.mxu0 %v6743_v63  ;;  %5152 = vmatprep.subr.bf16.mxu1 %v6754_v13 }
 0x559   :  { %5122 = vmatpush1.bf16.msra.mxu0 %v6756_v17  ;;  %5154 = vmatpush1.bf16.msra.mxu1 %v6765_v25  ;;  %v1516_v25 = vld [vmem:[#allocation2 + $0x28] sm:$0xc] }
 0x55a   :  { %5124 = vmatprep.subr.bf16.mxu0 %v6779_v37  ;;  %5156 = vmatprep.subr.bf16.mxu1 %v6790_v54 }
 0x55d   :  { %5126 = vmatpush1.bf16.msra.mxu0 %v6792_v59  ;;  %5158 = vmatpush1.bf16.msra.mxu1 %v6801_v8  ;;  %v1517_v59 = vld [vmem:[#allocation2 + $0x30] sm:$0xc] }
 0x55e   :  { %5128 = vmatprep.subr.bf16.mxu0 %v6815_v16  ;;  %5160 = vmatprep.subr.bf16.mxu1 %v6826_v34 }
 0x561   :  { %5130 = vmatpush1.bf16.msra.mxu0 %v6828_v38  ;;  %5162 = vmatpush1.bf16.msra.mxu1 %v6837_v32  ;;  %v1518_v38 = vld [vmem:[#allocation2 + $0x38] sm:$0xc] }
 0x562   :  { %5132 = vmatprep.subr.bf16.mxu0 %v6851_v45  ;;  %5164 = vmatprep.subr.bf16.mxu1 %v6862_v60 }
 0x565   :  { %5134 = vmatpush1.bf16.msra.mxu0 %v6864_v0  ;;  %5166 = vmatpush1.bf16.msra.mxu1 %v6873_v9 }
 0x566   :  { %5136 = vmatprep.subr.bf16.mxu0 %v6887_v61  ;;  %5168 = vmatprep.subr.bf16.mxu1 %v6898_v12  ;;  %v1755_v61 = vld [vmem:[#allocation5] sm:$0x3] }
 0x569   :  { %5138 = vmatpush1.bf16.msra.mxu0 %v6900_v23  ;;  %5170 = vmatpush1.bf16.msra.mxu1 %v6909_v35 }
 0x56a   :  { %5140 = vmatprep.subr.bf16.mxu0 %v6923_v53  ;;  %5172 = vmatprep.subr.bf16.mxu1 %v6934_v18  ;;  %v1757_v18 = vrot.slane %v1755_v61, 6 }
 0x56d   :  { %5142 = vmatpush1.bf16.msra.mxu0 %v6936_v19  ;;  %5174 = vmatpush1.bf16.msra.mxu1 %v6945_v27 }
 0x56e   :  { %5176 = vmatprep.subr.bf16.mxu0 %v5175_v40  ;;  %5208 = vmatprep.subr.bf16.mxu1 %v5207_v55  ;;  %v2069_v40 = vld [vmem:[%s8481_s2 + $0x168] sm:$0xff]  ;;  %v2064_v55 = vld [vmem:[%s8481_s2 + $0x140] sm:$0xff] }
 0x56f   :  { %v5195_v46 = vpack.c.bf16 %v2069_v40, %v2065_v4  ;;  %v1770_v4 = vld [vmem:[#allocation2 + $0x38] sm:$0x30] }
 0x623   :  { %v1650_v47 = vpop.f32.mrb[14].mxu0  ;;  %v1721_v57 = vpop.f32.mrb[14].mxu1 }
 0x624   :  { %v1730_v1 = vrot.slane %v1650_v47, 6  ;;  %v1652_v11 = vpop.f32.mrb[15].mxu0  ;;  %v1723_v15 = vpop.f32.mrb[15].mxu1  ;;  %v1732_v17 = vrot.slane %v1721_v57, 6  ;;  %v2034_v47 = vld [vmem:[%s8481_s2 + $0x50] sm:$0xff] }
 0x625   :  { %v1731_v63 = vrot.slane %v1652_v11, 6  ;;  %v1733_v34 = vrot.slane %v1723_v15, 6  ;;  %v2038_v57 = vld [vmem:[%s8481_s2 + $0x70] sm:$0xff]  ;;  %v2041_v11 = vld [vmem:[%s8481_s2 + $0x88] sm:$0xff] }
 0x626   :  { %v1738_v13 = vadd.f32 %v1730_v1, %v1515_v51  ;;  %v1740_v16 = vadd.f32 %v1732_v17, %v1517_v59  ;;  %v5213_v1 = vpack.c.bf16 %v2038_v57, %v2034_v47  ;;  %v2045_v15 = vld [vmem:[%s8481_s2 + $0xa8] sm:$0xff]  ;;  %v2043_v51 = vld [vmem:[%s8481_s2 + $0x98] sm:$0xff]  ;;  %v2040_v17 = vld [vmem:[%s8481_s2 + $0x80] sm:$0xff]  ;;  %v5231_v47 = vpack.c.bf16 %v2079_v14, %v2075_v5 }
 0x627   :  { %v1739_v37 = vadd.f32 %v1731_v63, %v1516_v25  ;;  %v1741_v32 = vadd.f32 %v1733_v34, %v1518_v38  ;;  %v5183_v63 = vpack.c.bf16 %v2045_v15, %v2041_v11  ;;  %v2044_v25 = vld [vmem:[%s8481_s2 + $0xa0] sm:$0xff]  ;;  %v2042_v59 = vld [vmem:[%s8481_s2 + $0x90] sm:$0xff]  ;;  %v2049_v34 = vld [vmem:[%s8481_s2 + $0xc8] sm:$0xff] }
 0x628   :  { %v1742_v54 = vmul.f32 0.5, %v1738_v13  ;;  %v2047_v13 = vld [vmem:[%s8481_s2 + $0xb8] sm:$0xff]  ;;  %v2053_v38 = vld [vmem:[%s8481_s2 + $0xe8] sm:$0xff]  ;;  %v2078_v11 = vld [vmem:[%s8481_s2 + $0x1b0] sm:$0xff] }
 0x629   :  { %v1746_v8 = vmul.f32 0.5, %v1739_v37  ;;  %v1751_v45 = vmul.f32 0.5, %v1741_v32  ;;  %v5215_v37 = vpack.c.bf16 %v2047_v13, %v2043_v51  ;;  %v2051_v32 = vld [vmem:[%s8481_s2 + $0xd8] sm:$0xff]  ;;  %v2081_v15 = vld [vmem:[%s8481_s2 + $0x1c8] sm:$0xff] }
 0x62a   :  { %5893 = vtanh.f32 %v1742_v54  ;;  %v5185_v54 = vpack.c.bf16 %v2044_v25, %v2040_v17  ;;  %v2083_v13 = vld [vmem:[%s8481_s2 + $0x1d8] sm:$0xff] }
 0x62b   :  { %5895 = vtanh.f32 %v1746_v8  ;;  %v2046_v8 = vld [vmem:[%s8481_s2 + $0xb0] sm:$0xff]  ;;  %v2087_v17 = vld [vmem:[%s8481_s2 + $0x1f8] sm:$0xff] }
 0x62c   :  { %5897 = vtanh.f32 %v1740_v16  ;;  %v5217_v16 = vpack.c.bf16 %v2046_v8, %v2042_v59  ;;  %v2084_v59 = vld [vmem:[%s8481_s2 + $0x1e0] sm:$0xff]  ;;  %v2082_v8 = vld [vmem:[%s8481_s2 + $0x1d0] sm:$0xff] }
 0x62d   :  { %5899 = vtanh.f32 %v1751_v45  ;;  %v5187_v45 = vpack.c.bf16 %v2053_v38, %v2049_v34  ;;  %v2086_v34 = vld [vmem:[%s8481_s2 + $0x1f0] sm:$0xff]  ;;  %v2274_v38 = vld [vmem:[%s8483_s4 + $0x8] sm:$0xff] }
 0x634   :  { %v5894_v60 = vpop.eup %5893 }
 0x635   :  { %v5896_v0 = vpop.eup %5895  ;;  %v1744_v9 = vmul.f32 0.5, %v5894_v60  ;;  %v2055_v60 = vld [vmem:[%s8481_s2 + $0xf8] sm:$0xff] }
 0x636   :  { %v1748_v12 = vmul.f32 0.5, %v5896_v0  ;;  %v5898_v35 = vpop.eup %5897  ;;  %v2048_v0 = vld [vmem:[%s8481_s2 + $0xc0] sm:$0xff]  ;;  %v5219_v61 = vpack.c.bf16 %v2055_v60, %v2051_v32  ;;  %v2278_v32 = vld [vmem:[%s8483_s4 + $0x28] sm:$0xff] }
 0x637   :  { %v1745_v23 = vadd.f32 0.5, %v1744_v9  ;;  %v5900_v42 = vpop.eup %5899  ;;  %v2052_v9 = vld [vmem:[%s8481_s2 + $0xe0] sm:$0xff]  ;;  %v5239_v60 = vpack.c.bf16 %v2278_v32, %v2274_v38  ;;  %v2287_v38 = vld [vmem:[%s8483_s4 + $0x70] sm:$0xff]  ;;  %v2290_v32 = vld [vmem:[%s8483_s4 + $0x88] sm:$0xff] }
 0x638   :  { %v1749_v53 = vadd.f32 0.5, %v1748_v12  ;;  %v1753_v33 = vmul.f32 0.5, %v5900_v42  ;;  %v5189_v12 = vpack.c.bf16 %v2052_v9, %v2048_v0  ;;  %v2063_v42 = vld [vmem:[%s8481_s2 + $0x138] sm:$0xff] }
 0x639   :  { %v1760_v19 = vmul.f32 %v5898_v35, %v1745_v23  ;;  %v2050_v23 = vld [vmem:[%s8481_s2 + $0xd0] sm:$0xff]  ;;  %v2276_v0 = vld [vmem:[%s8483_s4 + $0x18] sm:$0xff] }
 0x63a   :  { %v1759_v27 = vmul.f32 %v1757_v18, %v1749_v53  ;;  %v1754_v41 = vadd.f32 0.5, %v1753_v33  ;;  %v2054_v35 = vld [vmem:[%s8481_s2 + $0xf0] sm:$0xff]  ;;  %v2057_v18 = vld [vmem:[%s8481_s2 + $0x108] sm:$0xff]  ;;  %v2056_v33 = vld [vmem:[%s8481_s2 + $0x100] sm:$0xff] }
 0x63b   :  { %v5221_v53 = vpack.c.bf16 %v2054_v35, %v2050_v23  ;;  %v2280_v9 = vld [vmem:[%s8483_s4 + $0x38] sm:$0xff] }
 0x63c   :  { %v1761_v39 = vadd.f32 %v1760_v19, %v1759_v27  ;;  %v2061_v19 = vld [vmem:[%s8481_s2 + $0x128] sm:$0xff]  ;;  %v2059_v27 = vld [vmem:[%s8481_s2 + $0x118] sm:$0xff] }
 0x63e   :  { %5901 = vtanh.f32 %v1761_v39  ;;  %1764 = vst [vmem:[#allocation5 - $0x2] sm:$0xc] %v1761_v39  ;;  %v5191_v39 = vpack.c.bf16 %v2061_v19, %v2057_v18  ;;  %v1767_v19 = vld [vmem:[#allocation2 + $0x20] sm:$0x30] }
 0x648   :  { %v5902_v48 = vpop.eup %5901 }
 0x649   :  { %v1763_v44 = vmul.f32 %v5902_v48, %v1754_v41  ;;  %v2060_v41 = vld [vmem:[%s8481_s2 + $0x120] sm:$0xff]  ;;  %v5223_v48 = vpack.c.bf16 %v2063_v42, %v2059_v27 }
 0x64b   :  { %1765 = vst [vmem:[#allocation4 - $0x2] sm:$0xc] %v1763_v44  ;;  %1766 = vst [vmem:[#allocation3 + $0x8] sm:$0xc] %v1763_v44  ;;  %v5193_v44 = vpack.c.bf16 %v2060_v41, %v2056_v33  ;;  %v1768_v33 = vld [vmem:[#allocation2 + $0x28] sm:$0x30] }
 0x652   :  { %v1771_v56 = vld [vmem:[#allocation4] sm:$0x3] }
 0x653   :  { %1901 = vmatmul.mubr.f32.vlgmr.msra.gmra.mrb[16].mxu0 %v1771_v56  ;;  %1972 = vmatmul.mubr.f32.vlgmr.msra.gmra.mrb[16].mxu1 %v1771_v56  ;;  %v2058_v56 = vld [vmem:[%s8481_s2 + $0x110] sm:$0xff] }
 0x654   :  { %2152 = vmatprep.mubr.f32.mxu0 %v6027_v7  ;;  %2223 = vmatprep.mubr.f32.mxu1 %v6027_v7  ;;  %v5225_v2 = vpack.c.bf16 %v2062_v58, %v2058_v56 }
 0x655   :  { %5178 = vmatpush1.bf16.msra.mxu0 %v5177_v62  ;;  %5210 = vmatpush1.bf16.msra.mxu1 %v5209_v10  ;;  %v2068_v62 = vld [vmem:[%s8481_s2 + $0x160] sm:$0xff]  ;;  %v2066_v10 = vld [vmem:[%s8481_s2 + $0x150] sm:$0xff] }
 0x656   :  { %5180 = vmatprep.subr.bf16.mxu0 %v5179_v52  ;;  %5212 = vmatprep.subr.bf16.mxu1 %v5211_v20  ;;  %v5197_v24 = vpack.c.bf16 %v2068_v62, %v2064_v55  ;;  %v5229_v36 = vpack.c.bf16 %v2070_v29, %v2066_v10  ;;  %v2077_v52 = vld [vmem:[%s8481_s2 + $0x1a8] sm:$0xff]  ;;  %v2072_v20 = vld [vmem:[%s8481_s2 + $0x180] sm:$0xff]  ;;  %v2007_v62 = vld [vmem:[#allocation5] sm:$0x3] }
 0x657   :  { %v5199_v6 = vpack.c.bf16 %v2077_v52, %v2073_v43 }
 0x659   :  { %5182 = vmatpush1.bf16.msra.mxu0 %v5181_v21  ;;  %5214 = vmatpush1.bf16.msra.mxu1 %v5213_v1  ;;  %v2076_v21 = vld [vmem:[%s8481_s2 + $0x1a0] sm:$0xff]  ;;  %v2074_v1 = vld [vmem:[%s8481_s2 + $0x190] sm:$0xff] }
 0x65a   :  { %5184 = vmatprep.subr.bf16.mxu0 %v5183_v63  ;;  %5216 = vmatprep.subr.bf16.mxu1 %v5215_v37  ;;  %v5201_v57 = vpack.c.bf16 %v2076_v21, %v2072_v20  ;;  %v5233_v51 = vpack.c.bf16 %v2078_v11, %v2074_v1  ;;  %v2085_v63 = vld [vmem:[%s8481_s2 + $0x1e8] sm:$0xff]  ;;  %v5235_v37 = vpack.c.bf16 %v2087_v17, %v2083_v13  ;;  %v2277_v1 = vld [vmem:[%s8483_s4 + $0x20] sm:$0xff]  ;;  %v2275_v11 = vld [vmem:[%s8483_s4 + $0x10] sm:$0xff] }
 0x65b   :  { %v5203_v25 = vpack.c.bf16 %v2085_v63, %v2081_v15  ;;  %v2279_v15 = vld [vmem:[%s8483_s4 + $0x30] sm:$0xff]  ;;  %v2286_v63 = vld [vmem:[%s8483_s4 + $0x68] sm:$0xff]  ;;  %v2284_v13 = vld [vmem:[%s8483_s4 + $0x58] sm:$0xff] }
 0x65c   :  { %v2288_v17 = vld [vmem:[%s8483_s4 + $0x78] sm:$0xff] }
 0x65d   :  { %5186 = vmatpush1.bf16.msra.mxu0 %v5185_v54  ;;  %5218 = vmatpush1.bf16.msra.mxu1 %v5217_v16  ;;  %v2080_v54 = vld [vmem:[%s8481_s2 + $0x1c0] sm:$0xff] }
 0x65e   :  { %5188 = vmatprep.subr.bf16.mxu0 %v5187_v45  ;;  %5220 = vmatprep.subr.bf16.mxu1 %v5219_v61  ;;  %v5205_v16 = vpack.c.bf16 %v2084_v59, %v2080_v54  ;;  %v5237_v45 = vpack.c.bf16 %v2086_v34, %v2082_v8  ;;  %v5271_v61 = vpack.c.bf16 %v2280_v9, %v2276_v0  ;;  %v2281_v54 = vld [vmem:[%s8483_s4 + $0x40] sm:$0xff]  ;;  %v2283_v8 = vld [vmem:[%s8483_s4 + $0x50] sm:$0xff]  ;;  %v2292_v0 = vld [vmem:[%s8483_s4 + $0x98] sm:$0xff] }
 0x65f   :  { %v2285_v59 = vld [vmem:[%s8483_s4 + $0x60] sm:$0xff]  ;;  %v5275_v34 = vpack.c.bf16 %v2288_v17, %v2284_v13  ;;  %v2296_v9 = vld [vmem:[%s8483_s4 + $0xb8] sm:$0xff]  ;;  %v2319_v13 = vld [vmem:[%s8483_s4 + $0x170] sm:$0xff] }
 0x660   :  { %v2322_v17 = vld [vmem:[%s8483_s4 + $0x188] sm:$0xff] }
 0x661   :  { %5190 = vmatpush1.bf16.msra.mxu0 %v5189_v12  ;;  %5222 = vmatpush1.bf16.msra.mxu1 %v5221_v53 }
 0x662   :  { %5192 = vmatprep.subr.bf16.mxu0 %v5191_v39  ;;  %5224 = vmatprep.subr.bf16.mxu1 %v5223_v48 }
 0x665   :  { %5194 = vmatpush1.bf16.msra.mxu0 %v5193_v44  ;;  %5226 = vmatpush1.bf16.msra.mxu1 %v5225_v2  ;;  %v1769_v44 = vld [vmem:[#allocation2 + $0x30] sm:$0x30] }
 0x666   :  { %5196 = vmatprep.subr.bf16.mxu0 %v5195_v46  ;;  %5228 = vmatprep.subr.bf16.mxu1 %v5227_v3 }
 0x669   :  { %5198 = vmatpush1.bf16.msra.mxu0 %v5197_v24  ;;  %5230 = vmatpush1.bf16.msra.mxu1 %v5229_v36  ;;  %v2009_v36 = vrot.slane %v2007_v62, 4  ;;  %v2312_v62 = vld [vmem:[%s8483_s4 + $0x138] sm:$0xff] }
 0x66a   :  { %5200 = vmatprep.subr.bf16.mxu0 %v5199_v6  ;;  %5232 = vmatprep.subr.bf16.mxu1 %v5231_v47 }
 0x66d   :  { %5202 = vmatpush1.bf16.msra.mxu0 %v5201_v57  ;;  %5234 = vmatpush1.bf16.msra.mxu1 %v5233_v51  ;;  %v2273_v57 = vld [vmem:[%s8483_s4] sm:$0xff]  ;;  %v2282_v51 = vld [vmem:[%s8483_s4 + $0x48] sm:$0xff] }
 0x66e   :  { %5204 = vmatprep.subr.bf16.mxu0 %v5203_v25  ;;  %5236 = vmatprep.subr.bf16.mxu1 %v5235_v37  ;;  %v5241_v25 = vpack.c.bf16 %v2277_v1, %v2273_v57  ;;  %v5273_v37 = vpack.c.bf16 %v2279_v15, %v2275_v11  ;;  %v2313_v1 = vld [vmem:[%s8483_s4 + $0x140] sm:$0xff] }
 0x66f   :  { %v2317_v11 = vld [vmem:[%s8483_s4 + $0x160] sm:$0xff] }
 0x671   :  { %5206 = vmatpush1.bf16.msra.mxu0 %v5205_v16  ;;  %5238 = vmatpush1.bf16.msra.mxu1 %v5237_v45  ;;  %v5243_v16 = vpack.c.bf16 %v2286_v63, %v2282_v51  ;;  %v2294_v45 = vld [vmem:[%s8483_s4 + $0xa8] sm:$0xff]  ;;  %v2315_v63 = vld [vmem:[%s8483_s4 + $0x150] sm:$0xff] }
 0x672   :  { %5240 = vmatprep.subr.bf16.mxu0 %v5239_v60  ;;  %5272 = vmatprep.subr.bf16.mxu1 %v5271_v61  ;;  %v5245_v61 = vpack.c.bf16 %v2285_v59, %v2281_v54  ;;  %v2328_v54 = vld [vmem:[%s8483_s4 + $0x1b8] sm:$0xff]  ;;  %v5261_v59 = vpack.c.bf16 %v2317_v11, %v2313_v1  ;;  %v2549_v1 = vld [vmem:[%s8484_s5 + $0xa8] sm:$0xff] }
 0x673   :  { %v2547_v11 = vld [vmem:[%s8484_s5 + $0x98] sm:$0xff] }
 0x726   :  { %v1902_v12 = vpop.f32.mrb[16].mxu0  ;;  %v1973_v23 = vpop.f32.mrb[16].mxu1 }
 0x727   :  { %v1982_v35 = vrot.slane %v1902_v12, 4  ;;  %v1904_v53 = vpop.f32.mrb[17].mxu0  ;;  %v1975_v18 = vpop.f32.mrb[17].mxu1  ;;  %v1984_v42 = vrot.slane %v1973_v23, 4  ;;  %v5277_v12 = vpack.c.bf16 %v2287_v38, %v2283_v8  ;;  %v2289_v23 = vld [vmem:[%s8483_s4 + $0x80] sm:$0xff]  ;;  %v5293_v8 = vpack.c.bf16 %v2319_v13, %v2315_v63 }
 0x728   :  { %v1983_v27 = vrot.slane %v1904_v53, 4  ;;  %v1985_v2 = vrot.slane %v1975_v18, 4  ;;  %v5247_v53 = vpack.c.bf16 %v2294_v45, %v2290_v32  ;;  %v5279_v18 = vpack.c.bf16 %v2296_v9, %v2292_v0  ;;  %v2323_v45 = vld [vmem:[%s8483_s4 + $0x190] sm:$0xff]  ;;  %v2330_v0 = vld [vmem:[%s8483_s4 + $0x1c8] sm:$0xff]  ;;  %v2544_v63 = vld [vmem:[%s8484_s5 + $0x80] sm:$0xff] }
 0x729   :  { %v1990_v39 = vadd.f32 %v1982_v35, %v1767_v19  ;;  %v1992_v58 = vadd.f32 %v1984_v42, %v1769_v44  ;;  %v2293_v35 = vld [vmem:[%s8483_s4 + $0xa0] sm:$0xff]  ;;  %v2291_v19 = vld [vmem:[%s8483_s4 + $0x90] sm:$0xff]  ;;  %v2302_v42 = vld [vmem:[%s8483_s4 + $0xe8] sm:$0xff] }
 0x72a   :  { %v1991_v41 = vadd.f32 %v1983_v27, %v1768_v33  ;;  %v1993_v40 = vadd.f32 %v1985_v2, %v1770_v4  ;;  %v2295_v27 = vld [vmem:[%s8483_s4 + $0xb0] sm:$0xff]  ;;  %v2300_v33 = vld [vmem:[%s8483_s4 + $0xd8] sm:$0xff]  ;;  %v2334_v9 = vld [vmem:[%s8483_s4 + $0x1e8] sm:$0xff] }
 0x72b   :  { %v1994_v48 = vmul.f32 0.5, %v1990_v39  ;;  %v2298_v39 = vld [vmem:[%s8483_s4 + $0xc8] sm:$0xff]  ;;  %v5281_v44 = vpack.c.bf16 %v2295_v27, %v2291_v19  ;;  %v2333_v27 = vld [vmem:[%s8483_s4 + $0x1e0] sm:$0xff] }
 0x72c   :  { %v1998_v56 = vmul.f32 0.5, %v1991_v41  ;;  %v2003_v49 = vmul.f32 0.5, %v1993_v40  ;;  %v2304_v41 = vld [vmem:[%s8483_s4 + $0xf8] sm:$0xff]  ;;  %v5251_v2 = vpack.c.bf16 %v2302_v42, %v2298_v39  ;;  %v2299_v40 = vld [vmem:[%s8483_s4 + $0xd0] sm:$0xff]  ;;  %v2548_v13 = vld [vmem:[%s8484_s5 + $0xa0] sm:$0xff] }
 0x72d   :  { %5903 = vtanh.f32 %v1994_v48  ;;  %v5249_v48 = vpack.c.bf16 %v2293_v35, %v2289_v23  ;;  %v5283_v4 = vpack.c.bf16 %v2304_v41, %v2300_v33  ;;  %v2331_v39 = vld [vmem:[%s8483_s4 + $0x1d0] sm:$0xff] }
 0x72e   :  { %5905 = vtanh.f32 %v1998_v56  ;;  %v2297_v56 = vld [vmem:[%s8483_s4 + $0xc0] sm:$0xff]  ;;  %v2335_v42 = vld [vmem:[%s8483_s4 + $0x1f0] sm:$0xff] }
 0x72f   :  { %5907 = vtanh.f32 %v1992_v58  ;;  %v2301_v58 = vld [vmem:[%s8483_s4 + $0xe0] sm:$0xff]  ;;  %v5301_v41 = vpack.c.bf16 %v2335_v42, %v2331_v39 }
 0x730   :  { %5909 = vtanh.f32 %v2003_v49  ;;  %v2303_v49 = vld [vmem:[%s8483_s4 + $0xf0] sm:$0xff]  ;;  %v2560_v39 = vld [vmem:[%s8484_s5 + $0x100] sm:$0xff] }
 0x731   :  { %v2564_v42 = vld [vmem:[%s8484_s5 + $0x120] sm:$0xff] }
 0x737   :  { %v5904_v46 = vpop.eup %5903 }
 0x738   :  { %v5906_v50 = vpop.eup %5905  ;;  %v1996_v55 = vmul.f32 0.5, %v5904_v46  ;;  %v2306_v46 = vld [vmem:[%s8483_s4 + $0x108] sm:$0xff] }
 0x739   :  { %v2000_v3 = vmul.f32 0.5, %v5906_v50  ;;  %v5908_v10 = vpop.eup %5907  ;;  %v2310_v50 = vld [vmem:[%s8483_s4 + $0x128] sm:$0xff] }
 0x73a   :  { %v1997_v24 = vadd.f32 0.5, %v1996_v55  ;;  %v5910_v6 = vpop.eup %5909  ;;  %v2308_v55 = vld [vmem:[%s8483_s4 + $0x118] sm:$0xff] }
 0x73b   :  { %v2001_v29 = vadd.f32 0.5, %v2000_v3  ;;  %v2005_v14 = vmul.f32 0.5, %v5910_v6  ;;  %v5253_v3 = vpack.c.bf16 %v2301_v58, %v2297_v56  ;;  %v2314_v6 = vld [vmem:[%s8483_s4 + $0x148] sm:$0xff]  ;;  %v2531_v58 = vld [vmem:[%s8484_s5 + $0x18] sm:$0xff] }
 0x73c   :  { %v2012_v43 = vmul.f32 %v5908_v10, %v1997_v24  ;;  %v5285_v24 = vpack.c.bf16 %v2303_v49, %v2299_v40  ;;  %v2305_v10 = vld [vmem:[%s8483_s4 + $0x100] sm:$0xff]  ;;  %v2533_v56 = vld [vmem:[%s8484_s5 + $0x28] sm:$0xff] }
 0x73d   :  { %v2011_v52 = vmul.f32 %v2009_v36, %v2001_v29  ;;  %v2006_v20 = vadd.f32 0.5, %v2005_v14  ;;  %v2309_v29 = vld [vmem:[%s8483_s4 + $0x120] sm:$0xff]  ;;  %v5255_v36 = vpack.c.bf16 %v2310_v50, %v2306_v46  ;;  %v2318_v14 = vld [vmem:[%s8483_s4 + $0x168] sm:$0xff] }
 0x73e   :  { %v5259_v15 = vpack.c.bf16 %v2318_v14, %v2314_v6  ;;  %v2528_v40 = vld [vmem:[%s8484_s5] sm:$0xff] }
 0x73f   :  { %v2013_v5 = vadd.f32 %v2012_v43, %v2011_v52  ;;  %v5287_v43 = vpack.c.bf16 %v2312_v62, %v2308_v55  ;;  %v2307_v52 = vld [vmem:[%s8483_s4 + $0x110] sm:$0xff]  ;;  %v2532_v49 = vld [vmem:[%s8484_s5 + $0x20] sm:$0xff] }
 0x740   :  { %v7464_v50 = vpack.c.bf16 %v2532_v49, %v2528_v40  ;;  %v2530_v55 = vld [vmem:[%s8484_s5 + $0x10] sm:$0xff]  ;;  %v2571_v40 = vld [vmem:[%s8484_s5 + $0x158] sm:$0xff] }
 0x741   :  { %5911 = vtanh.f32 %v2013_v5  ;;  %2016 = vst [vmem:[#allocation5 - $0x4] sm:$0x30] %v2013_v5  ;;  %v2311_v5 = vld [vmem:[%s8483_s4 + $0x130] sm:$0xff] }
 0x742   :  { %v5289_v57 = vpack.c.bf16 %v2311_v5, %v2307_v52  ;;  %v2534_v62 = vld [vmem:[%s8484_s5 + $0x30] sm:$0xff]  ;;  %v2536_v52 = vld [vmem:[%s8484_s5 + $0x40] sm:$0xff] }
 0x743   :  { %v2540_v5 = vld [vmem:[%s8484_s5 + $0x60] sm:$0xff] }
 0x744   :  { %v7500_v14 = vpack.c.bf16 %v2540_v5, %v2536_v52  ;;  %v2574_v52 = vld [vmem:[%s8484_s5 + $0x170] sm:$0xff]  ;;  %v2577_v5 = vld [vmem:[%s8484_s5 + $0x188] sm:$0xff] }
 0x74b   :  { %v5912_v21 = vpop.eup %5911 }
 0x74c   :  { %v2015_v47 = vmul.f32 %v5912_v21, %v2006_v20  ;;  %v2316_v20 = vld [vmem:[%s8483_s4 + $0x158] sm:$0xff] }
 0x74d   :  { %v2320_v21 = vld [vmem:[%s8483_s4 + $0x178] sm:$0xff] }
 0x74e   :  { %2017 = vst [vmem:[#allocation4 - $0x4] sm:$0x30] %v2015_v47  ;;  %2018 = vst [vmem:[#allocation3 + $0x8] sm:$0x30] %v2015_v47  ;;  %v5257_v47 = vpack.c.bf16 %v2309_v29, %v2305_v10  ;;  %v5291_v51 = vpack.c.bf16 %v2320_v21, %v2316_v20  ;;  %v2541_v10 = vld [vmem:[%s8484_s5 + $0x68] sm:$0xff]  ;;  %v2539_v29 = vld [vmem:[%s8484_s5 + $0x58] sm:$0xff] }
 0x74f   :  { %v2538_v20 = vld [vmem:[%s8484_s5 + $0x50] sm:$0xff] }
 0x750   :  { %v2542_v21 = vld [vmem:[%s8484_s5 + $0x70] sm:$0xff] }
 0x755   :  { %v2023_v60 = vld [vmem:[#allocation4] sm:$0x3] }
 0x756   :  { %2153 = vmatmul.mubr.f32.vlgmr.msra.gmra.mrb[18].mxu0 %v2023_v60  ;;  %2224 = vmatmul.mubr.f32.vlgmr.msra.gmra.mrb[18].mxu1 %v2023_v60  ;;  %v2327_v60 = vld [vmem:[%s8483_s4 + $0x1b0] sm:$0xff] }
 0x757   :  { %5242 = vmatpush1.bf16.msra.mxu0 %v5241_v25  ;;  %5274 = vmatpush1.bf16.msra.mxu1 %v5273_v37  ;;  %v2326_v25 = vld [vmem:[%s8483_s4 + $0x1a8] sm:$0xff]  ;;  %v2324_v37 = vld [vmem:[%s8483_s4 + $0x198] sm:$0xff]  ;;  %v5297_v35 = vpack.c.bf16 %v2327_v60, %v2323_v45  ;;  %v2552_v45 = vld [vmem:[%s8484_s5 + $0xc0] sm:$0xff] }
 0x758   :  { %5244 = vmatprep.subr.bf16.mxu0 %v5243_v16  ;;  %5276 = vmatprep.subr.bf16.mxu1 %v5275_v34  ;;  %v2321_v16 = vld [vmem:[%s8483_s4 + $0x180] sm:$0xff]  ;;  %v5263_v38 = vpack.c.bf16 %v2326_v25, %v2322_v17  ;;  %v5295_v32 = vpack.c.bf16 %v2328_v54, %v2324_v37  ;;  %v7536_v25 = vpack.c.bf16 %v2548_v13, %v2544_v63  ;;  %v2546_v37 = vld [vmem:[%s8484_s5 + $0x90] sm:$0xff] }
 0x759   :  { %2423 = vmatprep.mubr.f32.mxu0 %v6027_v7  ;;  %2500 = vmatprep.mubr.f32.mxu1 %v6027_v7  ;;  %v2325_v34 = vld [vmem:[%s8483_s4 + $0x1a0] sm:$0xff]  ;;  %v2550_v54 = vld [vmem:[%s8484_s5 + $0xb0] sm:$0xff] }
 0x75a   :  { %v5265_v23 = vpack.c.bf16 %v2325_v34, %v2321_v16  ;;  %v2557_v16 = vld [vmem:[%s8484_s5 + $0xe8] sm:$0xff]  ;;  %v2576_v63 = vld [vmem:[%s8484_s5 + $0x180] sm:$0xff] }
 0x75b   :  { %5246 = vmatpush1.bf16.msra.mxu0 %v5245_v61  ;;  %5278 = vmatpush1.bf16.msra.mxu1 %v5277_v12  ;;  %v2332_v61 = vld [vmem:[%s8483_s4 + $0x1d8] sm:$0xff]  ;;  %v2580_v13 = vld [vmem:[%s8484_s5 + $0x1a0] sm:$0xff] }
 0x75c   :  { %5248 = vmatprep.subr.bf16.mxu0 %v5247_v53  ;;  %5280 = vmatprep.subr.bf16.mxu1 %v5279_v18  ;;  %v2336_v12 = vld [vmem:[%s8483_s4 + $0x1f8] sm:$0xff]  ;;  %v2329_v53 = vld [vmem:[%s8483_s4 + $0x1c0] sm:$0xff]  ;;  %v5267_v18 = vpack.c.bf16 %v2334_v9, %v2330_v0  ;;  %v2554_v9 = vld [vmem:[%s8484_s5 + $0xd0] sm:$0xff] }
 0x75d   :  { %v5299_v19 = vpack.c.bf16 %v2336_v12, %v2332_v61  ;;  %v5269_v33 = vpack.c.bf16 %v2333_v27, %v2329_v53  ;;  %v2556_v0 = vld [vmem:[%s8484_s5 + $0xe0] sm:$0xff]  ;;  %v2558_v61 = vld [vmem:[%s8484_s5 + $0xf0] sm:$0xff]  ;;  %v2565_v53 = vld [vmem:[%s8484_s5 + $0x128] sm:$0xff] }
 0x75e   :  { %v7579_v12 = vpack.c.bf16 %v2556_v0, %v2552_v45  ;;  %v2567_v27 = vld [vmem:[%s8484_s5 + $0x138] sm:$0xff] }
 0x75f   :  { %5250 = vmatpush1.bf16.msra.mxu0 %v5249_v48  ;;  %5282 = vmatpush1.bf16.msra.mxu1 %v5281_v44  ;;  %v2271_v48 = vld [vmem:[#allocation3] sm:$0xff]  ;;  %v2529_v44 = vld [vmem:[%s8484_s5 + $0x8] sm:$0xff]  ;;  %v2587_v45 = vld [vmem:[%s8484_s5 + $0x1d8] sm:$0xff] }
 0x760   :  { %5252 = vmatprep.subr.bf16.mxu0 %v5251_v2  ;;  %5284 = vmatprep.subr.bf16.mxu1 %v5283_v4  ;;  %v7451_v2 = vpack.c.bf16 %v2533_v56, %v2529_v44  ;;  %v2535_v4 = vld [vmem:[%s8484_s5 + $0x38] sm:$0xff]  ;;  %v2566_v44 = vld [vmem:[%s8484_s5 + $0x130] sm:$0xff] }
 0x761   :  { %v7462_v46 = vpack.c.bf16 %v2535_v4, %v2531_v58  ;;  %v2569_v58 = vld [vmem:[%s8484_s5 + $0x148] sm:$0xff] }
 0x762   :  { %v2573_v4 = vld [vmem:[%s8484_s5 + $0x168] sm:$0xff] }
 0x763   :  { %5254 = vmatpush1.bf16.msra.mxu0 %v5253_v3  ;;  %5286 = vmatpush1.bf16.msra.mxu1 %v5285_v24  ;;  %v7473_v3 = vpack.c.bf16 %v2534_v62, %v2530_v55  ;;  %v2537_v24 = vld [vmem:[%s8484_s5 + $0x48] sm:$0xff]  ;;  %v7631_v49 = vpack.c.bf16 %v2573_v4, %v2569_v58  ;;  %v2575_v55 = vld [vmem:[%s8484_s5 + $0x178] sm:$0xff]  ;;  %v2568_v62 = vld [vmem:[%s8484_s5 + $0x140] sm:$0xff] }
 0x764   :  { %5256 = vmatprep.subr.bf16.mxu0 %v5255_v36  ;;  %5288 = vmatprep.subr.bf16.mxu1 %v5287_v43  ;;  %v7487_v36 = vpack.c.bf16 %v2541_v10, %v2537_v24  ;;  %v2543_v43 = vld [vmem:[%s8484_s5 + $0x78] sm:$0xff]  ;;  %v2572_v24 = vld [vmem:[%s8484_s5 + $0x160] sm:$0xff]  ;;  %v7642_v10 = vpack.c.bf16 %v2575_v55, %v2571_v40 }
 0x765   :  { %v7498_v6 = vpack.c.bf16 %v2543_v43, %v2539_v29  ;;  %v7644_v29 = vpack.c.bf16 %v2572_v24, %v2568_v62  ;;  %v2570_v43 = vld [vmem:[%s8484_s5 + $0x150] sm:$0xff]  ;;  %v2019_v55 = vld [vmem:[#allocation2 + $0x20] sm:$0xc0] }
 0x767   :  { %5258 = vmatpush1.bf16.msra.mxu0 %v5257_v47  ;;  %5290 = vmatpush1.bf16.msra.mxu1 %v5289_v57  ;;  %v7509_v47 = vpack.c.bf16 %v2542_v21, %v2538_v20  ;;  %v2545_v57 = vld [vmem:[%s8484_s5 + $0x88] sm:$0xff]  ;;  %v7656_v20 = vpack.c.bf16 %v2574_v52, %v2570_v43 }
 0x768   :  { %5260 = vmatprep.subr.bf16.mxu0 %v5259_v15  ;;  %5292 = vmatprep.subr.bf16.mxu1 %v5291_v51  ;;  %v7523_v15 = vpack.c.bf16 %v2549_v1, %v2545_v57  ;;  %v2551_v51 = vld [vmem:[%s8484_s5 + $0xb8] sm:$0xff]  ;;  %v2581_v21 = vld [vmem:[%s8484_s5 + $0x1a8] sm:$0xff] }
 0x769   :  { %v7534_v17 = vpack.c.bf16 %v2551_v51, %v2547_v11  ;;  %v2579_v57 = vld [vmem:[%s8484_s5 + $0x198] sm:$0xff]  ;;  %v7668_v11 = vpack.c.bf16 %v2581_v21, %v2577_v5  ;;  %v2020_v52 = vld [vmem:[#allocation2 + $0x28] sm:$0xc0] }
 0x76a   :  { %v2583_v1 = vld [vmem:[%s8484_s5 + $0x1b8] sm:$0xff] }
 0x76b   :  { %5262 = vmatpush1.bf16.msra.mxu0 %v5261_v59  ;;  %5294 = vmatpush1.bf16.msra.mxu1 %v5293_v8  ;;  %v7545_v59 = vpack.c.bf16 %v2550_v54, %v2546_v37  ;;  %v2553_v8 = vld [vmem:[%s8484_s5 + $0xc8] sm:$0xff]  ;;  %v7670_v51 = vpack.c.bf16 %v2583_v1, %v2579_v57  ;;  %v2578_v37 = vld [vmem:[%s8484_s5 + $0x190] sm:$0xff]  ;;  %v7683_v54 = vpack.c.bf16 %v2580_v13, %v2576_v63 }
 0x76c   :  { %5264 = vmatprep.subr.bf16.mxu0 %v5263_v38  ;;  %5296 = vmatprep.subr.bf16.mxu1 %v5295_v32  ;;  %v7556_v34 = vpack.c.bf16 %v2557_v16, %v2553_v8  ;;  %v2555_v38 = vld [vmem:[%s8484_s5 + $0xd8] sm:$0xff]  ;;  %v2582_v8 = vld [vmem:[%s8484_s5 + $0x1b0] sm:$0xff] }
 0x76d   :  { %v2559_v32 = vld [vmem:[%s8484_s5 + $0xf8] sm:$0xff]  ;;  %v7690_v16 = vpack.c.bf16 %v2582_v8, %v2578_v37  ;;  %v2021_v57 = vld [vmem:[#allocation2 + $0x30] sm:$0xc0] }
 0x76e   :  { %v7567_v60 = vpack.c.bf16 %v2559_v32, %v2555_v38  ;;  %v2585_v38 = vld [vmem:[%s8484_s5 + $0x1c8] sm:$0xff]  ;;  %v2022_v37 = vld [vmem:[#allocation2 + $0x38] sm:$0xc0] }
 0x76f   :  { %5266 = vmatpush1.bf16.msra.mxu0 %v5265_v23  ;;  %5298 = vmatpush1.bf16.msra.mxu1 %v5297_v35  ;;  %v7581_v23 = vpack.c.bf16 %v2558_v61, %v2554_v9  ;;  %v2561_v35 = vld [vmem:[%s8484_s5 + $0x108] sm:$0xff]  ;;  %v2591_v9 = vld [vmem:[%s8484_s5 + $0x1f8] sm:$0xff]  ;;  %v2584_v61 = vld [vmem:[%s8484_s5 + $0x1c0] sm:$0xff] }
 0x770   :  { %5268 = vmatprep.subr.bf16.mxu0 %v5267_v18  ;;  %5300 = vmatprep.subr.bf16.mxu1 %v5299_v19  ;;  %v2563_v18 = vld [vmem:[%s8484_s5 + $0x118] sm:$0xff]  ;;  %v7595_v19 = vpack.c.bf16 %v2565_v53, %v2561_v35  ;;  %v2589_v32 = vld [vmem:[%s8484_s5 + $0x1e8] sm:$0xff]  ;;  %v2588_v35 = vld [vmem:[%s8484_s5 + $0x1e0] sm:$0xff]  ;;  %v7714_v53 = vpack.c.bf16 %v2591_v9, %v2587_v45 }
 0x771   :  { %v7703_v0 = vpack.c.bf16 %v2589_v32, %v2585_v38 }
 0x773   :  { %5270 = vmatpush1.bf16.msra.mxu0 %v5269_v33  ;;  %5302 = vmatpush1.bf16.msra.mxu1 %v5301_v41  ;;  %v7606_v33 = vpack.c.bf16 %v2567_v27, %v2563_v18  ;;  %v7608_v41 = vpack.c.bf16 %v2564_v42, %v2560_v39  ;;  %v7716_v18 = vpack.c.bf16 %v2588_v35, %v2584_v61  ;;  %v2586_v27 = vld [vmem:[%s8484_s5 + $0x1d0] sm:$0xff] }
 0x774   :  { %5304 = vmatprep.subr.bf16.mxu0 %v7451_v2  ;;  %5336 = vmatprep.subr.bf16.mxu1 %v7462_v46  ;;  %v2590_v39 = vld [vmem:[%s8484_s5 + $0x1f0] sm:$0xff] }
 0x775   :  { %v7725_v42 = vpack.c.bf16 %v2590_v39, %v2586_v27  ;;  %v2259_v61 = vld [vmem:[#allocation5] sm:$0x3] }
 0x776   :  { %2424 = vmatmul.mubr.f32.vlgmr.msra.gmra.mrb[20].mxu0 %v2271_v48  ;;  %2501 = vmatmul.mubr.f32.vlgmr.msra.gmra.mrb[20].mxu1 %v2271_v48  ;;  %v2562_v48 = vld [vmem:[%s8484_s5 + $0x110] sm:$0xff] }
 0x777   :  { %2429 = vmatprep.mubr.f32.mxu0 %v6027_v7  ;;  %2506 = vmatprep.mubr.f32.mxu1 %v6027_v7  ;;  %v7617_v56 = vpack.c.bf16 %v2566_v44, %v2562_v48 }
 0x778   :  { %5306 = vmatpush1.bf16.msra.mxu0 %v7464_v50  ;;  %5338 = vmatpush1.bf16.msra.mxu1 %v7473_v3 }
 0x779   :  { %5308 = vmatprep.subr.bf16.mxu0 %v7487_v36  ;;  %5340 = vmatprep.subr.bf16.mxu1 %v7498_v6 }
 0x77c   :  { %5310 = vmatpush1.bf16.msra.mxu0 %v7500_v14  ;;  %5342 = vmatpush1.bf16.msra.mxu1 %v7509_v47 }
 0x77d   :  { %5312 = vmatprep.subr.bf16.mxu0 %v7523_v15  ;;  %5344 = vmatprep.subr.bf16.mxu1 %v7534_v17 }
 0x780   :  { %5314 = vmatpush1.bf16.msra.mxu0 %v7536_v25  ;;  %5346 = vmatpush1.bf16.msra.mxu1 %v7545_v59 }
 0x781   :  { %5316 = vmatprep.subr.bf16.mxu0 %v7556_v34  ;;  %5348 = vmatprep.subr.bf16.mxu1 %v7567_v60 }
 0x784   :  { %5318 = vmatpush1.bf16.msra.mxu0 %v7579_v12  ;;  %5350 = vmatpush1.bf16.msra.mxu1 %v7581_v23 }
 0x785   :  { %5320 = vmatprep.subr.bf16.mxu0 %v7595_v19  ;;  %5352 = vmatprep.subr.bf16.mxu1 %v7606_v33 }
 0x788   :  { %5322 = vmatpush1.bf16.msra.mxu0 %v7608_v41  ;;  %5354 = vmatpush1.bf16.msra.mxu1 %v7617_v56 }
 0x789   :  { %5324 = vmatprep.subr.bf16.mxu0 %v7631_v49  ;;  %5356 = vmatprep.subr.bf16.mxu1 %v7642_v10 }
 0x78c   :  { %5326 = vmatpush1.bf16.msra.mxu0 %v7644_v29  ;;  %5358 = vmatpush1.bf16.msra.mxu1 %v7656_v20 }
 0x78d   :  { %5328 = vmatprep.subr.bf16.mxu0 %v7668_v11  ;;  %5360 = vmatprep.subr.bf16.mxu1 %v7670_v51 }
 0x790   :  { %5330 = vmatpush1.bf16.msra.mxu0 %v7683_v54  ;;  %5362 = vmatpush1.bf16.msra.mxu1 %v7690_v16 }
 0x791   :  { %5332 = vmatprep.subr.bf16.mxu0 %v7703_v0  ;;  %5364 = vmatprep.subr.bf16.mxu1 %v7714_v53 }
 0x794   :  { %5334 = vmatpush1.bf16.msra.mxu0 %v7716_v18  ;;  %5366 = vmatpush1.bf16.msra.mxu1 %v7725_v42 }
 0x795   :  { %5368 = vmatprep.subr.bf16.mxu0 %v7451_v2  ;;  %5400 = vmatprep.subr.bf16.mxu1 %v7462_v46 }
 0x829   :  { %v2154_v48 = vpop.f32.mrb[18].mxu0  ;;  %v2225_v44 = vpop.f32.mrb[18].mxu1 }
 0x82a   :  { %v2234_v58 = vrot.slane %v2154_v48, 2  ;;  %v2156_v4 = vpop.f32.mrb[19].mxu0  ;;  %v2227_v40 = vpop.f32.mrb[19].mxu1  ;;  %v2236_v43 = vrot.slane %v2225_v44, 2  ;;  %v2261_v44 = vrot.slane %v2259_v61, 2 }
 0x82b   :  { %v2235_v62 = vrot.slane %v2156_v4, 2  ;;  %v2237_v13 = vrot.slane %v2227_v40, 2  ;;  %v2337_v40 = vld [vmem:[%s8485_s6] sm:$0xf] }
 0x82c   :  { %v2242_v24 = vadd.f32 %v2234_v58, %v2019_v55  ;;  %v2244_v63 = vadd.f32 %v2236_v43, %v2021_v57  ;;  %v7742_v43 = vrot.slane %v2337_v40, %v111_v30 }
 0x82d   :  { %v2243_v5 = vadd.f32 %v2235_v62, %v2020_v52  ;;  %v2245_v8 = vadd.f32 %v2237_v13, %v2022_v37  ;;  %v7746_v52 = vrot.slane %v2337_v40, %v107_v28 }
 0x82e   :  { %v2246_v21 = vmul.f32 0.5, %v2242_v24  ;;  %v7738_v24 = vrot.slane %v2337_v40, %v103_v26 }
 0x82f   :  { %v2250_v1 = vmul.f32 0.5, %v2243_v5  ;;  %v2255_v38 = vmul.f32 0.5, %v2245_v8  ;;  %v7750_v5 = vrot.slane %v2337_v40, %v115_v31 }
 0x830   :  { %5913 = vtanh.f32 %v2246_v21 }
 0x831   :  { %5915 = vtanh.f32 %v2250_v1 }
 0x832   :  { %5917 = vtanh.f32 %v2244_v63 }
 0x833   :  { %5919 = vtanh.f32 %v2255_v38 }
 0x83a   :  { %v5914_v32 = vpop.eup %5913 }
 0x83b   :  { %v5916_v45 = vpop.eup %5915  ;;  %v2248_v9 = vmul.f32 0.5, %v5914_v32 }
 0x83c   :  { %v2252_v35 = vmul.f32 0.5, %v5916_v45  ;;  %v5918_v39 = vpop.eup %5917 }
 0x83d   :  { %v2249_v27 = vadd.f32 0.5, %v2248_v9  ;;  %v5920_v62 = vpop.eup %5919 }
 0x83e   :  { %v2253_v48 = vadd.f32 0.5, %v2252_v35  ;;  %v2257_v21 = vmul.f32 0.5, %v5920_v62 }
 0x83f   :  { %v2264_v58 = vmul.f32 %v5918_v39, %v2249_v27 }
 0x840   :  { %v2263_v4 = vmul.f32 %v2261_v44, %v2253_v48  ;;  %v2258_v28 = vadd.f32 0.5, %v2257_v21 }
 0x842   :  { %v2265_v55 = vadd.f32 %v2264_v58, %v2263_v4 }
 0x844   :  { %5921 = vtanh.f32 %v2265_v55  ;;  %2268 = vst [vmem:[#allocation5 - $0x6] sm:$0xc0] %v2265_v55 }
 0x845   :  { %2522 = vst [vmem:[#allocation5] sm:$0x3] %v6027_v7 }
 0x849   :  { %v2425_v57 = vpop.f32.mrb[20].mxu0  ;;  %v2502_v1 = vpop.f32.mrb[20].mxu1 }
 0x84a   :  { %v2426_v63 = vadd.f32 %v2425_v57, %v7738_v24  ;;  %v2503_v26 = vadd.f32 %v2502_v1, %v7742_v43  ;;  %v2427_v13 = vpop.f32.mrb[21].mxu0  ;;  %v2504_v37 = vpop.f32.mrb[21].mxu1 }
 0x84b   :  { %v2428_v30 = vadd.f32 %v2427_v13, %v7746_v52  ;;  %v2505_v8 = vadd.f32 %v2504_v37, %v7750_v5 }
 0x84c   :  { %2513 = vst [vmem:[#allocation2] sm:$0xff] %v2426_v63  ;;  %2515 = vst [vmem:[#allocation2 + $0x10] sm:$0xff] %v2503_v26 }
 0x84d   :  { %2514 = vst [vmem:[#allocation2 + $0x8] sm:$0xff] %v2428_v30  ;;  %2516 = vst [vmem:[#allocation2 + $0x18] sm:$0xff] %v2505_v8 }
 0x84e   :  { %v5922_v22 = vpop.eup %5921 }
 0x84f   :  { %v2267_v31 = vmul.f32 %v5922_v22, %v2258_v28  ;;  %v2751_v28 = vld [vmem:[#allocation5] sm:$0x3] }
 0x851   :  { %2269 = vst [vmem:[#allocation4 - $0x6] sm:$0xc0] %v2267_v31  ;;  %2270 = vst [vmem:[#allocation3 + $0x8] sm:$0xc0] %v2267_v31 }
 0x852   :  { %2521 = vst [vmem:[#allocation4] sm:$0x3] %v6027_v7 }
 0x853   :  { %v2523_v58 = vld [vmem:[#allocation2] sm:$0x3] }
 0x854   :  { %v2524_v55 = vld [vmem:[#allocation2 + $0x8] sm:$0x3] }
 0x858   :  { %v2272_v38 = vld [vmem:[#allocation3 + $0x8] sm:$0xff] }
 0x859   :  { %2430 = vmatmul.mubr.f32.gmra.mrb[22].mxu0 %v2272_v38  ;;  %2507 = vmatmul.mubr.f32.gmra.mrb[22].mxu1 %v2272_v38  ;;  %v2527_v32 = vld [vmem:[#allocation4] sm:$0x3] }
 0x85a   :  { %2656 = vmatprep.mubr.f32.mxu0 %v6027_v7  ;;  %2727 = vmatprep.mubr.f32.mxu1 %v6027_v7 }
 0x85d   :  { %2657 = vmatmul.mubr.f32.vlgmr.msra.gmra.mrb[24].mxu0 %v2527_v32  ;;  %2728 = vmatmul.mubr.f32.vlgmr.msra.gmra.mrb[24].mxu1 %v2527_v32 }
 0x85e   :  { %5370 = vmatpush1.bf16.msra.mxu0 %v7464_v50  ;;  %5402 = vmatpush1.bf16.msra.mxu1 %v7473_v3 }
 0x85f   :  { %5372 = vmatprep.subr.bf16.mxu0 %v7487_v36  ;;  %5404 = vmatprep.subr.bf16.mxu1 %v7498_v6 }
 0x860   :  { %2892 = vmatprep.mubr.f32.mxu0 %v6027_v7  ;;  %2963 = vmatprep.mubr.f32.mxu1 %v6027_v7 }
 0x862   :  { %5374 = vmatpush1.bf16.msra.mxu0 %v7500_v14  ;;  %5406 = vmatpush1.bf16.msra.mxu1 %v7509_v47 }
 0x863   :  { %5376 = vmatprep.subr.bf16.mxu0 %v7523_v15  ;;  %5408 = vmatprep.subr.bf16.mxu1 %v7534_v17 }
 0x866   :  { %5378 = vmatpush1.bf16.msra.mxu0 %v7536_v25  ;;  %5410 = vmatpush1.bf16.msra.mxu1 %v7545_v59 }
 0x867   :  { %5380 = vmatprep.subr.bf16.mxu0 %v7556_v34  ;;  %5412 = vmatprep.subr.bf16.mxu1 %v7567_v60 }
 0x86a   :  { %5382 = vmatpush1.bf16.msra.mxu0 %v7579_v12  ;;  %5414 = vmatpush1.bf16.msra.mxu1 %v7581_v23 }
 0x86b   :  { %5384 = vmatprep.subr.bf16.mxu0 %v7595_v19  ;;  %5416 = vmatprep.subr.bf16.mxu1 %v7606_v33 }
 0x86e   :  { %5386 = vmatpush1.bf16.msra.mxu0 %v7608_v41  ;;  %5418 = vmatpush1.bf16.msra.mxu1 %v7617_v56 }
 0x86f   :  { %5388 = vmatprep.subr.bf16.mxu0 %v7631_v49  ;;  %5420 = vmatprep.subr.bf16.mxu1 %v7642_v10 }
 0x872   :  { %5390 = vmatpush1.bf16.msra.mxu0 %v7644_v29  ;;  %5422 = vmatpush1.bf16.msra.mxu1 %v7656_v20 }
 0x873   :  { %5392 = vmatprep.subr.bf16.mxu0 %v7668_v11  ;;  %5424 = vmatprep.subr.bf16.mxu1 %v7670_v51 }
 0x876   :  { %5394 = vmatpush1.bf16.msra.mxu0 %v7683_v54  ;;  %5426 = vmatpush1.bf16.msra.mxu1 %v7690_v16 }
 0x877   :  { %5396 = vmatprep.subr.bf16.mxu0 %v7703_v0  ;;  %5428 = vmatprep.subr.bf16.mxu1 %v7714_v53 }
 0x87a   :  { %5398 = vmatpush1.bf16.msra.mxu0 %v7716_v18  ;;  %5430 = vmatpush1.bf16.msra.mxu1 %v7725_v42 }
 0x87b   :  { %5432 = vmatprep.subr.bf16.mxu0 %v7451_v2  ;;  %5464 = vmatprep.subr.bf16.mxu1 %v7462_v46 }
 0x92c   :  { %v2431_v45 = vpop.f32.mrb[22].mxu0  ;;  %v2508_v9 = vpop.f32.mrb[22].mxu1 }
 0x92d   :  { %v2432_v61 = vadd.f32 %v2431_v45, %v7738_v24  ;;  %v2509_v35 = vadd.f32 %v2508_v9, %v7742_v43  ;;  %v2433_v27 = vpop.f32.mrb[23].mxu0  ;;  %v2510_v39 = vpop.f32.mrb[23].mxu1  ;;  %v2525_v43 = vld [vmem:[#allocation2 + $0x10] sm:$0x3] }
 0x92e   :  { %v2434_v48 = vadd.f32 %v2433_v27, %v7746_v52  ;;  %v2511_v44 = vadd.f32 %v2510_v39, %v7750_v5  ;;  %v2526_v52 = vld [vmem:[#allocation2 + $0x18] sm:$0x3] }
 0x92f   :  { %2517 = vst [vmem:[#allocation2 + $0x20] sm:$0xff] %v2432_v61  ;;  %2519 = vst [vmem:[#allocation2 + $0x30] sm:$0xff] %v2509_v35 }
 0x930   :  { %2518 = vst [vmem:[#allocation2 + $0x28] sm:$0xff] %v2434_v48  ;;  %2520 = vst [vmem:[#allocation2 + $0x38] sm:$0xff] %v2511_v44  ;;  %v2658_v2 = vpop.f32.mrb[24].mxu0  ;;  %v2729_v4 = vpop.f32.mrb[24].mxu1 }
 0x931   :  { %v2734_v46 = vadd.f32 %v2658_v2, %v2523_v58  ;;  %v2660_v40 = vpop.f32.mrb[25].mxu0  ;;  %v2731_v62 = vpop.f32.mrb[25].mxu1  ;;  %v2736_v1 = vadd.f32 %v2729_v4, %v2525_v43 }
 0x932   :  { %v2735_v24 = vadd.f32 %v2660_v40, %v2524_v55  ;;  %v2737_v5 = vadd.f32 %v2731_v62, %v2526_v52  ;;  %v3267_v62 = vld [vmem:[%s8484_s5 + $0x8] sm:$0xff]  ;;  %v3270_v52 = vld [vmem:[%s8484_s5 + $0x20] sm:$0xff] }
 0x933   :  { %v2738_v21 = vmul.f32 0.5, %v2734_v46 }
 0x934   :  { %v2742_v57 = vmul.f32 0.5, %v2735_v24  ;;  %v2747_v63 = vmul.f32 0.5, %v2737_v5  ;;  %v3271_v24 = vld [vmem:[%s8484_s5 + $0x28] sm:$0xff] }
 0x935   :  { %5923 = vtanh.f32 %v2738_v21  ;;  %v3269_v21 = vld [vmem:[%s8484_s5 + $0x18] sm:$0xff]  ;;  %v7840_v43 = vpack.c.bf16 %v3271_v24, %v3267_v62 }
 0x936   :  { %5925 = vtanh.f32 %v2742_v57  ;;  %v3273_v57 = vld [vmem:[%s8484_s5 + $0x38] sm:$0xff] }
 0x937   :  { %5927 = vtanh.f32 %v2736_v1  ;;  %v3266_v1 = vld [vmem:[%s8484_s5] sm:$0xff]  ;;  %v7851_v5 = vpack.c.bf16 %v3273_v57, %v3269_v21  ;;  %v3313_v24 = vld [vmem:[%s8484_s5 + $0x178] sm:$0xff] }
 0x938   :  { %5929 = vtanh.f32 %v2747_v63  ;;  %v7853_v63 = vpack.c.bf16 %v3270_v52, %v3266_v1  ;;  %v3306_v21 = vld [vmem:[%s8484_s5 + $0x140] sm:$0xff] }
 0x939   :  { %v3310_v57 = vld [vmem:[%s8484_s5 + $0x160] sm:$0xff] }
 0x93a   :  { %v8033_v52 = vpack.c.bf16 %v3310_v57, %v3306_v21  ;;  %v3012_v57 = vld [vmem:[#allocation2 + $0x10] sm:$0x30] }
 0x93f   :  { %v5924_v26 = vpop.eup %5923 }
 0x940   :  { %v5926_v13 = vpop.eup %5925  ;;  %v2740_v37 = vmul.f32 0.5, %v5924_v26  ;;  %v3268_v26 = vld [vmem:[%s8484_s5 + $0x10] sm:$0xff] }
 0x941   :  { %v2744_v30 = vmul.f32 0.5, %v5926_v13  ;;  %v5928_v22 = vpop.eup %5927  ;;  %v3272_v13 = vld [vmem:[%s8484_s5 + $0x30] sm:$0xff] }
 0x942   :  { %v2741_v8 = vadd.f32 0.5, %v2740_v37  ;;  %v5930_v9 = vpop.eup %5929  ;;  %v7862_v37 = vpack.c.bf16 %v3272_v13, %v3268_v26  ;;  %v3308_v26 = vld [vmem:[%s8484_s5 + $0x150] sm:$0xff] }
 0x943   :  { %v2745_v31 = vadd.f32 0.5, %v2744_v30  ;;  %v2749_v61 = vmul.f32 0.5, %v5930_v9  ;;  %v3275_v30 = vld [vmem:[%s8484_s5 + $0x48] sm:$0xff]  ;;  %v3312_v13 = vld [vmem:[%s8484_s5 + $0x170] sm:$0xff] }
 0x944   :  { %v2753_v38 = vmul.f32 %v5928_v22, %v2741_v8  ;;  %v3279_v8 = vld [vmem:[%s8484_s5 + $0x68] sm:$0xff] }
 0x945   :  { %v2752_v32 = vmul.f32 %v2751_v28, %v2745_v31  ;;  %v2750_v35 = vadd.f32 0.5, %v2749_v61  ;;  %v3277_v28 = vld [vmem:[%s8484_s5 + $0x58] sm:$0xff]  ;;  %v7876_v22 = vpack.c.bf16 %v3279_v8, %v3275_v30  ;;  %v3276_v61 = vld [vmem:[%s8484_s5 + $0x50] sm:$0xff]  ;;  %v8042_v30 = vpack.c.bf16 %v3312_v13, %v3308_v26  ;;  %v3315_v8 = vld [vmem:[%s8484_s5 + $0x188] sm:$0xff] }
 0x946   :  { %v3281_v31 = vld [vmem:[%s8484_s5 + $0x78] sm:$0xff] }
 0x947   :  { %v2754_v45 = vadd.f32 %v2753_v38, %v2752_v32  ;;  %v3274_v38 = vld [vmem:[%s8484_s5 + $0x40] sm:$0xff] }
 0x948   :  { %v3278_v32 = vld [vmem:[%s8484_s5 + $0x60] sm:$0xff] }
 0x949   :  { %5931 = vtanh.f32 %v2754_v45  ;;  %2757 = vst [vmem:[#allocation5] sm:$0x3] %v2754_v45  ;;  %v7887_v45 = vpack.c.bf16 %v3281_v31, %v3277_v28  ;;  %v7889_v9 = vpack.c.bf16 %v3278_v32, %v3274_v38  ;;  %v3319_v28 = vld [vmem:[%s8484_s5 + $0x1a8] sm:$0xff]  ;;  %v3317_v31 = vld [vmem:[%s8484_s5 + $0x198] sm:$0xff] }
 0x94a   :  { %v8055_v38 = vpack.c.bf16 %v3319_v28, %v3315_v8  ;;  %v3321_v32 = vld [vmem:[%s8484_s5 + $0x1b8] sm:$0xff] }
 0x94b   :  { %v3013_v28 = vld [vmem:[#allocation2 + $0x18] sm:$0x30] }
 0x953   :  { %v5932_v27 = vpop.eup %5931 }
 0x954   :  { %v2756_v39 = vmul.f32 %v5932_v27, %v2750_v35  ;;  %v3280_v35 = vld [vmem:[%s8484_s5 + $0x70] sm:$0xff] }
 0x955   :  { %v7898_v27 = vpack.c.bf16 %v3280_v35, %v3276_v61  ;;  %v3314_v61 = vld [vmem:[%s8484_s5 + $0x180] sm:$0xff] }
 0x956   :  { %2758 = vst [vmem:[#allocation4] sm:$0x3] %v2756_v39  ;;  %v3283_v39 = vld [vmem:[%s8484_s5 + $0x88] sm:$0xff]  ;;  %v3318_v35 = vld [vmem:[%s8484_s5 + $0x1a0] sm:$0xff] }
 0x95d   :  { %v2763_v48 = vld [vmem:[#allocation4] sm:$0x3] }
 0x95e   :  { %2893 = vmatmul.mubr.f32.vlgmr.msra.gmra.mrb[26].mxu0 %v2763_v48  ;;  %2964 = vmatmul.mubr.f32.vlgmr.msra.gmra.mrb[26].mxu1 %v2763_v48  ;;  %v3287_v48 = vld [vmem:[%s8484_s5 + $0xa8] sm:$0xff] }
 0x95f   :  { %5434 = vmatpush1.bf16.msra.mxu0 %v7464_v50  ;;  %5466 = vmatpush1.bf16.msra.mxu1 %v7473_v3 }
 0x960   :  { %5436 = vmatprep.subr.bf16.mxu0 %v7487_v36  ;;  %5468 = vmatprep.subr.bf16.mxu1 %v7498_v6 }
 0x961   :  { %3143 = vmatprep.mubr.f32.mxu0 %v6027_v7  ;;  %3214 = vmatprep.mubr.f32.mxu1 %v6027_v7 }
 0x963   :  { %5438 = vmatpush1.bf16.msra.mxu0 %v7500_v14  ;;  %5470 = vmatpush1.bf16.msra.mxu1 %v7509_v47  ;;  %v2759_v47 = vld [vmem:[#allocation2] sm:$0xc] }
 0x964   :  { %5440 = vmatprep.subr.bf16.mxu0 %v7523_v15  ;;  %5472 = vmatprep.subr.bf16.mxu1 %v7534_v17 }
 0x967   :  { %5442 = vmatpush1.bf16.msra.mxu0 %v7536_v25  ;;  %5474 = vmatpush1.bf16.msra.mxu1 %v7545_v59  ;;  %v2760_v59 = vld [vmem:[#allocation2 + $0x8] sm:$0xc] }
 0x968   :  { %5444 = vmatprep.subr.bf16.mxu0 %v7556_v34  ;;  %5476 = vmatprep.subr.bf16.mxu1 %v7567_v60 }
 0x96b   :  { %5446 = vmatpush1.bf16.msra.mxu0 %v7579_v12  ;;  %5478 = vmatpush1.bf16.msra.mxu1 %v7581_v23  ;;  %v2761_v12 = vld [vmem:[#allocation2 + $0x10] sm:$0xc] }
 0x96c   :  { %5448 = vmatprep.subr.bf16.mxu0 %v7595_v19  ;;  %5480 = vmatprep.subr.bf16.mxu1 %v7606_v33 }
 0x96f   :  { %5450 = vmatpush1.bf16.msra.mxu0 %v7608_v41  ;;  %5482 = vmatpush1.bf16.msra.mxu1 %v7617_v56  ;;  %v2762_v41 = vld [vmem:[#allocation2 + $0x18] sm:$0xc] }
 0x970   :  { %5452 = vmatprep.subr.bf16.mxu0 %v7631_v49  ;;  %5484 = vmatprep.subr.bf16.mxu1 %v7642_v10 }
 0x973   :  { %5454 = vmatpush1.bf16.msra.mxu0 %v7644_v29  ;;  %5486 = vmatpush1.bf16.msra.mxu1 %v7656_v20 }
 0x974   :  { %5456 = vmatprep.subr.bf16.mxu0 %v7668_v11  ;;  %5488 = vmatprep.subr.bf16.mxu1 %v7670_v51  ;;  %v2999_v11 = vld [vmem:[#allocation5] sm:$0x3] }
 0x977   :  { %5458 = vmatpush1.bf16.msra.mxu0 %v7683_v54  ;;  %5490 = vmatpush1.bf16.msra.mxu1 %v7690_v16 }
 0x978   :  { %5460 = vmatprep.subr.bf16.mxu0 %v7703_v0  ;;  %5492 = vmatprep.subr.bf16.mxu1 %v7714_v53  ;;  %v3001_v53 = vrot.slane %v2999_v11, 6  ;;  %v3299_v11 = vld [vmem:[%s8484_s5 + $0x108] sm:$0xff] }
 0x97b   :  { %5462 = vmatpush1.bf16.msra.mxu0 %v7716_v18  ;;  %5494 = vmatpush1.bf16.msra.mxu1 %v7725_v42 }
 0x97c   :  { %5496 = vmatprep.subr.bf16.mxu0 %v7840_v43  ;;  %5528 = vmatprep.subr.bf16.mxu1 %v7851_v5 }
 0xa31   :  { %v2894_v50 = vpop.f32.mrb[26].mxu0  ;;  %v2965_v3 = vpop.f32.mrb[26].mxu1 }
 0xa32   :  { %v2974_v36 = vrot.slane %v2894_v50, 6  ;;  %v2896_v6 = vpop.f32.mrb[27].mxu0  ;;  %v2967_v14 = vpop.f32.mrb[27].mxu1  ;;  %v2976_v25 = vrot.slane %v2965_v3, 6  ;;  %v3285_v50 = vld [vmem:[%s8484_s5 + $0x98] sm:$0xff]  ;;  %v7912_v3 = vpack.c.bf16 %v3287_v48, %v3283_v39  ;;  %v8067_v39 = vpack.c.bf16 %v3321_v32, %v3317_v31 }
 0xa33   :  { %v2975_v15 = vrot.slane %v2896_v6, 6  ;;  %v2977_v33 = vrot.slane %v2967_v14, 6  ;;  %v3282_v6 = vld [vmem:[%s8484_s5 + $0x80] sm:$0xff]  ;;  %v8069_v48 = vpack.c.bf16 %v3318_v35, %v3314_v61 }
 0xa34   :  { %v2982_v17 = vadd.f32 %v2974_v36, %v2759_v47  ;;  %v2984_v19 = vadd.f32 %v2976_v25, %v2761_v12  ;;  %v3289_v36 = vld [vmem:[%s8484_s5 + $0xb8] sm:$0xff]  ;;  %v3286_v14 = vld [vmem:[%s8484_s5 + $0xa0] sm:$0xff]  ;;  %v3288_v25 = vld [vmem:[%s8484_s5 + $0xb0] sm:$0xff] }
 0xa35   :  { %v2983_v34 = vadd.f32 %v2975_v15, %v2760_v59  ;;  %v2985_v56 = vadd.f32 %v2977_v33, %v2762_v41  ;;  %v7923_v47 = vpack.c.bf16 %v3289_v36, %v3285_v50  ;;  %v7925_v15 = vpack.c.bf16 %v3286_v14, %v3282_v6  ;;  %v3293_v12 = vld [vmem:[%s8484_s5 + $0xd8] sm:$0xff]  ;;  %v3290_v33 = vld [vmem:[%s8484_s5 + $0xc0] sm:$0xff]  ;;  %v3316_v50 = vld [vmem:[%s8484_s5 + $0x190] sm:$0xff] }
 0xa36   :  { %v2986_v60 = vmul.f32 0.5, %v2982_v17  ;;  %v3284_v17 = vld [vmem:[%s8484_s5 + $0x90] sm:$0xff]  ;;  %v3294_v41 = vld [vmem:[%s8484_s5 + $0xe0] sm:$0xff]  ;;  %v3323_v6 = vld [vmem:[%s8484_s5 + $0x1c8] sm:$0xff] }
 0xa37   :  { %v2990_v23 = vmul.f32 0.5, %v2983_v34  ;;  %v2995_v49 = vmul.f32 0.5, %v2985_v56  ;;  %v7934_v59 = vpack.c.bf16 %v3288_v25, %v3284_v17  ;;  %v3291_v34 = vld [vmem:[%s8484_s5 + $0xc8] sm:$0xff]  ;;  %v3320_v36 = vld [vmem:[%s8484_s5 + $0x1b0] sm:$0xff]  ;;  %v3325_v25 = vld [vmem:[%s8484_s5 + $0x1d8] sm:$0xff] }
 0xa38   :  { %5933 = vtanh.f32 %v2986_v60  ;;  %v3295_v60 = vld [vmem:[%s8484_s5 + $0xe8] sm:$0xff]  ;;  %v8081_v14 = vpack.c.bf16 %v3320_v36, %v3316_v50 }
 0xa39   :  { %5935 = vtanh.f32 %v2990_v23  ;;  %v7948_v23 = vpack.c.bf16 %v3295_v60, %v3291_v34  ;;  %v3327_v17 = vld [vmem:[%s8484_s5 + $0x1e8] sm:$0xff]  ;;  %v3329_v34 = vld [vmem:[%s8484_s5 + $0x1f8] sm:$0xff] }
 0xa3a   :  { %5937 = vtanh.f32 %v2984_v19  ;;  %v3297_v19 = vld [vmem:[%s8484_s5 + $0xf8] sm:$0xff]  ;;  %v8093_v60 = vpack.c.bf16 %v3327_v17, %v3323_v6 }
 0xa3b   :  { %5939 = vtanh.f32 %v2995_v49  ;;  %v7959_v56 = vpack.c.bf16 %v3297_v19, %v3293_v12  ;;  %v7961_v49 = vpack.c.bf16 %v3294_v41, %v3290_v33  ;;  %v8095_v12 = vpack.c.bf16 %v3329_v34, %v3325_v25  ;;  %v3322_v19 = vld [vmem:[%s8484_s5 + $0x1c0] sm:$0xff]  ;;  %v3324_v41 = vld [vmem:[%s8484_s5 + $0x1d0] sm:$0xff] }
 0xa3c   :  { %v3326_v33 = vld [vmem:[%s8484_s5 + $0x1e0] sm:$0xff] }
 0xa42   :  { %v5934_v10 = vpop.eup %5933 }
 0xa43   :  { %v5936_v29 = vpop.eup %5935  ;;  %v2988_v20 = vmul.f32 0.5, %v5934_v10  ;;  %v3292_v10 = vld [vmem:[%s8484_s5 + $0xd0] sm:$0xff] }
 0xa44   :  { %v2992_v51 = vmul.f32 0.5, %v5936_v29  ;;  %v5938_v16 = vpop.eup %5937  ;;  %v3296_v29 = vld [vmem:[%s8484_s5 + $0xf0] sm:$0xff] }
 0xa45   :  { %v2989_v54 = vadd.f32 0.5, %v2988_v20  ;;  %v5940_v58 = vpop.eup %5939  ;;  %v7970_v20 = vpack.c.bf16 %v3296_v29, %v3292_v10  ;;  %v8107_v10 = vpack.c.bf16 %v3326_v33, %v3322_v19  ;;  %v3328_v29 = vld [vmem:[%s8484_s5 + $0x1f0] sm:$0xff] }
 0xa46   :  { %v2993_v0 = vadd.f32 0.5, %v2992_v51  ;;  %v2997_v2 = vmul.f32 0.5, %v5940_v58  ;;  %v3303_v51 = vld [vmem:[%s8484_s5 + $0x128] sm:$0xff]  ;;  %v3300_v58 = vld [vmem:[%s8484_s5 + $0x110] sm:$0xff] }
 0xa47   :  { %v3004_v18 = vmul.f32 %v5938_v16, %v2989_v54  ;;  %v3301_v54 = vld [vmem:[%s8484_s5 + $0x118] sm:$0xff]  ;;  %v7984_v16 = vpack.c.bf16 %v3303_v51, %v3299_v11  ;;  %v8114_v11 = vpack.c.bf16 %v3328_v29, %v3324_v41 }
 0xa48   :  { %v3003_v42 = vmul.f32 %v3001_v53, %v2993_v0  ;;  %v2998_v4 = vadd.f32 0.5, %v2997_v2  ;;  %v3305_v0 = vld [vmem:[%s8484_s5 + $0x138] sm:$0xff]  ;;  %v3298_v53 = vld [vmem:[%s8484_s5 + $0x100] sm:$0xff]  ;;  %v3304_v2 = vld [vmem:[%s8484_s5 + $0x130] sm:$0xff] }
 0xa4a   :  { %v3005_v44 = vadd.f32 %v3004_v18, %v3003_v42  ;;  %v3302_v18 = vld [vmem:[%s8484_s5 + $0x120] sm:$0xff]  ;;  %v7995_v42 = vpack.c.bf16 %v3305_v0, %v3301_v54 }
 0xa4c   :  { %5941 = vtanh.f32 %v3005_v44  ;;  %3008 = vst [vmem:[#allocation5 - $0x2] sm:$0xc] %v3005_v44  ;;  %v7997_v44 = vpack.c.bf16 %v3302_v18, %v3298_v53 }
 0xa53   :  { %v3250_v36 = vld [vmem:[#allocation5] sm:$0x3] }
 0xa54   :  { %v3252_v19 = vrot.slane %v3250_v36, 4  ;;  %v3264_v36 = vld [vmem:[#allocation2 + $0x18] sm:$0xc0] }
 0xa56   :  { %v5942_v46 = vpop.eup %5941 }
 0xa57   :  { %v3007_v55 = vmul.f32 %v5942_v46, %v2998_v4  ;;  %v8006_v4 = vpack.c.bf16 %v3304_v2, %v3300_v58  ;;  %v3307_v46 = vld [vmem:[%s8484_s5 + $0x148] sm:$0xff]  ;;  %v3010_v58 = vld [vmem:[#allocation2] sm:$0x30] }
 0xa59   :  { %3009 = vst [vmem:[#allocation4 - $0x2] sm:$0xc] %v3007_v55  ;;  %v3311_v55 = vld [vmem:[%s8484_s5 + $0x168] sm:$0xff] }
 0xa5a   :  { %v8020_v62 = vpack.c.bf16 %v3311_v55, %v3307_v46 }
 0xa60   :  { %v3014_v40 = vld [vmem:[#allocation4] sm:$0x3] }
 0xa61   :  { %3144 = vmatmul.mubr.f32.vlgmr.msra.gmra.mrb[28].mxu0 %v3014_v40  ;;  %3215 = vmatmul.mubr.f32.vlgmr.msra.gmra.mrb[28].mxu1 %v3014_v40  ;;  %v3309_v40 = vld [vmem:[%s8484_s5 + $0x158] sm:$0xff] }
 0xa62   :  { %3394 = vmatprep.mubr.f32.mxu0 %v6027_v7  ;;  %3465 = vmatprep.mubr.f32.mxu1 %v6027_v7  ;;  %v8031_v1 = vpack.c.bf16 %v3313_v24, %v3309_v40  ;;  %v3011_v40 = vld [vmem:[#allocation2 + $0x8] sm:$0x30] }
 0xa63   :  { %5498 = vmatpush1.bf16.msra.mxu0 %v7853_v63  ;;  %5530 = vmatpush1.bf16.msra.mxu1 %v7862_v37 }
 0xa64   :  { %5500 = vmatprep.subr.bf16.mxu0 %v7876_v22  ;;  %5532 = vmatprep.subr.bf16.mxu1 %v7887_v45 }
 0xa67   :  { %5502 = vmatpush1.bf16.msra.mxu0 %v7889_v9  ;;  %5534 = vmatpush1.bf16.msra.mxu1 %v7898_v27 }
 0xa68   :  { %5504 = vmatprep.subr.bf16.mxu0 %v7912_v3  ;;  %5536 = vmatprep.subr.bf16.mxu1 %v7923_v47 }
 0xa6b   :  { %5506 = vmatpush1.bf16.msra.mxu0 %v7925_v15  ;;  %5538 = vmatpush1.bf16.msra.mxu1 %v7934_v59 }
 0xa6c   :  { %5508 = vmatprep.subr.bf16.mxu0 %v7948_v23  ;;  %5540 = vmatprep.subr.bf16.mxu1 %v7959_v56 }
 0xa6f   :  { %5510 = vmatpush1.bf16.msra.mxu0 %v7961_v49  ;;  %5542 = vmatpush1.bf16.msra.mxu1 %v7970_v20 }
 0xa70   :  { %5512 = vmatprep.subr.bf16.mxu0 %v7984_v16  ;;  %5544 = vmatprep.subr.bf16.mxu1 %v7995_v42 }
 0xa73   :  { %5514 = vmatpush1.bf16.msra.mxu0 %v7997_v44  ;;  %5546 = vmatpush1.bf16.msra.mxu1 %v8006_v4 }
 0xa74   :  { %5516 = vmatprep.subr.bf16.mxu0 %v8020_v62  ;;  %5548 = vmatprep.subr.bf16.mxu1 %v8031_v1 }
 0xa77   :  { %5518 = vmatpush1.bf16.msra.mxu0 %v8033_v52  ;;  %5550 = vmatpush1.bf16.msra.mxu1 %v8042_v30 }
 0xa78   :  { %5520 = vmatprep.subr.bf16.mxu0 %v8055_v38  ;;  %5552 = vmatprep.subr.bf16.mxu1 %v8067_v39 }
 0xa7b   :  { %5522 = vmatpush1.bf16.msra.mxu0 %v8069_v48  ;;  %5554 = vmatpush1.bf16.msra.mxu1 %v8081_v14 }
 0xa7c   :  { %5524 = vmatprep.subr.bf16.mxu0 %v8093_v60  ;;  %5556 = vmatprep.subr.bf16.mxu1 %v8095_v12 }
 0xa7f   :  { %5526 = vmatpush1.bf16.msra.mxu0 %v8107_v10  ;;  %5558 = vmatpush1.bf16.msra.mxu1 %v8114_v11 }
 0xa80   :  { %5560 = vmatprep.subr.bf16.mxu0 %v7840_v43  ;;  %5592 = vmatprep.subr.bf16.mxu1 %v7851_v5 }
 0xb34   :  { %v3145_v51 = vpop.f32.mrb[28].mxu0  ;;  %v3216_v54 = vpop.f32.mrb[28].mxu1 }
 0xb35   :  { %v3225_v0 = vrot.slane %v3145_v51, 4  ;;  %v3147_v53 = vpop.f32.mrb[29].mxu0  ;;  %v3218_v18 = vpop.f32.mrb[29].mxu1  ;;  %v3227_v55 = vrot.slane %v3216_v54, 4 }
 0xb36   :  { %v3226_v2 = vrot.slane %v3147_v53, 4  ;;  %v3228_v8 = vrot.slane %v3218_v18, 4 }
 0xb37   :  { %v3233_v46 = vadd.f32 %v3225_v0, %v3010_v58  ;;  %v3235_v13 = vadd.f32 %v3227_v55, %v3012_v57 }
 0xb38   :  { %v3234_v24 = vadd.f32 %v3226_v2, %v3011_v40  ;;  %v3236_v31 = vadd.f32 %v3228_v8, %v3013_v28  ;;  %v3262_v8 = vld [vmem:[#allocation2 + $0x8] sm:$0xc0] }
 0xb39   :  { %v3237_v21 = vmul.f32 0.5, %v3233_v46 }
 0xb3a   :  { %v3241_v26 = vmul.f32 0.5, %v3234_v24  ;;  %v3246_v32 = vmul.f32 0.5, %v3236_v31 }
 0xb3b   :  { %5943 = vtanh.f32 %v3237_v21  ;;  %v3261_v21 = vld [vmem:[#allocation2] sm:$0xc0] }
 0xb3c   :  { %5945 = vtanh.f32 %v3241_v26 }
 0xb3d   :  { %5947 = vtanh.f32 %v3235_v13 }
 0xb3e   :  { %5949 = vtanh.f32 %v3246_v32  ;;  %v3263_v32 = vld [vmem:[#allocation2 + $0x10] sm:$0xc0] }
 0xb45   :  { %v5944_v61 = vpop.eup %5943 }
 0xb46   :  { %v5946_v35 = vpop.eup %5945  ;;  %v3239_v50 = vmul.f32 0.5, %v5944_v61 }
 0xb47   :  { %v3243_v6 = vmul.f32 0.5, %v5946_v35  ;;  %v5948_v25 = vpop.eup %5947 }
 0xb48   :  { %v3240_v17 = vadd.f32 0.5, %v3239_v50  ;;  %v5950_v51 = vpop.eup %5949 }
 0xb49   :  { %v3244_v34 = vadd.f32 0.5, %v3243_v6  ;;  %v3248_v54 = vmul.f32 0.5, %v5950_v51 }
 0xb4a   :  { %v3255_v33 = vmul.f32 %v5948_v25, %v3240_v17 }
 0xb4b   :  { %v3254_v41 = vmul.f32 %v3252_v19, %v3244_v34  ;;  %v3249_v0 = vadd.f32 0.5, %v3248_v54 }
 0xb4d   :  { %v3256_v29 = vadd.f32 %v3255_v33, %v3254_v41 }
 0xb4f   :  { %5951 = vtanh.f32 %v3256_v29  ;;  %3259 = vst [vmem:[#allocation5 - $0x4] sm:$0x30] %v3256_v29 }
 0xb56   :  { %v3501_v33 = vld [vmem:[#allocation5] sm:$0x3] }
 0xb59   :  { %v5952_v53 = vpop.eup %5951 }
 0xb5a   :  { %v3258_v18 = vmul.f32 %v5952_v53, %v3249_v0  ;;  %v3503_v0 = vrot.slane %v3501_v33, 2 }
 0xb5c   :  { %3260 = vst [vmem:[#allocation4 - $0x4] sm:$0x30] %v3258_v18 }
 0xb63   :  { %v3265_v58 = vld [vmem:[#allocation4] sm:$0x3] }
 0xb64   :  { %3395 = vmatmul.mubr.f32.vlgmr.msra.gmra.mrb[30].mxu0 %v3265_v58  ;;  %3466 = vmatmul.mubr.f32.vlgmr.msra.gmra.mrb[30].mxu1 %v3265_v58 }
 0xb65   :  { %5562 = vmatpush1.bf16.msra.mxu0 %v7853_v63  ;;  %5594 = vmatpush1.bf16.msra.mxu1 %v7862_v37 }
 0xb66   :  { %5564 = vmatprep.subr.bf16.mxu0 %v7876_v22  ;;  %5596 = vmatprep.subr.bf16.mxu1 %v7887_v45 }
 0xb67   :  { %3645 = vmatprep.mubr.f32.mxu0 %v6027_v7  ;;  %3716 = vmatprep.mubr.f32.mxu1 %v6027_v7 }
 0xb69   :  { %5566 = vmatpush1.bf16.msra.mxu0 %v7889_v9  ;;  %5598 = vmatpush1.bf16.msra.mxu1 %v7898_v27 }
 0xb6a   :  { %5568 = vmatprep.subr.bf16.mxu0 %v7912_v3  ;;  %5600 = vmatprep.subr.bf16.mxu1 %v7923_v47 }
 0xb6d   :  { %5570 = vmatpush1.bf16.msra.mxu0 %v7925_v15  ;;  %5602 = vmatpush1.bf16.msra.mxu1 %v7934_v59 }
 0xb6e   :  { %5572 = vmatprep.subr.bf16.mxu0 %v7948_v23  ;;  %5604 = vmatprep.subr.bf16.mxu1 %v7959_v56 }
 0xb71   :  { %5574 = vmatpush1.bf16.msra.mxu0 %v7961_v49  ;;  %5606 = vmatpush1.bf16.msra.mxu1 %v7970_v20 }
 0xb72   :  { %5576 = vmatprep.subr.bf16.mxu0 %v7984_v16  ;;  %5608 = vmatprep.subr.bf16.mxu1 %v7995_v42 }
 0xb75   :  { %5578 = vmatpush1.bf16.msra.mxu0 %v7997_v44  ;;  %5610 = vmatpush1.bf16.msra.mxu1 %v8006_v4 }
 0xb76   :  { %5580 = vmatprep.subr.bf16.mxu0 %v8020_v62  ;;  %5612 = vmatprep.subr.bf16.mxu1 %v8031_v1 }
 0xb79   :  { %5582 = vmatpush1.bf16.msra.mxu0 %v8033_v52  ;;  %5614 = vmatpush1.bf16.msra.mxu1 %v8042_v30 }
 0xb7a   :  { %5584 = vmatprep.subr.bf16.mxu0 %v8055_v38  ;;  %5616 = vmatprep.subr.bf16.mxu1 %v8067_v39 }
 0xb7d   :  { %5586 = vmatpush1.bf16.msra.mxu0 %v8069_v48  ;;  %5618 = vmatpush1.bf16.msra.mxu1 %v8081_v14 }
 0xb7e   :  { %5588 = vmatprep.subr.bf16.mxu0 %v8093_v60  ;;  %5620 = vmatprep.subr.bf16.mxu1 %v8095_v12 }
 0xb81   :  { %5590 = vmatpush1.bf16.msra.mxu0 %v8107_v10  ;;  %5622 = vmatpush1.bf16.msra.mxu1 %v8114_v11 }
 0xb82   :  { %5624 = vmatprep.subr.bf16.mxu0 %v7840_v43  ;;  %5656 = vmatprep.subr.bf16.mxu1 %v7851_v5 }
 0xc37   :  { %v3396_v2 = vpop.f32.mrb[30].mxu0  ;;  %v3467_v46 = vpop.f32.mrb[30].mxu1 }
 0xc38   :  { %v3476_v55 = vrot.slane %v3396_v2, 2  ;;  %v3398_v40 = vpop.f32.mrb[31].mxu0  ;;  %v3469_v24 = vpop.f32.mrb[31].mxu1  ;;  %v3478_v13 = vrot.slane %v3467_v46, 2 }
 0xc39   :  { %v3477_v57 = vrot.slane %v3398_v40, 2  ;;  %v3479_v50 = vrot.slane %v3469_v24, 2 }
 0xc3a   :  { %v3484_v26 = vadd.f32 %v3476_v55, %v3261_v21  ;;  %v3486_v35 = vadd.f32 %v3478_v13, %v3263_v32 }
 0xc3b   :  { %v3485_v28 = vadd.f32 %v3477_v57, %v3262_v8  ;;  %v3487_v6 = vadd.f32 %v3479_v50, %v3264_v36  ;;  %v3512_v57 = vld [vmem:[#allocation2 + $0x20] sm:$0x3]  ;;  %v3514_v50 = vld [vmem:[#allocation2 + $0x30] sm:$0x3] }
 0xc3c   :  { %v3488_v31 = vmul.f32 0.5, %v3484_v26 }
 0xc3d   :  { %v3492_v61 = vmul.f32 0.5, %v3485_v28  ;;  %v3497_v17 = vmul.f32 0.5, %v3487_v6  ;;  %v3513_v28 = vld [vmem:[#allocation2 + $0x28] sm:$0x3] }
 0xc3e   :  { %5953 = vtanh.f32 %v3488_v31 }
 0xc3f   :  { %5955 = vtanh.f32 %v3492_v61 }
 0xc40   :  { %5957 = vtanh.f32 %v3486_v35 }
 0xc41   :  { %5959 = vtanh.f32 %v3497_v17  ;;  %v3515_v17 = vld [vmem:[#allocation2 + $0x38] sm:$0x3] }
 0xc48   :  { %v5954_v25 = vpop.eup %5953 }
 0xc49   :  { %v5956_v34 = vpop.eup %5955  ;;  %v3490_v19 = vmul.f32 0.5, %v5954_v25 }
 0xc4a   :  { %v3494_v41 = vmul.f32 0.5, %v5956_v34  ;;  %v5958_v51 = vpop.eup %5957 }
 0xc4b   :  { %v3491_v29 = vadd.f32 0.5, %v3490_v19  ;;  %v5960_v2 = vpop.eup %5959 }
 0xc4c   :  { %v3495_v54 = vadd.f32 0.5, %v3494_v41  ;;  %v3499_v46 = vmul.f32 0.5, %v5960_v2 }
 0xc4d   :  { %v3506_v53 = vmul.f32 %v5958_v51, %v3491_v29 }
 0xc4e   :  { %v3505_v18 = vmul.f32 %v3503_v0, %v3495_v54  ;;  %v3500_v55 = vadd.f32 0.5, %v3499_v46 }
 0xc50   :  { %v3507_v58 = vadd.f32 %v3506_v53, %v3505_v18 }
 0xc52   :  { %5961 = vtanh.f32 %v3507_v58  ;;  %3510 = vst [vmem:[#allocation5 - $0x6] sm:$0xc0] %v3507_v58 }
 0xc59   :  { %v3740_v54 = vld [vmem:[#allocation5] sm:$0x3] }
 0xc5c   :  { %v5962_v40 = vpop.eup %5961 }
 0xc5d   :  { %v3509_v24 = vmul.f32 %v5962_v40, %v3500_v55 }
 0xc5f   :  { %3511 = vst [vmem:[#allocation4 - $0x6] sm:$0xc0] %v3509_v24 }
 0xc66   :  { %v3516_v21 = vld [vmem:[#allocation4] sm:$0x3] }
 0xc67   :  { %3646 = vmatmul.mubr.f32.vlgmr.msra.gmra.mrb[32].mxu0 %v3516_v21  ;;  %3717 = vmatmul.mubr.f32.vlgmr.msra.gmra.mrb[32].mxu1 %v3516_v21 }
 0xc68   :  { %5626 = vmatpush1.bf16.msra.mxu0 %v7853_v63  ;;  %5658 = vmatpush1.bf16.msra.mxu1 %v7862_v37 }
 0xc69   :  { %5628 = vmatprep.subr.bf16.mxu0 %v7876_v22  ;;  %5660 = vmatprep.subr.bf16.mxu1 %v7887_v45 }
 0xc6a   :  { %3881 = vmatprep.mubr.f32.mxu0 %v6027_v7  ;;  %3952 = vmatprep.mubr.f32.mxu1 %v6027_v7 }
 0xc6c   :  { %5630 = vmatpush1.bf16.msra.mxu0 %v7889_v9  ;;  %5662 = vmatpush1.bf16.msra.mxu1 %v7898_v27 }
 0xc6d   :  { %5632 = vmatprep.subr.bf16.mxu0 %v7912_v3  ;;  %5664 = vmatprep.subr.bf16.mxu1 %v7923_v47 }
 0xc70   :  { %5634 = vmatpush1.bf16.msra.mxu0 %v7925_v15  ;;  %5666 = vmatpush1.bf16.msra.mxu1 %v7934_v59 }
 0xc71   :  { %5636 = vmatprep.subr.bf16.mxu0 %v7948_v23  ;;  %5668 = vmatprep.subr.bf16.mxu1 %v7959_v56 }
 0xc74   :  { %5638 = vmatpush1.bf16.msra.mxu0 %v7961_v49  ;;  %5670 = vmatpush1.bf16.msra.mxu1 %v7970_v20 }
 0xc75   :  { %5640 = vmatprep.subr.bf16.mxu0 %v7984_v16  ;;  %5672 = vmatprep.subr.bf16.mxu1 %v7995_v42 }
 0xc78   :  { %5642 = vmatpush1.bf16.msra.mxu0 %v7997_v44  ;;  %5674 = vmatpush1.bf16.msra.mxu1 %v8006_v4 }
 0xc79   :  { %5644 = vmatprep.subr.bf16.mxu0 %v8020_v62  ;;  %5676 = vmatprep.subr.bf16.mxu1 %v8031_v1 }
 0xc7c   :  { %5646 = vmatpush1.bf16.msra.mxu0 %v8033_v52  ;;  %5678 = vmatpush1.bf16.msra.mxu1 %v8042_v30 }
 0xc7d   :  { %5648 = vmatprep.subr.bf16.mxu0 %v8055_v38  ;;  %5680 = vmatprep.subr.bf16.mxu1 %v8067_v39 }
 0xc80   :  { %5650 = vmatpush1.bf16.msra.mxu0 %v8069_v48  ;;  %5682 = vmatpush1.bf16.msra.mxu1 %v8081_v14 }
 0xc81   :  { %5652 = vmatprep.subr.bf16.mxu0 %v8093_v60  ;;  %5684 = vmatprep.subr.bf16.mxu1 %v8095_v12 }
 0xc84   :  { %5654 = vmatpush1.bf16.msra.mxu0 %v8107_v10  ;;  %5686 = vmatpush1.bf16.msra.mxu1 %v8114_v11 }
 0xc85   :  { %5688 = vmatprep.subr.bf16.mxu0 %v7840_v43  ;;  %5720 = vmatprep.subr.bf16.mxu1 %v7851_v5 }
 0xd3a   :  { %v3647_v26 = vpop.f32.mrb[32].mxu0  ;;  %v3718_v13 = vpop.f32.mrb[32].mxu1 }
 0xd3b   :  { %v3723_v8 = vadd.f32 %v3647_v26, %v3512_v57  ;;  %v3649_v31 = vpop.f32.mrb[33].mxu0  ;;  %v3720_v32 = vpop.f32.mrb[33].mxu1  ;;  %v3725_v6 = vadd.f32 %v3718_v13, %v3514_v50 }
 0xd3c   :  { %v3724_v61 = vadd.f32 %v3649_v31, %v3513_v28  ;;  %v3726_v25 = vadd.f32 %v3720_v32, %v3515_v17  ;;  %v4256_v32 = vld [vmem:[%s8484_s5 + $0x8] sm:$0xff]  ;;  %v4259_v17 = vld [vmem:[%s8484_s5 + $0x20] sm:$0xff] }
 0xd3d   :  { %v3727_v35 = vmul.f32 0.5, %v3723_v8 }
 0xd3e   :  { %v3731_v36 = vmul.f32 0.5, %v3724_v61  ;;  %v3736_v43 = vmul.f32 0.5, %v3726_v25  ;;  %v4260_v61 = vld [vmem:[%s8484_s5 + $0x28] sm:$0xff] }
 0xd3f   :  { %5963 = vtanh.f32 %v3727_v35  ;;  %v4258_v35 = vld [vmem:[%s8484_s5 + $0x18] sm:$0xff]  ;;  %v5751_v50 = vpack.c.bf16 %v4260_v61, %v4256_v32 }
 0xd40   :  { %5965 = vtanh.f32 %v3731_v36  ;;  %v4262_v36 = vld [vmem:[%s8484_s5 + $0x38] sm:$0xff] }
 0xd41   :  { %5967 = vtanh.f32 %v3725_v6  ;;  %v4255_v6 = vld [vmem:[%s8484_s5] sm:$0xff]  ;;  %v5783_v25 = vpack.c.bf16 %v4262_v36, %v4258_v35  ;;  %v4302_v61 = vld [vmem:[%s8484_s5 + $0x178] sm:$0xff] }
 0xd42   :  { %5969 = vtanh.f32 %v3736_v43  ;;  %v5753_v43 = vpack.c.bf16 %v4259_v17, %v4255_v6  ;;  %v4295_v35 = vld [vmem:[%s8484_s5 + $0x140] sm:$0xff]  ;;  %v4297_v17 = vld [vmem:[%s8484_s5 + $0x150] sm:$0xff] }
 0xd49   :  { %v5964_v34 = vpop.eup %5963 }
 0xd4a   :  { %v5966_v5 = vpop.eup %5965  ;;  %v3729_v19 = vmul.f32 0.5, %v5964_v34  ;;  %v4257_v34 = vld [vmem:[%s8484_s5 + $0x10] sm:$0xff] }
 0xd4b   :  { %v3733_v33 = vmul.f32 0.5, %v5966_v5  ;;  %v5968_v29 = vpop.eup %5967  ;;  %v4261_v5 = vld [vmem:[%s8484_s5 + $0x30] sm:$0xff] }
 0xd4c   :  { %v3730_v41 = vadd.f32 0.5, %v3729_v19  ;;  %v5970_v58 = vpop.eup %5969  ;;  %v5785_v19 = vpack.c.bf16 %v4261_v5, %v4257_v34  ;;  %v4308_v5 = vld [vmem:[%s8484_s5 + $0x1a8] sm:$0xff] }
 0xd4d   :  { %v3734_v51 = vadd.f32 0.5, %v3733_v33  ;;  %v3738_v2 = vmul.f32 0.5, %v5970_v58  ;;  %v4264_v33 = vld [vmem:[%s8484_s5 + $0x48] sm:$0xff] }
 0xd4e   :  { %v3742_v0 = vmul.f32 %v5968_v29, %v3730_v41  ;;  %v4268_v41 = vld [vmem:[%s8484_s5 + $0x68] sm:$0xff]  ;;  %v4266_v29 = vld [vmem:[%s8484_s5 + $0x58] sm:$0xff] }
 0xd4f   :  { %v3741_v53 = vmul.f32 %v3740_v54, %v3734_v51  ;;  %v3739_v46 = vadd.f32 0.5, %v3738_v2  ;;  %v5755_v51 = vpack.c.bf16 %v4268_v41, %v4264_v33  ;;  %v4270_v54 = vld [vmem:[%s8484_s5 + $0x78] sm:$0xff]  ;;  %v4265_v2 = vld [vmem:[%s8484_s5 + $0x50] sm:$0xff] }
 0xd50   :  { %v4310_v33 = vld [vmem:[%s8484_s5 + $0x1b8] sm:$0xff] }
 0xd51   :  { %v3743_v18 = vadd.f32 %v3742_v0, %v3741_v53  ;;  %v4263_v0 = vld [vmem:[%s8484_s5 + $0x40] sm:$0xff] }
 0xd52   :  { %v4267_v53 = vld [vmem:[%s8484_s5 + $0x60] sm:$0xff] }
 0xd53   :  { %5971 = vtanh.f32 %v3743_v18  ;;  %3746 = vst [vmem:[#allocation5] sm:$0x3] %v3743_v18  ;;  %v5787_v18 = vpack.c.bf16 %v4270_v54, %v4266_v29  ;;  %v5757_v58 = vpack.c.bf16 %v4267_v53, %v4263_v0  ;;  %v4307_v54 = vld [vmem:[%s8484_s5 + $0x1a0] sm:$0xff]  ;;  %v4305_v0 = vld [vmem:[%s8484_s5 + $0x190] sm:$0xff] }
 0xd5d   :  { %v5972_v55 = vpop.eup %5971 }
 0xd5e   :  { %v3745_v40 = vmul.f32 %v5972_v55, %v3739_v46  ;;  %v4269_v46 = vld [vmem:[%s8484_s5 + $0x70] sm:$0xff] }
 0xd5f   :  { %v5789_v55 = vpack.c.bf16 %v4269_v46, %v4265_v2  ;;  %v4316_v2 = vld [vmem:[%s8484_s5 + $0x1e8] sm:$0xff] }
 0xd60   :  { %3747 = vst [vmem:[#allocation4] sm:$0x3] %v3745_v40  ;;  %v4272_v40 = vld [vmem:[%s8484_s5 + $0x88] sm:$0xff] }
 0xd67   :  { %v3752_v24 = vld [vmem:[#allocation4] sm:$0x3] }
 0xd68   :  { %3882 = vmatmul.mubr.f32.vlgmr.msra.gmra.mrb[34].mxu0 %v3752_v24  ;;  %3953 = vmatmul.mubr.f32.vlgmr.msra.gmra.mrb[34].mxu1 %v3752_v24  ;;  %v4276_v24 = vld [vmem:[%s8484_s5 + $0xa8] sm:$0xff] }
 0xd69   :  { %5690 = vmatpush1.bf16.msra.mxu0 %v7853_v63  ;;  %5722 = vmatpush1.bf16.msra.mxu1 %v7862_v37 }
 0xd6a   :  { %5692 = vmatprep.subr.bf16.mxu0 %v7876_v22  ;;  %5724 = vmatprep.subr.bf16.mxu1 %v7887_v45 }
 0xd6b   :  { %4132 = vmatprep.mubr.f32.mxu0 %v6027_v7  ;;  %4203 = vmatprep.mubr.f32.mxu1 %v6027_v7 }
 0xd6d   :  { %5694 = vmatpush1.bf16.msra.mxu0 %v7889_v9  ;;  %5726 = vmatpush1.bf16.msra.mxu1 %v7898_v27  ;;  %v3748_v27 = vld [vmem:[#allocation2 + $0x20] sm:$0xc] }
 0xd6e   :  { %5696 = vmatprep.subr.bf16.mxu0 %v7912_v3  ;;  %5728 = vmatprep.subr.bf16.mxu1 %v7923_v47 }
 0xd71   :  { %5698 = vmatpush1.bf16.msra.mxu0 %v7925_v15  ;;  %5730 = vmatpush1.bf16.msra.mxu1 %v7934_v59  ;;  %v3749_v59 = vld [vmem:[#allocation2 + $0x28] sm:$0xc] }
 0xd72   :  { %5700 = vmatprep.subr.bf16.mxu0 %v7948_v23  ;;  %5732 = vmatprep.subr.bf16.mxu1 %v7959_v56 }
 0xd75   :  { %5702 = vmatpush1.bf16.msra.mxu0 %v7961_v49  ;;  %5734 = vmatpush1.bf16.msra.mxu1 %v7970_v20  ;;  %v3750_v49 = vld [vmem:[#allocation2 + $0x30] sm:$0xc] }
 0xd76   :  { %5704 = vmatprep.subr.bf16.mxu0 %v7984_v16  ;;  %5736 = vmatprep.subr.bf16.mxu1 %v7995_v42 }
 0xd79   :  { %5706 = vmatpush1.bf16.msra.mxu0 %v7997_v44  ;;  %5738 = vmatpush1.bf16.msra.mxu1 %v8006_v4  ;;  %v3751_v44 = vld [vmem:[#allocation2 + $0x38] sm:$0xc] }
 0xd7a   :  { %5708 = vmatprep.subr.bf16.mxu0 %v8020_v62  ;;  %5740 = vmatprep.subr.bf16.mxu1 %v8031_v1 }
 0xd7d   :  { %5710 = vmatpush1.bf16.msra.mxu0 %v8033_v52  ;;  %5742 = vmatpush1.bf16.msra.mxu1 %v8042_v30 }
 0xd7e   :  { %5712 = vmatprep.subr.bf16.mxu0 %v8055_v38  ;;  %5744 = vmatprep.subr.bf16.mxu1 %v8067_v39  ;;  %v3988_v38 = vld [vmem:[#allocation5] sm:$0x3] }
 0xd81   :  { %5714 = vmatpush1.bf16.msra.mxu0 %v8069_v48  ;;  %5746 = vmatpush1.bf16.msra.mxu1 %v8081_v14 }
 0xd82   :  { %5716 = vmatprep.subr.bf16.mxu0 %v8093_v60  ;;  %5748 = vmatprep.subr.bf16.mxu1 %v8095_v12  ;;  %v3990_v12 = vrot.slane %v3988_v38, 6  ;;  %v4288_v38 = vld [vmem:[%s8484_s5 + $0x108] sm:$0xff] }
 0xd85   :  { %5718 = vmatpush1.bf16.msra.mxu0 %v8107_v10  ;;  %5750 = vmatpush1.bf16.msra.mxu1 %v8114_v11 }
 0xd86   :  { %5752 = vmatprep.subr.bf16.mxu0 %v5751_v50  ;;  %5784 = vmatprep.subr.bf16.mxu1 %v5783_v25  ;;  %v4299_v50 = vld [vmem:[%s8484_s5 + $0x160] sm:$0xff]  ;;  %v4301_v25 = vld [vmem:[%s8484_s5 + $0x170] sm:$0xff] }
 0xd87   :  { %v5773_v6 = vpack.c.bf16 %v4299_v50, %v4295_v35  ;;  %v5805_v34 = vpack.c.bf16 %v4301_v25, %v4297_v17  ;;  %v4502_v25 = vld [vmem:[%s8486_s7] sm:$0xff] }
 0xe3b   :  { %v3883_v63 = vpop.f32.mrb[34].mxu0  ;;  %v3954_v37 = vpop.f32.mrb[34].mxu1 }
 0xe3c   :  { %v3963_v22 = vrot.slane %v3883_v63, 6  ;;  %v3885_v45 = vpop.f32.mrb[35].mxu0  ;;  %v3956_v9 = vpop.f32.mrb[35].mxu1  ;;  %v3965_v15 = vrot.slane %v3954_v37, 6  ;;  %v4274_v63 = vld [vmem:[%s8484_s5 + $0x98] sm:$0xff]  ;;  %v5759_v37 = vpack.c.bf16 %v4276_v24, %v4272_v40 }
 0xe3d   :  { %v3964_v3 = vrot.slane %v3885_v45, 6  ;;  %v3966_v42 = vrot.slane %v3956_v9, 6  ;;  %v4271_v45 = vld [vmem:[%s8484_s5 + $0x80] sm:$0xff]  ;;  %v4314_v40 = vld [vmem:[%s8484_s5 + $0x1d8] sm:$0xff] }
 0xe3e   :  { %v3971_v47 = vadd.f32 %v3963_v22, %v3748_v27  ;;  %v3973_v16 = vadd.f32 %v3965_v15, %v3750_v49  ;;  %v4278_v22 = vld [vmem:[%s8484_s5 + $0xb8] sm:$0xff]  ;;  %v4275_v9 = vld [vmem:[%s8484_s5 + $0xa0] sm:$0xff]  ;;  %v4277_v15 = vld [vmem:[%s8484_s5 + $0xb0] sm:$0xff] }
 0xe3f   :  { %v3972_v23 = vadd.f32 %v3964_v3, %v3749_v59  ;;  %v3974_v4 = vadd.f32 %v3966_v42, %v3751_v44  ;;  %v5791_v27 = vpack.c.bf16 %v4278_v22, %v4274_v63  ;;  %v5761_v3 = vpack.c.bf16 %v4275_v9, %v4271_v45  ;;  %v4282_v49 = vld [vmem:[%s8484_s5 + $0xd8] sm:$0xff]  ;;  %v4279_v42 = vld [vmem:[%s8484_s5 + $0xc0] sm:$0xff]  ;;  %v4313_v45 = vld [vmem:[%s8484_s5 + $0x1d0] sm:$0xff] }
 0xe40   :  { %v3975_v56 = vmul.f32 0.5, %v3971_v47  ;;  %v4273_v47 = vld [vmem:[%s8484_s5 + $0x90] sm:$0xff]  ;;  %v4283_v44 = vld [vmem:[%s8484_s5 + $0xe0] sm:$0xff]  ;;  %v4318_v24 = vld [vmem:[%s8484_s5 + $0x1f8] sm:$0xff] }
 0xe41   :  { %v3979_v20 = vmul.f32 0.5, %v3972_v23  ;;  %v3984_v62 = vmul.f32 0.5, %v3974_v4  ;;  %v5793_v59 = vpack.c.bf16 %v4277_v15, %v4273_v47  ;;  %v4280_v23 = vld [vmem:[%s8484_s5 + $0xc8] sm:$0xff]  ;;  %v4311_v63 = vld [vmem:[%s8484_s5 + $0x1c0] sm:$0xff]  ;;  %v4317_v9 = vld [vmem:[%s8484_s5 + $0x1f0] sm:$0xff] }
 0xe42   :  { %5973 = vtanh.f32 %v3975_v56  ;;  %v4284_v56 = vld [vmem:[%s8484_s5 + $0xe8] sm:$0xff]  ;;  %v4315_v22 = vld [vmem:[%s8484_s5 + $0x1e0] sm:$0xff] }
 0xe43   :  { %5975 = vtanh.f32 %v3979_v20  ;;  %v5763_v20 = vpack.c.bf16 %v4284_v56, %v4280_v23 }
 0xe44   :  { %5977 = vtanh.f32 %v3973_v16  ;;  %v4286_v16 = vld [vmem:[%s8484_s5 + $0xf8] sm:$0xff] }
 0xe45   :  { %5979 = vtanh.f32 %v3984_v62  ;;  %v5795_v4 = vpack.c.bf16 %v4286_v16, %v4282_v49  ;;  %v5765_v62 = vpack.c.bf16 %v4283_v44, %v4279_v42  ;;  %v3999_v49 = vld [vmem:[#allocation2 + $0x20] sm:$0x30]  ;;  %v4000_v44 = vld [vmem:[#allocation2 + $0x28] sm:$0x30] }
 0xe4c   :  { %v5974_v1 = vpop.eup %5973 }
 0xe4d   :  { %v5976_v52 = vpop.eup %5975  ;;  %v3977_v30 = vmul.f32 0.5, %v5974_v1  ;;  %v4281_v1 = vld [vmem:[%s8484_s5 + $0xd0] sm:$0xff] }
 0xe4e   :  { %v3981_v39 = vmul.f32 0.5, %v5976_v52  ;;  %v5978_v14 = vpop.eup %5977  ;;  %v4285_v52 = vld [vmem:[%s8484_s5 + $0xf0] sm:$0xff] }
 0xe4f   :  { %v3978_v48 = vadd.f32 0.5, %v3977_v30  ;;  %v5980_v57 = vpop.eup %5979  ;;  %v5797_v30 = vpack.c.bf16 %v4285_v52, %v4281_v1  ;;  %v4001_v1 = vld [vmem:[#allocation2 + $0x30] sm:$0x30] }
 0xe50   :  { %v3982_v60 = vadd.f32 0.5, %v3981_v39  ;;  %v3986_v26 = vmul.f32 0.5, %v5980_v57  ;;  %v4292_v39 = vld [vmem:[%s8484_s5 + $0x128] sm:$0xff]  ;;  %v4289_v57 = vld [vmem:[%s8484_s5 + $0x110] sm:$0xff] }
 0xe51   :  { %v3993_v10 = vmul.f32 %v5978_v14, %v3978_v48  ;;  %v4290_v48 = vld [vmem:[%s8484_s5 + $0x118] sm:$0xff]  ;;  %v5767_v14 = vpack.c.bf16 %v4292_v39, %v4288_v38 }
 0xe52   :  { %v3992_v11 = vmul.f32 %v3990_v12, %v3982_v60  ;;  %v3987_v13 = vadd.f32 0.5, %v3986_v26  ;;  %v4294_v60 = vld [vmem:[%s8484_s5 + $0x138] sm:$0xff]  ;;  %v4287_v12 = vld [vmem:[%s8484_s5 + $0x100] sm:$0xff]  ;;  %v4293_v26 = vld [vmem:[%s8484_s5 + $0x130] sm:$0xff] }
 0xe53   :  { %v4002_v39 = vld [vmem:[#allocation2 + $0x38] sm:$0x30] }
 0xe54   :  { %v3994_v21 = vadd.f32 %v3993_v10, %v3992_v11  ;;  %v4291_v10 = vld [vmem:[%s8484_s5 + $0x120] sm:$0xff]  ;;  %v5799_v11 = vpack.c.bf16 %v4294_v60, %v4290_v48 }
 0xe56   :  { %5981 = vtanh.f32 %v3994_v21  ;;  %3997 = vst [vmem:[#allocation5 - $0x2] sm:$0xc] %v3994_v21  ;;  %v5769_v21 = vpack.c.bf16 %v4291_v10, %v4287_v12 }
 0xe60   :  { %v5982_v8 = vpop.eup %5981 }
 0xe61   :  { %v3996_v28 = vmul.f32 %v5982_v8, %v3987_v13  ;;  %v5801_v13 = vpack.c.bf16 %v4293_v26, %v4289_v57  ;;  %v4296_v8 = vld [vmem:[%s8484_s5 + $0x148] sm:$0xff] }
 0xe63   :  { %3998 = vst [vmem:[#allocation4 - $0x2] sm:$0xc] %v3996_v28  ;;  %v4300_v28 = vld [vmem:[%s8484_s5 + $0x168] sm:$0xff] }
 0xe64   :  { %v5771_v32 = vpack.c.bf16 %v4300_v28, %v4296_v8 }
 0xe6a   :  { %v4003_v31 = vld [vmem:[#allocation4] sm:$0x3] }
 0xe6b   :  { %4133 = vmatmul.mubr.f32.vlgmr.msra.gmra.mrb[36].mxu0 %v4003_v31  ;;  %4204 = vmatmul.mubr.f32.vlgmr.msra.gmra.mrb[36].mxu1 %v4003_v31  ;;  %v4298_v31 = vld [vmem:[%s8484_s5 + $0x158] sm:$0xff] }
 0xe6c   :  { %4383 = vmatprep.mubr.f32.mxu0 %v6027_v7  ;;  %4454 = vmatprep.mubr.f32.mxu1 %v6027_v7  ;;  %v5803_v36 = vpack.c.bf16 %v4302_v61, %v4298_v31 }
 0xe6d   :  { %5754 = vmatpush1.bf16.msra.mxu0 %v5753_v43  ;;  %5786 = vmatpush1.bf16.msra.mxu1 %v5785_v19  ;;  %v4304_v43 = vld [vmem:[%s8484_s5 + $0x188] sm:$0xff]  ;;  %v4306_v19 = vld [vmem:[%s8484_s5 + $0x198] sm:$0xff] }
 0xe6e   :  { %5756 = vmatprep.subr.bf16.mxu0 %v5755_v51  ;;  %5788 = vmatprep.subr.bf16.mxu1 %v5787_v18  ;;  %v5775_v41 = vpack.c.bf16 %v4308_v5, %v4304_v43  ;;  %v5807_v29 = vpack.c.bf16 %v4310_v33, %v4306_v19  ;;  %v4303_v51 = vld [vmem:[%s8484_s5 + $0x180] sm:$0xff]  ;;  %v4309_v18 = vld [vmem:[%s8484_s5 + $0x1b0] sm:$0xff]  ;;  %v4503_v43 = vld [vmem:[%s8486_s7 + $0x8] sm:$0xff]  ;;  %v6028_v5 = vmov 0.0|0.0  }
 0xe6f   :  { %v5777_v53 = vpack.c.bf16 %v4307_v54, %v4303_v51  ;;  %v5809_v46 = vpack.c.bf16 %v4309_v18, %v4305_v0  ;;  %v4504_v19 = vld [vmem:[%s8486_s7 + $0x10] sm:$0xff]  ;;  %v4505_v33 = vld [vmem:[%s8486_s7 + $0x18] sm:$0xff]  ;;  %v4507_v51 = vld [vmem:[%s8486_s7 + $0x28] sm:$0xff] }
 0xe70   :  { %v4508_v0 = vld [vmem:[%s8486_s7 + $0x30] sm:$0xff] }
 0xe71   :  { %5758 = vmatpush1.bf16.msra.mxu0 %v5757_v58  ;;  %5790 = vmatpush1.bf16.msra.mxu1 %v5789_v55  ;;  %v4312_v58 = vld [vmem:[%s8484_s5 + $0x1c8] sm:$0xff] }
 0xe72   :  { %5760 = vmatprep.subr.bf16.mxu0 %v5759_v37  ;;  %5792 = vmatprep.subr.bf16.mxu1 %v5791_v27  ;;  %v5779_v55 = vpack.c.bf16 %v4316_v2, %v4312_v58  ;;  %v5811_v37 = vpack.c.bf16 %v4318_v24, %v4314_v40  ;;  %v5781_v27 = vpack.c.bf16 %v4315_v22, %v4311_v63  ;;  %v4510_v58 = vld [vmem:[%s8486_s7 + $0x40] sm:$0xff]  ;;  %v4511_v2 = vld [vmem:[%s8486_s7 + $0x48] sm:$0xff]  ;;  %v4513_v40 = vld [vmem:[%s8486_s7 + $0x58] sm:$0xff] }
 0xe73   :  { %v4514_v63 = vld [vmem:[%s8486_s7 + $0x60] sm:$0xff] }
 0xe75   :  { %5762 = vmatpush1.bf16.msra.mxu0 %v5761_v3  ;;  %5794 = vmatpush1.bf16.msra.mxu1 %v5793_v59  ;;  %v5813_v3 = vpack.c.bf16 %v4317_v9, %v4313_v45  ;;  %v4516_v45 = vld [vmem:[%s8486_s7 + $0x70] sm:$0xff]  ;;  %v4517_v9 = vld [vmem:[%s8486_s7 + $0x78] sm:$0xff] }
 0xe76   :  { %5764 = vmatprep.subr.bf16.mxu0 %v5763_v20  ;;  %5796 = vmatprep.subr.bf16.mxu1 %v5795_v4 }
 0xe79   :  { %5766 = vmatpush1.bf16.msra.mxu0 %v5765_v62  ;;  %5798 = vmatpush1.bf16.msra.mxu1 %v5797_v30 }
 0xe7a   :  { %5768 = vmatprep.subr.bf16.mxu0 %v5767_v14  ;;  %5800 = vmatprep.subr.bf16.mxu1 %v5799_v11  ;;  %v4239_v11 = vld [vmem:[#allocation5] sm:$0x3] }
 0xe7b   :  { %v4241_v8 = vrot.slane %v4239_v11, 4 }
 0xe7d   :  { %5770 = vmatpush1.bf16.msra.mxu0 %v5769_v21  ;;  %5802 = vmatpush1.bf16.msra.mxu1 %v5801_v13 }
 0xe7e   :  { %5772 = vmatprep.subr.bf16.mxu0 %v5771_v32  ;;  %5804 = vmatprep.subr.bf16.mxu1 %v5803_v36 }
 0xe81   :  { %5774 = vmatpush1.bf16.msra.mxu0 %v5773_v6  ;;  %5806 = vmatpush1.bf16.msra.mxu1 %v5805_v34  ;;  %v5816_v34 = vpack.c.bf16 %v4503_v43, %v4502_v25 }
 0xe82   :  { %5776 = vmatprep.subr.bf16.mxu0 %v5775_v41  ;;  %5808 = vmatprep.subr.bf16.mxu1 %v5807_v29  ;;  %v5819_v41 = vpack.c.bf16 %v4505_v33, %v4504_v19  ;;  %v4506_v29 = vld [vmem:[%s8486_s7 + $0x20] sm:$0xff] }
 0xe83   :  { %v5822_v54 = vpack.c.bf16 %v4507_v51, %v4506_v29 }
 0xe85   :  { %5778 = vmatpush1.bf16.msra.mxu0 %v5777_v53  ;;  %5810 = vmatpush1.bf16.msra.mxu1 %v5809_v46  ;;  %v4509_v53 = vld [vmem:[%s8486_s7 + $0x38] sm:$0xff]  ;;  %v5828_v46 = vpack.c.bf16 %v4511_v2, %v4510_v58 }
 0xe86   :  { %5780 = vmatprep.subr.bf16.mxu0 %v5779_v55  ;;  %5812 = vmatprep.subr.bf16.mxu1 %v5811_v37  ;;  %v5825_v18 = vpack.c.bf16 %v4509_v53, %v4508_v0  ;;  %v4512_v55 = vld [vmem:[%s8486_s7 + $0x50] sm:$0xff]  ;;  %v4515_v37 = vld [vmem:[%s8486_s7 + $0x68] sm:$0xff] }
 0xe87   :  { %v5831_v24 = vpack.c.bf16 %v4513_v40, %v4512_v55  ;;  %v5834_v22 = vpack.c.bf16 %v4515_v37, %v4514_v63 }
 0xe89   :  { %5782 = vmatpush1.bf16.msra.mxu0 %v5781_v27  ;;  %5814 = vmatpush1.bf16.msra.mxu1 %v5813_v3  ;;  %v5837_v27 = vpack.c.bf16 %v4517_v9, %v4516_v45 }
 0xe8a   :  { %5815 = vmatprep.subr.bf16.mxu0 %v6028_v5 }
 0xf3e   :  { %v4134_v47 = vpop.f32.mrb[36].mxu0  ;;  %v4205_v15 = vpop.f32.mrb[36].mxu1 }
 0xf3f   :  { %v4214_v59 = vrot.slane %v4134_v47, 4  ;;  %v4136_v23 = vpop.f32.mrb[37].mxu0  ;;  %v4207_v56 = vpop.f32.mrb[37].mxu1  ;;  %v4216_v42 = vrot.slane %v4205_v15, 4 }
 0xf40   :  { %v4215_v20 = vrot.slane %v4136_v23, 4  ;;  %v4217_v38 = vrot.slane %v4207_v56, 4  ;;  %v4250_v23 = vld [vmem:[#allocation2 + $0x20] sm:$0xc0] }
 0xf41   :  { %v4222_v16 = vadd.f32 %v4214_v59, %v3999_v49  ;;  %v4224_v30 = vadd.f32 %v4216_v42, %v4001_v1 }
 0xf42   :  { %v4223_v4 = vadd.f32 %v4215_v20, %v4000_v44  ;;  %v4225_v48 = vadd.f32 %v4217_v38, %v4002_v39 }
 0xf43   :  { %v4226_v62 = vmul.f32 0.5, %v4222_v16  ;;  %v4251_v16 = vld [vmem:[#allocation2 + $0x28] sm:$0xc0] }
 0xf44   :  { %v4230_v52 = vmul.f32 0.5, %v4223_v4  ;;  %v4235_v14 = vmul.f32 0.5, %v4225_v48  ;;  %v4252_v4 = vld [vmem:[#allocation2 + $0x30] sm:$0xc0] }
 0xf45   :  { %5983 = vtanh.f32 %v4226_v62 }
 0xf46   :  { %5985 = vtanh.f32 %v4230_v52 }
 0xf47   :  { %5987 = vtanh.f32 %v4224_v30  ;;  %v4253_v30 = vld [vmem:[#allocation2 + $0x38] sm:$0xc0] }
 0xf48   :  { %5989 = vtanh.f32 %v4235_v14 }
 0xf4f   :  { %v5984_v60 = vpop.eup %5983 }
 0xf50   :  { %v5986_v12 = vpop.eup %5985  ;;  %v4228_v10 = vmul.f32 0.5, %v5984_v60 }
 0xf51   :  { %v4232_v21 = vmul.f32 0.5, %v5986_v12  ;;  %v5988_v26 = vpop.eup %5987 }
 0xf52   :  { %v4229_v57 = vadd.f32 0.5, %v4228_v10  ;;  %v5990_v61 = vpop.eup %5989 }
 0xf53   :  { %v4233_v13 = vadd.f32 0.5, %v4232_v21  ;;  %v4237_v35 = vmul.f32 0.5, %v5990_v61 }
 0xf54   :  { %v4244_v28 = vmul.f32 %v5988_v26, %v4229_v57 }
 0xf55   :  { %v4243_v31 = vmul.f32 %v4241_v8, %v4233_v13  ;;  %v4238_v50 = vadd.f32 0.5, %v4237_v35 }
 0xf57   :  { %v4245_v32 = vadd.f32 %v4244_v28, %v4243_v31 }
 0xf59   :  { %5991 = vtanh.f32 %v4245_v32  ;;  %4248 = vst [vmem:[#allocation5 - $0x4] sm:$0x30] %v4245_v32 }
 0xf60   :  { %v4490_v12 = vld [vmem:[#allocation5] sm:$0x3] }
 0xf61   :  { %v4492_v26 = vrot.slane %v4490_v12, 2 }
 0xf63   :  { %v5992_v36 = vpop.eup %5991 }
 0xf64   :  { %v4247_v6 = vmul.f32 %v5992_v36, %v4238_v50 }
 0xf66   :  { %4249 = vst [vmem:[#allocation4 - $0x4] sm:$0x30] %v4247_v6  ;;  %v4610_v6 = vld [vmem:[%s8487_s8] ss:$0 sm:$0xff] }
 0xf6d   :  { %v4254_v17 = vld [vmem:[#allocation4] sm:$0x3] }
 0xf6e   :  { %4384 = vmatmul.mubr.f32.vlgmr.msra.gmra.mrb[38].mxu0 %v4254_v17  ;;  %4455 = vmatmul.mubr.f32.vlgmr.msra.gmra.mrb[38].mxu1 %v4254_v17 }
 0xf6f   :  { %5817 = vmatpush3.bf16.msra.mxu0 %v5816_v34  ;;  %4660 = vmatprep.mubr.msk.f32.mxu0 %vm6029_vm0, %v6027_v7 }
 0xf70   :  { %5818 = vmatprep.subr.bf16.mxu0 %v6028_v5 }
 0xf73   :  { %5820 = vmatpush3.bf16.msra.mxu0 %v5819_v41 }
 0xf74   :  { %5821 = vmatprep.subr.bf16.mxu0 %v6028_v5 }
 0xf77   :  { %5823 = vmatpush3.bf16.msra.mxu0 %v5822_v54 }
 0xf78   :  { %5824 = vmatprep.subr.bf16.mxu0 %v6028_v5 }
 0xf7b   :  { %5826 = vmatpush3.bf16.msra.mxu0 %v5825_v18 }
 0xf7c   :  { %5827 = vmatprep.subr.bf16.mxu0 %v6028_v5 }
 0xf7f   :  { %5829 = vmatpush3.bf16.msra.mxu0 %v5828_v46 }
 0xf80   :  { %5830 = vmatprep.subr.bf16.mxu0 %v6028_v5 }
 0xf83   :  { %5832 = vmatpush3.bf16.msra.mxu0 %v5831_v24 }
 0xf84   :  { %5833 = vmatprep.subr.bf16.mxu0 %v6028_v5 }
 0xf87   :  { %5835 = vmatpush3.bf16.msra.mxu0 %v5834_v22 }
 0xf88   :  { %5836 = vmatprep.subr.bf16.mxu0 %v6028_v5 }
 0xf8b   :  { %5838 = vmatpush3.bf16.msra.mxu0 %v5837_v27 }
0x1041   :  { %v4385_v3 = vpop.f32.mrb[38].mxu0  ;;  %v4456_v47 = vpop.f32.mrb[38].mxu1 }
0x1042   :  { %v4465_v15 = vrot.slane %v4385_v3, 2  ;;  %v4387_v59 = vpop.f32.mrb[39].mxu0  ;;  %v4458_v7 = vpop.f32.mrb[39].mxu1  ;;  %v4467_v20 = vrot.slane %v4456_v47, 2 }
0x1043   :  { %v4466_v56 = vrot.slane %v4387_v59, 2  ;;  %v4468_v52 = vrot.slane %v4458_v7, 2 }
0x1044   :  { %v4473_v49 = vadd.f32 %v4465_v15, %v4250_v23  ;;  %v4475_v1 = vadd.f32 %v4467_v20, %v4252_v4 }
0x1045   :  { %v4474_v42 = vadd.f32 %v4466_v56, %v4251_v16  ;;  %v4476_v38 = vadd.f32 %v4468_v52, %v4253_v30 }
0x1046   :  { %v4477_v44 = vmul.f32 0.5, %v4473_v49 }
0x1047   :  { %v4481_v62 = vmul.f32 0.5, %v4474_v42  ;;  %v4486_v39 = vmul.f32 0.5, %v4476_v38 }
0x1048   :  { %5993 = vtanh.f32 %v4477_v44 }
0x1049   :  { %5995 = vtanh.f32 %v4481_v62 }
0x104a   :  { %5997 = vtanh.f32 %v4475_v1 }
0x104b   :  { %5999 = vtanh.f32 %v4486_v39 }
0x1052   :  { %v5994_v48 = vpop.eup %5993 }
0x1053   :  { %v5996_v14 = vpop.eup %5995  ;;  %v4479_v60 = vmul.f32 0.5, %v5994_v48 }
0x1054   :  { %v4483_v10 = vmul.f32 0.5, %v5996_v14  ;;  %v5998_v21 = vpop.eup %5997 }
0x1055   :  { %v4480_v11 = vadd.f32 0.5, %v4479_v60  ;;  %v6000_v31 = vpop.eup %5999 }
0x1056   :  { %v4484_v57 = vadd.f32 0.5, %v4483_v10  ;;  %v4488_v32 = vmul.f32 0.5, %v6000_v31 }
0x1057   :  { %v4495_v13 = vmul.f32 %v5998_v21, %v4480_v11 }
0x1058   :  { %v4494_v8 = vmul.f32 %v4492_v26, %v4484_v57  ;;  %v4489_v61 = vadd.f32 0.5, %v4488_v32 }
0x105a   :  { %v4496_v28 = vadd.f32 %v4495_v13, %v4494_v8 }
0x105c   :  { %6001 = vtanh.f32 %v4496_v28  ;;  %4499 = vst [vmem:[#allocation5 - $0x6] sm:$0xc0] %v4496_v28 }
0x1066   :  { %v6002_v35 = vpop.eup %6001 }
0x1067   :  { %v4498_v50 = vmul.f32 %v6002_v35, %v4489_v61 }
0x1069   :  { %4500 = vst [vmem:[#allocation4 - $0x6] sm:$0xc0] %v4498_v50 }
0x1070   :  { %v4501_v36 = vld [vmem:[#allocation4] sm:$0x3] }
0x1071   :  { %4661 = vmatmul.mubr.f32.vlgmr.msra.gmra.mrb[40].mxu0 %v4501_v36 }
0x1144   :  { %v4591_v17 = vpop.f32.mrb[40].mxu0 }
0x1145   :  { %v4592_v25 = vadd.f32 %v4610_v6, %v4591_v17  ;;  %v4662_v43 = vpop.f32.mrb[41].mxu0 }
0x1147   :  { %4595 = vst [vmem:[#allocation6] sm:$0x3] %v4592_v25 }
0x1148   :  { %6014 = shalt.err (!%p6011_p4)
}
0x1149   :  { %s6015_s21 = scalar_lea.hbm %s8488_s9, 32 }
0x114a   :  { %p6016_p5 = scmp.ne.s32.totalorder %s8488_s9, %s6015_s21  ;;  %p6019_p6 = scmp.lt.u32.totalorder %s6015_s21, %s8488_s9 }
0x114c   :  { %p6021_p7 = pnand %p6019_p6, %p6016_p5 }
0x114e   :  { %6024 = shalt.err (!%p6021_p7)
}
0x114f   :  { %4605 = dma.vmem_to_hbm [thread:$0]  %s4603_s18, 32, %s8488_s9, [#allocation7]  }
0x1150   :  { %6025 = dma.done.wait [#allocation7], 32  }
0x1151   :  { %6026 = vsyncadd [#allocation7], 4294967264 }
0x1152   :  { %4609 = vsyncpa [#allocation7], 1 }

</bundles_post_ra>
